<compile_context>
chip_gen: v7x
topology: tpu7x:2x2x1
jax: 0.10.0
libtpu: 0.0.40
codegen_flags: <defaults>
</compile_context>

<pallas_src>
import functools

import jax
import jax.numpy as jnp
from jax.experimental import pallas as pl
from jax.experimental.pallas import tpu as pltpu


def _round_up(x, m):
    return ((x + m - 1) // m) * m


# ----------------------------------------------------------------------------
# Fused kernel: (conv3x3+BN+ReLU) x2 per frame -> temporal mean ->
#               (conv3x3+BN+ReLU) -> conv3x3, all channels-first (C, H*W).
# ----------------------------------------------------------------------------
def _optic_fused_kernel(x_ref, w0_ref, b0_ref, w1_ref, b1_ref,
                        wt_ref, bt_ref, wc_ref, bc_ref,
                        o_ref, pad_ref, *, H, W, T):
    HW = H * W
    LP = _round_up(W + 1, 128)          # halo width (lanes) in the row buffer

    # Column-validity masks for the kw=0 / kw=2 taps (computed once, reused).
    col = jax.lax.broadcasted_iota(jnp.int32, (1, HW), 1) % W
    not_left = col != 0                  # kw == 0 tap invalid at w == 0
    not_right = col != (W - 1)           # kw == 2 tap invalid at w == W - 1

    # Zero the padded row buffer once per grid step; only the halo lanes need
    # to stay zero, interiors are overwritten before every use.
    pad_ref[...] = jnp.zeros_like(pad_ref)

    def conv3x3(x_bf16, w_ref, b_ref, relu):
        """3x3 conv (pad=1) + per-channel bias (+ ReLU), channels-first.

        x_bf16: (Cin, H*W) bf16.   w_ref: (Cout, 9*Cin) bf16 (BN scale folded).
        b_ref:  (Cout, 1) f32.     Returns (Cout, H*W) f32.
        """
        C = x_bf16.shape[0]
        # Write the image into the interior of the zero-padded row buffer; the
        # LP-lane halos emulate the zero row above/below the image.
        pad_ref[0:C, LP:LP + HW] = x_bf16
        taps = []
        for kh in range(3):
            for kw in range(3):
                start = LP + kh * W + kw - (W + 1)
                p = pad_ref[0:C, start:start + HW]   # x[c, h+kh-1, w+kw-1]
                if kw == 0:
                    p = jnp.where(not_left, p, jnp.zeros_like(p))
                elif kw == 2:
                    p = jnp.where(not_right, p, jnp.zeros_like(p))
                taps.append(p)
        patches = jnp.concatenate(taps, axis=0)       # (9*Cin, H*W) im2col
        y = jnp.dot(w_ref[...], patches, preferred_element_type=jnp.float32)
        y = y + b_ref[...]
        if relu:
            y = jnp.maximum(y, 0.0)
        return y

    # ---- stage 1: per-frame conv0 -> bn -> relu -> conv1 -> bn -> relu ------
    acc = None
    for t in range(T):
        x = x_ref[0, t]                                # (Cin_pad, H*W) bf16
        h = conv3x3(x, w0_ref, b0_ref, relu=True)
        h = conv3x3(h.astype(jnp.bfloat16), w1_ref, b1_ref, relu=True)
        acc = h if acc is None else acc + h

    # ---- stage 2: temporal mean (TST stand-in) -> conv+bn+relu -> classconv -
    z = (acc * (1.0 / T)).astype(jnp.bfloat16)
    g = conv3x3(z, wt_ref, bt_ref, relu=True)
    out = conv3x3(g.astype(jnp.bfloat16), wc_ref, bc_ref, relu=False)
    o_ref[0] = out.astype(o_ref.dtype)


# ----------------------------------------------------------------------------
# Wrapper: pack/fold params, single pallas_call for the whole forward.
# ----------------------------------------------------------------------------
def optic_tst_forward(params, x1, x2):
    """Forward of Optic_TST (eval mode). x2 is unused by the reference forward
    and is accepted and ignored here as well."""
    del x2
    B, T1, E1, H, W = x1.shape
    HW = H * W
    cin_pad = params["w0"].shape[1] // 9
    label_c = params["wc"].shape[0]
    cmax = max(cin_pad, params["w0"].shape[0], params["w1"].shape[0],
               params["wt"].shape[0])
    LP = _round_up(W + 1, 128)

    # NCHW already has channels ahead of spatial -> metadata-only reshape, then
    # pad channels to a multiple of 16 (bf16 sublane packing) and cast to bf16.
    x = x1.reshape(B, T1, E1, HW)
    x = jnp.pad(x, ((0, 0), (0, 0), (0, cin_pad - E1), (0, 0)))
    x = x.astype(jnp.bfloat16)

    kernel = functools.partial(_optic_fused_kernel, H=H, W=W, T=T1)
    out = pl.pallas_call(
        kernel,
        out_shape=jax.ShapeDtypeStruct((B, label_c, HW), jnp.float32),
        grid_spec=pltpu.PrefetchScalarGridSpec(
            num_scalar_prefetch=0,
            grid=(B,),
            in_specs=[
                pl.BlockSpec((1, T1, cin_pad, HW), lambda b: (b, 0, 0, 0)),
                pl.BlockSpec(params["w0"].shape, lambda b: (0, 0)),
                pl.BlockSpec(params["b0"].shape, lambda b: (0, 0)),
                pl.BlockSpec(params["w1"].shape, lambda b: (0, 0)),
                pl.BlockSpec(params["b1"].shape, lambda b: (0, 0)),
                pl.BlockSpec(params["wt"].shape, lambda b: (0, 0)),
                pl.BlockSpec(params["bt"].shape, lambda b: (0, 0)),
                pl.BlockSpec(params["wc"].shape, lambda b: (0, 0)),
                pl.BlockSpec(params["bc"].shape, lambda b: (0, 0)),
            ],
            out_specs=pl.BlockSpec((1, label_c, HW), lambda b: (b, 0, 0)),
            scratch_shapes=[pltpu.VMEM((cmax, LP + HW + LP), jnp.bfloat16)],
        ),
        compiler_params=pltpu.CompilerParams(
            dimension_semantics=("parallel",),   # batch axis -> 2 TCs on v7x
        ),
    )(x, params["w0"], params["b0"], params["w1"], params["b1"],
      params["wt"], params["bt"], params["wc"], params["bc"])
    return out.reshape(B, label_c, H, W)


# ----------------------------------------------------------------------------
# Parameter construction: synthetic weights, eval-mode BN folded into the conv
# weight (scale) and bias, packed as (Cout, 9*Cin) bf16 matmul operands.
# ----------------------------------------------------------------------------
def _pack_conv(w_hwio, conv_bias, gamma=None, beta=None, mean=None, var=None,
               eps=1e-5, cin_pad=None):
    _, _, cin, cout = w_hwio.shape
    if gamma is not None:
        s = gamma / jnp.sqrt(var + eps)
        w = w_hwio * s[None, None, None, :]
        b = (conv_bias - mean) * s + beta
    else:
        w, b = w_hwio, conv_bias
    if cin_pad is not None and cin_pad > cin:
        w = jnp.pad(w, ((0, 0), (0, 0), (0, cin_pad - cin), (0, 0)))
        cin = cin_pad
    wmat = jnp.transpose(w, (3, 0, 1, 2)).reshape(cout, 9 * cin)  # (kh,kw,cin)
    return wmat.astype(jnp.bfloat16), b.reshape(cout, 1).astype(jnp.float32)


def make_params(key, input_c0=10, leve_dims=(32, 64, 128), label_c=9,
                dim_weight=64, eps=1e-5):
    d0 = leve_dims[0]
    half = d0 // 2
    cin_pad = _round_up(input_c0, 16)

    def conv_w(k, cin, cout):
        return jax.random.normal(k, (3, 3, cin, cout), jnp.float32) / jnp.sqrt(9.0 * cin)

    def bn(k, c):
        kg, kb = jax.random.split(k)
        gamma = 1.0 + 0.01 * jax.random.normal(kg, (c,), jnp.float32)
        beta = 0.01 * jax.random.normal(kb, (c,), jnp.float32)
        # Fresh eval-mode running stats (new nn.BatchNorm2d): mean=0, var=1.
        return gamma, beta, jnp.zeros((c,), jnp.float32), jnp.ones((c,), jnp.float32)

    ks = jax.random.split(key, 10)
    params = {}

    w0 = conv_w(ks[0], input_c0, half)
    cb0 = 0.01 * jax.random.normal(ks[1], (half,), jnp.float32)
    params["w0"], params["b0"] = _pack_conv(w0, cb0, *bn(ks[2], half),
                                            eps=eps, cin_pad=cin_pad)

    w1 = conv_w(ks[3], half, d0)
    cb1 = 0.01 * jax.random.normal(ks[4], (d0,), jnp.float32)
    params["w1"], params["b1"] = _pack_conv(w1, cb1, *bn(ks[5], d0), eps=eps)

    # TODO(synk): the TST submodule is not defined in optic_TST.py; stand-in is
    # a temporal mean + one conv3x3(dims[0] -> dim_weight) + BN + ReLU so the
    # downstream classconv (dim_weight -> label_c) sees the expected shape.
    wt = conv_w(ks[6], d0, dim_weight)
    cbt = jnp.zeros((dim_weight,), jnp.float32)
    params["wt"], params["bt"] = _pack_conv(wt, cbt, *bn(ks[7], dim_weight), eps=eps)

    # classconv_optic: plain conv, no BN / no ReLU.
    wc = conv_w(ks[8], dim_weight, label_c)
    cbc = 0.01 * jax.random.normal(ks[9], (label_c,), jnp.float32)
    params["wc"], params["bc"] = _pack_conv(wc, cbc)
    return params


# ----------------------------------------------------------------------------
# Pure-JAX reference (mirrors the kernel's bf16 rounding points) for checking.
# ----------------------------------------------------------------------------
def _ref_conv(x_f32, wmat, b, relu):
    cout, k9 = wmat.shape
    cin = k9 // 9
    w = wmat.astype(jnp.float32).reshape(cout, 3, 3, cin).transpose(0, 3, 1, 2)
    y = jax.lax.conv_general_dilated(
        x_f32, w, window_strides=(1, 1), padding="SAME",
        dimension_numbers=("NCHW", "OIHW", "NCHW"))
    y = y + b.astype(jnp.float32).reshape(1, cout, 1, 1)
    return jnp.maximum(y, 0.0) if relu else y


def reference_forward(params, x1):
    B, T1, E1, H, W = x1.shape
    cin_pad = params["w0"].shape[1] // 9
    bf = lambda a: a.astype(jnp.bfloat16).astype(jnp.float32)
    x = x1.reshape(B * T1, E1, H, W)
    x = jnp.pad(x, ((0, 0), (0, cin_pad - E1), (0, 0), (0, 0)))
    h = _ref_conv(bf(x), params["w0"], params["b0"], True)
    h = _ref_conv(bf(h), params["w1"], params["b1"], True)
    c0 = h.shape[1]
    h = h.reshape(B, T1, c0, H, W).mean(axis=1)
    g = _ref_conv(bf(h), params["wt"], params["bt"], True)
    return _ref_conv(bf(g), params["wc"], params["bc"], False)


if __name__ == "__main__":
    key = jax.random.PRNGKey(0)
    k_p, k_x1, k_x2 = jax.random.split(key, 3)

    # Small shapes consistent with the module: input_c=[10,10], dims[0]=32,
    # dim_weight=64, label_c=9; spatial 16x16 and T=3 instead of 128 / 23.
    B, T1, E1, H, W = 2, 3, 10, 16, 16
    x1 = jax.random.normal(k_x1, (B, T1, E1, H, W), jnp.float32)
    x2 = jax.random.normal(k_x2, (B, T1, E1, H, W), jnp.float32)

    params = make_params(k_p, input_c0=E1, leve_dims=(32, 64, 128),
                         label_c=9, dim_weight=64)

    out = jax.jit(optic_tst_forward)(params, x1, x2)
    out = jax.block_until_ready(out)
    assert out.shape == (B, 9, H, W), out.shape
    assert bool(jnp.all(jnp.isfinite(out)))

    # Correctness vs. a pure-JAX reference with the same bf16 rounding points.
    ref = reference_forward(params, x1)
    err = float(jnp.max(jnp.abs(out - ref)))
    scale = float(jnp.max(jnp.abs(ref)))
    assert err <= 1e-3 + 2e-2 * scale, (err, scale)
    print("KERNEL_OK")
</pallas_src>

<mosaic_0001>
module attributes {stable_mosaic.version = 11 : i64} {
  func.func @_optic_fused_kernel(%arg0: i32, %arg1: memref<1x3x16x256xbf16, #tpu.memory_space<vmem>>, %arg2: memref<16x144xbf16, #tpu.memory_space<vmem>>, %arg3: memref<16x1xf32, #tpu.memory_space<vmem>>, %arg4: memref<32x144xbf16, #tpu.memory_space<vmem>>, %arg5: memref<32x1xf32, #tpu.memory_space<vmem>>, %arg6: memref<64x288xbf16, #tpu.memory_space<vmem>>, %arg7: memref<64x1xf32, #tpu.memory_space<vmem>>, %arg8: memref<9x576xbf16, #tpu.memory_space<vmem>>, %arg9: memref<9x1xf32, #tpu.memory_space<vmem>>, %arg10: memref<1x9x256xf32, #tpu.memory_space<vmem>>, %arg11: memref<64x512xbf16, #tpu.memory_space<vmem>>) attributes {dimension_semantics = [#tpu.dimension_semantics<parallel>], iteration_bounds = array<i64: 2>, scalar_prefetch = 0 : i64, scratch_operands = 1 : i64, tpu.core_type = #tpu.core_type<tc>, window_params = [{transform_indices = @transform_0, window_bounds = array<i64: 1, 3, 16, 256>}, {pipeline_mode = #tpu.pipeline_mode<synchronous>, transform_indices = @transform_1, window_bounds = array<i64: 16, 144>}, {pipeline_mode = #tpu.pipeline_mode<synchronous>, transform_indices = @transform_2, window_bounds = array<i64: 16, 1>}, {pipeline_mode = #tpu.pipeline_mode<synchronous>, transform_indices = @transform_3, window_bounds = array<i64: 32, 144>}, {pipeline_mode = #tpu.pipeline_mode<synchronous>, transform_indices = @transform_4, window_bounds = array<i64: 32, 1>}, {pipeline_mode = #tpu.pipeline_mode<synchronous>, transform_indices = @transform_5, window_bounds = array<i64: 64, 288>}, {pipeline_mode = #tpu.pipeline_mode<synchronous>, transform_indices = @transform_6, window_bounds = array<i64: 64, 1>}, {pipeline_mode = #tpu.pipeline_mode<synchronous>, transform_indices = @transform_7, window_bounds = array<i64: 9, 576>}, {pipeline_mode = #tpu.pipeline_mode<synchronous>, transform_indices = @transform_8, window_bounds = array<i64: 9, 1>}, {transform_indices = @transform_9, window_bounds = array<i64: 1, 9, 256>}]} {
    %0 = tpu.iota {dimensions = array<i32: 1>} : vector<1x256xi32>
    %c16_i32 = arith.constant 16 : i32
    %c0_i32 = arith.constant 0 : i32
    %1 = arith.cmpi eq, %c16_i32, %c0_i32 : i32
    %c1_i32 = arith.constant 1 : i32
    %2 = arith.select %1, %c1_i32, %c16_i32 : i32
    %3 = vector.broadcast %2 : i32 to vector<1x256xi32>
    %4 = arith.remsi %0, %3 : vector<1x256xi32>
    %c0_i32_0 = arith.constant 0 : i32
    %5 = vector.broadcast %c0_i32_0 : i32 to vector<1x256xi32>
    %6 = arith.cmpi ne, %4, %5 : vector<1x256xi32>
    %c0_i32_1 = arith.constant 0 : i32
    %7 = vector.broadcast %c0_i32_1 : i32 to vector<1x256xi32>
    %8 = arith.cmpi slt, %4, %7 : vector<1x256xi32>
    %c0_i32_2 = arith.constant 0 : i32
    %9 = arith.cmpi slt, %2, %c0_i32_2 : i32
    %10 = vector.broadcast %9 : i1 to vector<1x256xi1>
    %11 = vector.broadcast %10 : vector<1x256xi1> to vector<1x256xi1>
    %12 = arith.xori %8, %11 : vector<1x256xi1>
    %13 = arith.andi %12, %6 : vector<1x256xi1>
    %14 = vector.broadcast %2 : i32 to vector<1x256xi32>
    %15 = arith.addi %4, %14 : vector<1x256xi32>
    %16 = arith.select %13, %15, %4 : vector<1x256xi1>, vector<1x256xi32>
    %c0_i32_3 = arith.constant 0 : i32
    %17 = vector.broadcast %c0_i32_3 : i32 to vector<1x256xi32>
    %18 = arith.cmpi ne, %16, %17 : vector<1x256xi32>
    %c15_i32 = arith.constant 15 : i32
    %19 = vector.broadcast %c15_i32 : i32 to vector<1x256xi32>
    %20 = arith.cmpi ne, %16, %19 : vector<1x256xi32>
    %cst = arith.constant 0.000000e+00 : bf16
    %21 = vector.broadcast %cst : bf16 to vector<64x512xbf16>
    %c0 = arith.constant 0 : index
    %c0_4 = arith.constant 0 : index
    %22 = vector.load %arg11[%c0, %c0_4] : memref<64x512xbf16, #tpu.memory_space<vmem>>, vector<64x512xbf16>
    tpu.vector_store %arg11[%c0, %c0_4], %21 {strides = array<i32>} : memref<64x512xbf16, #tpu.memory_space<vmem>>, vector<64x512xbf16>,
    %c0_5 = arith.constant 0 : index
    %c0_6 = arith.constant 0 : index
    %c0_7 = arith.constant 0 : index
    %c0_8 = arith.constant 0 : index
    %23 = vector.load %arg1[%c0_5, %c0_6, %c0_7, %c0_8] : memref<1x3x16x256xbf16, #tpu.memory_space<vmem>>, vector<1x1x16x256xbf16>
    %24 = vector.shape_cast %23 : vector<1x1x16x256xbf16> to vector<16x256xbf16>
    %c0_9 = arith.constant 0 : index
    %c128 = arith.constant 128 : index
    %25 = vector.load %arg11[%c0_9, %c128] : memref<64x512xbf16, #tpu.memory_space<vmem>>, vector<16x256xbf16>
    tpu.vector_store %arg11[%c0_9, %c128], %24 {strides = array<i32>} : memref<64x512xbf16, #tpu.memory_space<vmem>>, vector<16x256xbf16>,
    %c0_10 = arith.constant 0 : index
    %c111 = arith.constant 111 : index
    %26 = vector.load %arg11[%c0_10, %c111] : memref<64x512xbf16, #tpu.memory_space<vmem>>, vector<16x256xbf16>
    %cst_11 = arith.constant 0.000000e+00 : bf16
    %27 = vector.broadcast %cst_11 : bf16 to vector<16x256xbf16>
    %28 = vector.shape_cast %18 : vector<1x256xi1> to vector<1x256xi1>
    %29 = vector.broadcast %28 : vector<1x256xi1> to vector<16x256xi1>
    %30 = arith.select %29, %26, %27 : vector<16x256xi1>, vector<16x256xbf16>
    %c0_12 = arith.constant 0 : index
    %c112 = arith.constant 112 : index
    %31 = vector.load %arg11[%c0_12, %c112] : memref<64x512xbf16, #tpu.memory_space<vmem>>, vector<16x256xbf16>
    %c0_13 = arith.constant 0 : index
    %c113 = arith.constant 113 : index
    %32 = vector.load %arg11[%c0_13, %c113] : memref<64x512xbf16, #tpu.memory_space<vmem>>, vector<16x256xbf16>
    %cst_14 = arith.constant 0.000000e+00 : bf16
    %33 = vector.broadcast %cst_14 : bf16 to vector<16x256xbf16>
    %34 = vector.shape_cast %20 : vector<1x256xi1> to vector<1x256xi1>
    %35 = vector.broadcast %34 : vector<1x256xi1> to vector<16x256xi1>
    %36 = arith.select %35, %32, %33 : vector<16x256xi1>, vector<16x256xbf16>
    %c0_15 = arith.constant 0 : index
    %c127 = arith.constant 127 : index
    %37 = vector.load %arg11[%c0_15, %c127] : memref<64x512xbf16, #tpu.memory_space<vmem>>, vector<16x256xbf16>
    %cst_16 = arith.constant 0.000000e+00 : bf16
    %38 = vector.broadcast %cst_16 : bf16 to vector<16x256xbf16>
    %39 = vector.shape_cast %18 : vector<1x256xi1> to vector<1x256xi1>
    %40 = vector.broadcast %39 : vector<1x256xi1> to vector<16x256xi1>
    %41 = arith.select %40, %37, %38 : vector<16x256xi1>, vector<16x256xbf16>
    %c0_17 = arith.constant 0 : index
    %c128_18 = arith.constant 128 : index
    %42 = vector.load %arg11[%c0_17, %c128_18] : memref<64x512xbf16, #tpu.memory_space<vmem>>, vector<16x256xbf16>
    %c0_19 = arith.constant 0 : index
    %c129 = arith.constant 129 : index
    %43 = vector.load %arg11[%c0_19, %c129] : memref<64x512xbf16, #tpu.memory_space<vmem>>, vector<16x256xbf16>
    %cst_20 = arith.constant 0.000000e+00 : bf16
    %44 = vector.broadcast %cst_20 : bf16 to vector<16x256xbf16>
    %45 = vector.shape_cast %20 : vector<1x256xi1> to vector<1x256xi1>
    %46 = vector.broadcast %45 : vector<1x256xi1> to vector<16x256xi1>
    %47 = arith.select %46, %43, %44 : vector<16x256xi1>, vector<16x256xbf16>
    %c0_21 = arith.constant 0 : index
    %c143 = arith.constant 143 : index
    %48 = vector.load %arg11[%c0_21, %c143] : memref<64x512xbf16, #tpu.memory_space<vmem>>, vector<16x256xbf16>
    %cst_22 = arith.constant 0.000000e+00 : bf16
    %49 = vector.broadcast %cst_22 : bf16 to vector<16x256xbf16>
    %50 = vector.shape_cast %18 : vector<1x256xi1> to vector<1x256xi1>
    %51 = vector.broadcast %50 : vector<1x256xi1> to vector<16x256xi1>
    %52 = arith.select %51, %48, %49 : vector<16x256xi1>, vector<16x256xbf16>
    %c0_23 = arith.constant 0 : index
    %c144 = arith.constant 144 : index
    %53 = vector.load %arg11[%c0_23, %c144] : memref<64x512xbf16, #tpu.memory_space<vmem>>, vector<16x256xbf16>
    %c0_24 = arith.constant 0 : index
    %c145 = arith.constant 145 : index
    %54 = vector.load %arg11[%c0_24, %c145] : memref<64x512xbf16, #tpu.memory_space<vmem>>, vector<16x256xbf16>
    %cst_25 = arith.constant 0.000000e+00 : bf16
    %55 = vector.broadcast %cst_25 : bf16 to vector<16x256xbf16>
    %56 = vector.shape_cast %20 : vector<1x256xi1> to vector<1x256xi1>
    %57 = vector.broadcast %56 : vector<1x256xi1> to vector<16x256xi1>
    %58 = arith.select %57, %54, %55 : vector<16x256xi1>, vector<16x256xbf16>
    %59 = tpu.concatenate %30, %31, %36, %41, %42, %47, %52, %53, %58 in 0 : vector<16x256xbf16>, vector<16x256xbf16>, vector<16x256xbf16>, vector<16x256xbf16>, vector<16x256xbf16>, vector<16x256xbf16>, vector<16x256xbf16>, vector<16x256xbf16>, vector<16x256xbf16> -> vector<144x256xbf16>
    %c0_26 = arith.constant 0 : index
    %c0_27 = arith.constant 0 : index
    %60 = vector.load %arg2[%c0_26, %c0_27] : memref<16x144xbf16, #tpu.memory_space<vmem>>, vector<16x144xbf16>
    %cst_28 = arith.constant dense<0.000000e+00> : vector<16x256xf32>
    %61 = tpu.matmul %60, %59, %cst_28 {dimension_numbers = #tpu.dot_dimension_numbers<[1], [0], [0], [1], [0, 0, 1, 1], [], []>} : vector<16x144xbf16>, vector<144x256xbf16>, vector<16x256xf32> -> vector<16x256xf32>
    %c0_29 = arith.constant 0 : index
    %c0_30 = arith.constant 0 : index
    %62 = vector.load %arg3[%c0_29, %c0_30] : memref<16x1xf32, #tpu.memory_space<vmem>>, vector<16x1xf32>
    %63 = vector.broadcast %62 : vector<16x1xf32> to vector<16x256xf32>
    %64 = arith.addf %61, %63 : vector<16x256xf32>
    %cst_31 = arith.constant 0.000000e+00 : f32
    %65 = vector.broadcast %cst_31 : f32 to vector<16x256xf32>
    %66 = arith.maximumf %64, %65 : vector<16x256xf32>
    %67 = arith.truncf %66 : vector<16x256xf32> to vector<16x256xbf16>
    %c0_32 = arith.constant 0 : index
    %c128_33 = arith.constant 128 : index
    %68 = vector.load %arg11[%c0_32, %c128_33] : memref<64x512xbf16, #tpu.memory_space<vmem>>, vector<16x256xbf16>
    tpu.vector_store %arg11[%c0_32, %c128_33], %67 {strides = array<i32>} : memref<64x512xbf16, #tpu.memory_space<vmem>>, vector<16x256xbf16>,
    %c0_34 = arith.constant 0 : index
    %c111_35 = arith.constant 111 : index
    %69 = vector.load %arg11[%c0_34, %c111_35] : memref<64x512xbf16, #tpu.memory_space<vmem>>, vector<16x256xbf16>
    %cst_36 = arith.constant 0.000000e+00 : bf16
    %70 = vector.broadcast %cst_36 : bf16 to vector<16x256xbf16>
    %71 = vector.shape_cast %18 : vector<1x256xi1> to vector<1x256xi1>
    %72 = vector.broadcast %71 : vector<1x256xi1> to vector<16x256xi1>
    %73 = arith.select %72, %69, %70 : vector<16x256xi1>, vector<16x256xbf16>
    %c0_37 = arith.constant 0 : index
    %c112_38 = arith.constant 112 : index
    %74 = vector.load %arg11[%c0_37, %c112_38] : memref<64x512xbf16, #tpu.memory_space<vmem>>, vector<16x256xbf16>
    %c0_39 = arith.constant 0 : index
    %c113_40 = arith.constant 113 : index
    %75 = vector.load %arg11[%c0_39, %c113_40] : memref<64x512xbf16, #tpu.memory_space<vmem>>, vector<16x256xbf16>
    %cst_41 = arith.constant 0.000000e+00 : bf16
    %76 = vector.broadcast %cst_41 : bf16 to vector<16x256xbf16>
    %77 = vector.shape_cast %20 : vector<1x256xi1> to vector<1x256xi1>
    %78 = vector.broadcast %77 : vector<1x256xi1> to vector<16x256xi1>
    %79 = arith.select %78, %75, %76 : vector<16x256xi1>, vector<16x256xbf16>
    %c0_42 = arith.constant 0 : index
    %c127_43 = arith.constant 127 : index
    %80 = vector.load %arg11[%c0_42, %c127_43] : memref<64x512xbf16, #tpu.memory_space<vmem>>, vector<16x256xbf16>
    %cst_44 = arith.constant 0.000000e+00 : bf16
    %81 = vector.broadcast %cst_44 : bf16 to vector<16x256xbf16>
    %82 = vector.shape_cast %18 : vector<1x256xi1> to vector<1x256xi1>
    %83 = vector.broadcast %82 : vector<1x256xi1> to vector<16x256xi1>
    %84 = arith.select %83, %80, %81 : vector<16x256xi1>, vector<16x256xbf16>
    %c0_45 = arith.constant 0 : index
    %c128_46 = arith.constant 128 : index
    %85 = vector.load %arg11[%c0_45, %c128_46] : memref<64x512xbf16, #tpu.memory_space<vmem>>, vector<16x256xbf16>
    %c0_47 = arith.constant 0 : index
    %c129_48 = arith.constant 129 : index
    %86 = vector.load %arg11[%c0_47, %c129_48] : memref<64x512xbf16, #tpu.memory_space<vmem>>, vector<16x256xbf16>
    %cst_49 = arith.constant 0.000000e+00 : bf16
    %87 = vector.broadcast %cst_49 : bf16 to vector<16x256xbf16>
    %88 = vector.shape_cast %20 : vector<1x256xi1> to vector<1x256xi1>
    %89 = vector.broadcast %88 : vector<1x256xi1> to vector<16x256xi1>
    %90 = arith.select %89, %86, %87 : vector<16x256xi1>, vector<16x256xbf16>
    %c0_50 = arith.constant 0 : index
    %c143_51 = arith.constant 143 : index
    %91 = vector.load %arg11[%c0_50, %c143_51] : memref<64x512xbf16, #tpu.memory_space<vmem>>, vector<16x256xbf16>
    %cst_52 = arith.constant 0.000000e+00 : bf16
    %92 = vector.broadcast %cst_52 : bf16 to vector<16x256xbf16>
    %93 = vector.shape_cast %18 : vector<1x256xi1> to vector<1x256xi1>
    %94 = vector.broadcast %93 : vector<1x256xi1> to vector<16x256xi1>
    %95 = arith.select %94, %91, %92 : vector<16x256xi1>, vector<16x256xbf16>
    %c0_53 = arith.constant 0 : index
    %c144_54 = arith.constant 144 : index
    %96 = vector.load %arg11[%c0_53, %c144_54] : memref<64x512xbf16, #tpu.memory_space<vmem>>, vector<16x256xbf16>
    %c0_55 = arith.constant 0 : index
    %c145_56 = arith.constant 145 : index
    %97 = vector.load %arg11[%c0_55, %c145_56] : memref<64x512xbf16, #tpu.memory_space<vmem>>, vector<16x256xbf16>
    %cst_57 = arith.constant 0.000000e+00 : bf16
    %98 = vector.broadcast %cst_57 : bf16 to vector<16x256xbf16>
    %99 = vector.shape_cast %20 : vector<1x256xi1> to vector<1x256xi1>
    %100 = vector.broadcast %99 : vector<1x256xi1> to vector<16x256xi1>
    %101 = arith.select %100, %97, %98 : vector<16x256xi1>, vector<16x256xbf16>
    %102 = tpu.concatenate %73, %74, %79, %84, %85, %90, %95, %96, %101 in 0 : vector<16x256xbf16>, vector<16x256xbf16>, vector<16x256xbf16>, vector<16x256xbf16>, vector<16x256xbf16>, vector<16x256xbf16>, vector<16x256xbf16>, vector<16x256xbf16>, vector<16x256xbf16> -> vector<144x256xbf16>
    %c0_58 = arith.constant 0 : index
    %c0_59 = arith.constant 0 : index
    %103 = vector.load %arg4[%c0_58, %c0_59] : memref<32x144xbf16, #tpu.memory_space<vmem>>, vector<32x144xbf16>
    %cst_60 = arith.constant dense<0.000000e+00> : vector<32x256xf32>
    %104 = tpu.matmul %103, %102, %cst_60 {dimension_numbers = #tpu.dot_dimension_numbers<[1], [0], [0], [1], [0, 0, 1, 1], [], []>} : vector<32x144xbf16>, vector<144x256xbf16>, vector<32x256xf32> -> vector<32x256xf32>
    %c0_61 = arith.constant 0 : index
    %c0_62 = arith.constant 0 : index
    %105 = vector.load %arg5[%c0_61, %c0_62] : memref<32x1xf32, #tpu.memory_space<vmem>>, vector<32x1xf32>
    %106 = vector.broadcast %105 : vector<32x1xf32> to vector<32x256xf32>
    %107 = arith.addf %104, %106 : vector<32x256xf32>
    %cst_63 = arith.constant 0.000000e+00 : f32
    %108 = vector.broadcast %cst_63 : f32 to vector<32x256xf32>
    %109 = arith.maximumf %107, %108 : vector<32x256xf32>
    %c0_64 = arith.constant 0 : index
    %c1 = arith.constant 1 : index
    %c0_65 = arith.constant 0 : index
    %c0_66 = arith.constant 0 : index
    %110 = vector.load %arg1[%c0_64, %c1, %c0_65, %c0_66] : memref<1x3x16x256xbf16, #tpu.memory_space<vmem>>, vector<1x1x16x256xbf16>
    %111 = vector.shape_cast %110 : vector<1x1x16x256xbf16> to vector<16x256xbf16>
    %c0_67 = arith.constant 0 : index
    %c128_68 = arith.constant 128 : index
    %112 = vector.load %arg11[%c0_67, %c128_68] : memref<64x512xbf16, #tpu.memory_space<vmem>>, vector<16x256xbf16>
    tpu.vector_store %arg11[%c0_67, %c128_68], %111 {strides = array<i32>} : memref<64x512xbf16, #tpu.memory_space<vmem>>, vector<16x256xbf16>,
    %c0_69 = arith.constant 0 : index
    %c111_70 = arith.constant 111 : index
    %113 = vector.load %arg11[%c0_69, %c111_70] : memref<64x512xbf16, #tpu.memory_space<vmem>>, vector<16x256xbf16>
    %cst_71 = arith.constant 0.000000e+00 : bf16
    %114 = vector.broadcast %cst_71 : bf16 to vector<16x256xbf16>
    %115 = vector.shape_cast %18 : vector<1x256xi1> to vector<1x256xi1>
    %116 = vector.broadcast %115 : vector<1x256xi1> to vector<16x256xi1>
    %117 = arith.select %116, %113, %114 : vector<16x256xi1>, vector<16x256xbf16>
    %c0_72 = arith.constant 0 : index
    %c112_73 = arith.constant 112 : index
    %118 = vector.load %arg11[%c0_72, %c112_73] : memref<64x512xbf16, #tpu.memory_space<vmem>>, vector<16x256xbf16>
    %c0_74 = arith.constant 0 : index
    %c113_75 = arith.constant 113 : index
    %119 = vector.load %arg11[%c0_74, %c113_75] : memref<64x512xbf16, #tpu.memory_space<vmem>>, vector<16x256xbf16>
    %cst_76 = arith.constant 0.000000e+00 : bf16
    %120 = vector.broadcast %cst_76 : bf16 to vector<16x256xbf16>
    %121 = vector.shape_cast %20 : vector<1x256xi1> to vector<1x256xi1>
    %122 = vector.broadcast %121 : vector<1x256xi1> to vector<16x256xi1>
    %123 = arith.select %122, %119, %120 : vector<16x256xi1>, vector<16x256xbf16>
    %c0_77 = arith.constant 0 : index
    %c127_78 = arith.constant 127 : index
    %124 = vector.load %arg11[%c0_77, %c127_78] : memref<64x512xbf16, #tpu.memory_space<vmem>>, vector<16x256xbf16>
    %cst_79 = arith.constant 0.000000e+00 : bf16
    %125 = vector.broadcast %cst_79 : bf16 to vector<16x256xbf16>
    %126 = vector.shape_cast %18 : vector<1x256xi1> to vector<1x256xi1>
    %127 = vector.broadcast %126 : vector<1x256xi1> to vector<16x256xi1>
    %128 = arith.select %127, %124, %125 : vector<16x256xi1>, vector<16x256xbf16>
    %c0_80 = arith.constant 0 : index
    %c128_81 = arith.constant 128 : index
    %129 = vector.load %arg11[%c0_80, %c128_81] : memref<64x512xbf16, #tpu.memory_space<vmem>>, vector<16x256xbf16>
    %c0_82 = arith.constant 0 : index
    %c129_83 = arith.constant 129 : index
    %130 = vector.load %arg11[%c0_82, %c129_83] : memref<64x512xbf16, #tpu.memory_space<vmem>>, vector<16x256xbf16>
    %cst_84 = arith.constant 0.000000e+00 : bf16
    %131 = vector.broadcast %cst_84 : bf16 to vector<16x256xbf16>
    %132 = vector.shape_cast %20 : vector<1x256xi1> to vector<1x256xi1>
    %133 = vector.broadcast %132 : vector<1x256xi1> to vector<16x256xi1>
    %134 = arith.select %133, %130, %131 : vector<16x256xi1>, vector<16x256xbf16>
    %c0_85 = arith.constant 0 : index
    %c143_86 = arith.constant 143 : index
    %135 = vector.load %arg11[%c0_85, %c143_86] : memref<64x512xbf16, #tpu.memory_space<vmem>>, vector<16x256xbf16>
    %cst_87 = arith.constant 0.000000e+00 : bf16
    %136 = vector.broadcast %cst_87 : bf16 to vector<16x256xbf16>
    %137 = vector.shape_cast %18 : vector<1x256xi1> to vector<1x256xi1>
    %138 = vector.broadcast %137 : vector<1x256xi1> to vector<16x256xi1>
    %139 = arith.select %138, %135, %136 : vector<16x256xi1>, vector<16x256xbf16>
    %c0_88 = arith.constant 0 : index
    %c144_89 = arith.constant 144 : index
    %140 = vector.load %arg11[%c0_88, %c144_89] : memref<64x512xbf16, #tpu.memory_space<vmem>>, vector<16x256xbf16>
    %c0_90 = arith.constant 0 : index
    %c145_91 = arith.constant 145 : index
    %141 = vector.load %arg11[%c0_90, %c145_91] : memref<64x512xbf16, #tpu.memory_space<vmem>>, vector<16x256xbf16>
    %cst_92 = arith.constant 0.000000e+00 : bf16
    %142 = vector.broadcast %cst_92 : bf16 to vector<16x256xbf16>
    %143 = vector.shape_cast %20 : vector<1x256xi1> to vector<1x256xi1>
    %144 = vector.broadcast %143 : vector<1x256xi1> to vector<16x256xi1>
    %145 = arith.select %144, %141, %142 : vector<16x256xi1>, vector<16x256xbf16>
    %146 = tpu.concatenate %117, %118, %123, %128, %129, %134, %139, %140, %145 in 0 : vector<16x256xbf16>, vector<16x256xbf16>, vector<16x256xbf16>, vector<16x256xbf16>, vector<16x256xbf16>, vector<16x256xbf16>, vector<16x256xbf16>, vector<16x256xbf16>, vector<16x256xbf16> -> vector<144x256xbf16>
    %c0_93 = arith.constant 0 : index
    %c0_94 = arith.constant 0 : index
    %147 = vector.load %arg2[%c0_93, %c0_94] : memref<16x144xbf16, #tpu.memory_space<vmem>>, vector<16x144xbf16>
    %cst_95 = arith.constant dense<0.000000e+00> : vector<16x256xf32>
    %148 = tpu.matmul %147, %146, %cst_95 {dimension_numbers = #tpu.dot_dimension_numbers<[1], [0], [0], [1], [0, 0, 1, 1], [], []>} : vector<16x144xbf16>, vector<144x256xbf16>, vector<16x256xf32> -> vector<16x256xf32>
    %c0_96 = arith.constant 0 : index
    %c0_97 = arith.constant 0 : index
    %149 = vector.load %arg3[%c0_96, %c0_97] : memref<16x1xf32, #tpu.memory_space<vmem>>, vector<16x1xf32>
    %150 = vector.broadcast %149 : vector<16x1xf32> to vector<16x256xf32>
    %151 = arith.addf %148, %150 : vector<16x256xf32>
    %cst_98 = arith.constant 0.000000e+00 : f32
    %152 = vector.broadcast %cst_98 : f32 to vector<16x256xf32>
    %153 = arith.maximumf %151, %152 : vector<16x256xf32>
    %154 = arith.truncf %153 : vector<16x256xf32> to vector<16x256xbf16>
    %c0_99 = arith.constant 0 : index
    %c128_100 = arith.constant 128 : index
    %155 = vector.load %arg11[%c0_99, %c128_100] : memref<64x512xbf16, #tpu.memory_space<vmem>>, vector<16x256xbf16>
    tpu.vector_store %arg11[%c0_99, %c128_100], %154 {strides = array<i32>} : memref<64x512xbf16, #tpu.memory_space<vmem>>, vector<16x256xbf16>,
    %c0_101 = arith.constant 0 : index
    %c111_102 = arith.constant 111 : index
    %156 = vector.load %arg11[%c0_101, %c111_102] : memref<64x512xbf16, #tpu.memory_space<vmem>>, vector<16x256xbf16>
    %cst_103 = arith.constant 0.000000e+00 : bf16
    %157 = vector.broadcast %cst_103 : bf16 to vector<16x256xbf16>
    %158 = vector.shape_cast %18 : vector<1x256xi1> to vector<1x256xi1>
    %159 = vector.broadcast %158 : vector<1x256xi1> to vector<16x256xi1>
    %160 = arith.select %159, %156, %157 : vector<16x256xi1>, vector<16x256xbf16>
    %c0_104 = arith.constant 0 : index
    %c112_105 = arith.constant 112 : index
    %161 = vector.load %arg11[%c0_104, %c112_105] : memref<64x512xbf16, #tpu.memory_space<vmem>>, vector<16x256xbf16>
    %c0_106 = arith.constant 0 : index
    %c113_107 = arith.constant 113 : index
    %162 = vector.load %arg11[%c0_106, %c113_107] : memref<64x512xbf16, #tpu.memory_space<vmem>>, vector<16x256xbf16>
    %cst_108 = arith.constant 0.000000e+00 : bf16
    %163 = vector.broadcast %cst_108 : bf16 to vector<16x256xbf16>
    %164 = vector.shape_cast %20 : vector<1x256xi1> to vector<1x256xi1>
    %165 = vector.broadcast %164 : vector<1x256xi1> to vector<16x256xi1>
    %166 = arith.select %165, %162, %163 : vector<16x256xi1>, vector<16x256xbf16>
    %c0_109 = arith.constant 0 : index
    %c127_110 = arith.constant 127 : index
    %167 = vector.load %arg11[%c0_109, %c127_110] : memref<64x512xbf16, #tpu.memory_space<vmem>>, vector<16x256xbf16>
    %cst_111 = arith.constant 0.000000e+00 : bf16
    %168 = vector.broadcast %cst_111 : bf16 to vector<16x256xbf16>
    %169 = vector.shape_cast %18 : vector<1x256xi1> to vector<1x256xi1>
    %170 = vector.broadcast %169 : vector<1x256xi1> to vector<16x256xi1>
    %171 = arith.select %170, %167, %168 : vector<16x256xi1>, vector<16x256xbf16>
    %c0_112 = arith.constant 0 : index
    %c128_113 = arith.constant 128 : index
    %172 = vector.load %arg11[%c0_112, %c128_113] : memref<64x512xbf16, #tpu.memory_space<vmem>>, vector<16x256xbf16>
    %c0_114 = arith.constant 0 : index
    %c129_115 = arith.constant 129 : index
    %173 = vector.load %arg11[%c0_114, %c129_115] : memref<64x512xbf16, #tpu.memory_space<vmem>>, vector<16x256xbf16>
    %cst_116 = arith.constant 0.000000e+00 : bf16
    %174 = vector.broadcast %cst_116 : bf16 to vector<16x256xbf16>
    %175 = vector.shape_cast %20 : vector<1x256xi1> to vector<1x256xi1>
    %176 = vector.broadcast %175 : vector<1x256xi1> to vector<16x256xi1>
    %177 = arith.select %176, %173, %174 : vector<16x256xi1>, vector<16x256xbf16>
    %c0_117 = arith.constant 0 : index
    %c143_118 = arith.constant 143 : index
    %178 = vector.load %arg11[%c0_117, %c143_118] : memref<64x512xbf16, #tpu.memory_space<vmem>>, vector<16x256xbf16>
    %cst_119 = arith.constant 0.000000e+00 : bf16
    %179 = vector.broadcast %cst_119 : bf16 to vector<16x256xbf16>
    %180 = vector.shape_cast %18 : vector<1x256xi1> to vector<1x256xi1>
    %181 = vector.broadcast %180 : vector<1x256xi1> to vector<16x256xi1>
    %182 = arith.select %181, %178, %179 : vector<16x256xi1>, vector<16x256xbf16>
    %c0_120 = arith.constant 0 : index
    %c144_121 = arith.constant 144 : index
    %183 = vector.load %arg11[%c0_120, %c144_121] : memref<64x512xbf16, #tpu.memory_space<vmem>>, vector<16x256xbf16>
    %c0_122 = arith.constant 0 : index
    %c145_123 = arith.constant 145 : index
    %184 = vector.load %arg11[%c0_122, %c145_123] : memref<64x512xbf16, #tpu.memory_space<vmem>>, vector<16x256xbf16>
    %cst_124 = arith.constant 0.000000e+00 : bf16
    %185 = vector.broadcast %cst_124 : bf16 to vector<16x256xbf16>
    %186 = vector.shape_cast %20 : vector<1x256xi1> to vector<1x256xi1>
    %187 = vector.broadcast %186 : vector<1x256xi1> to vector<16x256xi1>
    %188 = arith.select %187, %184, %185 : vector<16x256xi1>, vector<16x256xbf16>
    %189 = tpu.concatenate %160, %161, %166, %171, %172, %177, %182, %183, %188 in 0 : vector<16x256xbf16>, vector<16x256xbf16>, vector<16x256xbf16>, vector<16x256xbf16>, vector<16x256xbf16>, vector<16x256xbf16>, vector<16x256xbf16>, vector<16x256xbf16>, vector<16x256xbf16> -> vector<144x256xbf16>
    %c0_125 = arith.constant 0 : index
    %c0_126 = arith.constant 0 : index
    %190 = vector.load %arg4[%c0_125, %c0_126] : memref<32x144xbf16, #tpu.memory_space<vmem>>, vector<32x144xbf16>
    %cst_127 = arith.constant dense<0.000000e+00> : vector<32x256xf32>
    %191 = tpu.matmul %190, %189, %cst_127 {dimension_numbers = #tpu.dot_dimension_numbers<[1], [0], [0], [1], [0, 0, 1, 1], [], []>} : vector<32x144xbf16>, vector<144x256xbf16>, vector<32x256xf32> -> vector<32x256xf32>
    %c0_128 = arith.constant 0 : index
    %c0_129 = arith.constant 0 : index
    %192 = vector.load %arg5[%c0_128, %c0_129] : memref<32x1xf32, #tpu.memory_space<vmem>>, vector<32x1xf32>
    %193 = vector.broadcast %192 : vector<32x1xf32> to vector<32x256xf32>
    %194 = arith.addf %191, %193 : vector<32x256xf32>
    %cst_130 = arith.constant 0.000000e+00 : f32
    %195 = vector.broadcast %cst_130 : f32 to vector<32x256xf32>
    %196 = arith.maximumf %194, %195 : vector<32x256xf32>
    %197 = arith.addf %109, %196 : vector<32x256xf32>
    %c0_131 = arith.constant 0 : index
    %c2 = arith.constant 2 : index
    %c0_132 = arith.constant 0 : index
    %c0_133 = arith.constant 0 : index
    %198 = vector.load %arg1[%c0_131, %c2, %c0_132, %c0_133] : memref<1x3x16x256xbf16, #tpu.memory_space<vmem>>, vector<1x1x16x256xbf16>
    %199 = vector.shape_cast %198 : vector<1x1x16x256xbf16> to vector<16x256xbf16>
    %c0_134 = arith.constant 0 : index
    %c128_135 = arith.constant 128 : index
    %200 = vector.load %arg11[%c0_134, %c128_135] : memref<64x512xbf16, #tpu.memory_space<vmem>>, vector<16x256xbf16>
    tpu.vector_store %arg11[%c0_134, %c128_135], %199 {strides = array<i32>} : memref<64x512xbf16, #tpu.memory_space<vmem>>, vector<16x256xbf16>,
    %c0_136 = arith.constant 0 : index
    %c111_137 = arith.constant 111 : index
    %201 = vector.load %arg11[%c0_136, %c111_137] : memref<64x512xbf16, #tpu.memory_space<vmem>>, vector<16x256xbf16>
    %cst_138 = arith.constant 0.000000e+00 : bf16
    %202 = vector.broadcast %cst_138 : bf16 to vector<16x256xbf16>
    %203 = vector.shape_cast %18 : vector<1x256xi1> to vector<1x256xi1>
    %204 = vector.broadcast %203 : vector<1x256xi1> to vector<16x256xi1>
    %205 = arith.select %204, %201, %202 : vector<16x256xi1>, vector<16x256xbf16>
    %c0_139 = arith.constant 0 : index
    %c112_140 = arith.constant 112 : index
    %206 = vector.load %arg11[%c0_139, %c112_140] : memref<64x512xbf16, #tpu.memory_space<vmem>>, vector<16x256xbf16>
    %c0_141 = arith.constant 0 : index
    %c113_142 = arith.constant 113 : index
    %207 = vector.load %arg11[%c0_141, %c113_142] : memref<64x512xbf16, #tpu.memory_space<vmem>>, vector<16x256xbf16>
    %cst_143 = arith.constant 0.000000e+00 : bf16
    %208 = vector.broadcast %cst_143 : bf16 to vector<16x256xbf16>
    %209 = vector.shape_cast %20 : vector<1x256xi1> to vector<1x256xi1>
    %210 = vector.broadcast %209 : vector<1x256xi1> to vector<16x256xi1>
    %211 = arith.select %210, %207, %208 : vector<16x256xi1>, vector<16x256xbf16>
    %c0_144 = arith.constant 0 : index
    %c127_145 = arith.constant 127 : index
    %212 = vector.load %arg11[%c0_144, %c127_145] : memref<64x512xbf16, #tpu.memory_space<vmem>>, vector<16x256xbf16>
    %cst_146 = arith.constant 0.000000e+00 : bf16
    %213 = vector.broadcast %cst_146 : bf16 to vector<16x256xbf16>
    %214 = vector.shape_cast %18 : vector<1x256xi1> to vector<1x256xi1>
    %215 = vector.broadcast %214 : vector<1x256xi1> to vector<16x256xi1>
    %216 = arith.select %215, %212, %213 : vector<16x256xi1>, vector<16x256xbf16>
    %c0_147 = arith.constant 0 : index
    %c128_148 = arith.constant 128 : index
    %217 = vector.load %arg11[%c0_147, %c128_148] : memref<64x512xbf16, #tpu.memory_space<vmem>>, vector<16x256xbf16>
    %c0_149 = arith.constant 0 : index
    %c129_150 = arith.constant 129 : index
    %218 = vector.load %arg11[%c0_149, %c129_150] : memref<64x512xbf16, #tpu.memory_space<vmem>>, vector<16x256xbf16>
    %cst_151 = arith.constant 0.000000e+00 : bf16
    %219 = vector.broadcast %cst_151 : bf16 to vector<16x256xbf16>
    %220 = vector.shape_cast %20 : vector<1x256xi1> to vector<1x256xi1>
    %221 = vector.broadcast %220 : vector<1x256xi1> to vector<16x256xi1>
    %222 = arith.select %221, %218, %219 : vector<16x256xi1>, vector<16x256xbf16>
    %c0_152 = arith.constant 0 : index
    %c143_153 = arith.constant 143 : index
    %223 = vector.load %arg11[%c0_152, %c143_153] : memref<64x512xbf16, #tpu.memory_space<vmem>>, vector<16x256xbf16>
    %cst_154 = arith.constant 0.000000e+00 : bf16
    %224 = vector.broadcast %cst_154 : bf16 to vector<16x256xbf16>
    %225 = vector.shape_cast %18 : vector<1x256xi1> to vector<1x256xi1>
    %226 = vector.broadcast %225 : vector<1x256xi1> to vector<16x256xi1>
    %227 = arith.select %226, %223, %224 : vector<16x256xi1>, vector<16x256xbf16>
    %c0_155 = arith.constant 0 : index
    %c144_156 = arith.constant 144 : index
    %228 = vector.load %arg11[%c0_155, %c144_156] : memref<64x512xbf16, #tpu.memory_space<vmem>>, vector<16x256xbf16>
    %c0_157 = arith.constant 0 : index
    %c145_158 = arith.constant 145 : index
    %229 = vector.load %arg11[%c0_157, %c145_158] : memref<64x512xbf16, #tpu.memory_space<vmem>>, vector<16x256xbf16>
    %cst_159 = arith.constant 0.000000e+00 : bf16
    %230 = vector.broadcast %cst_159 : bf16 to vector<16x256xbf16>
    %231 = vector.shape_cast %20 : vector<1x256xi1> to vector<1x256xi1>
    %232 = vector.broadcast %231 : vector<1x256xi1> to vector<16x256xi1>
    %233 = arith.select %232, %229, %230 : vector<16x256xi1>, vector<16x256xbf16>
    %234 = tpu.concatenate %205, %206, %211, %216, %217, %222, %227, %228, %233 in 0 : vector<16x256xbf16>, vector<16x256xbf16>, vector<16x256xbf16>, vector<16x256xbf16>, vector<16x256xbf16>, vector<16x256xbf16>, vector<16x256xbf16>, vector<16x256xbf16>, vector<16x256xbf16> -> vector<144x256xbf16>
    %c0_160 = arith.constant 0 : index
    %c0_161 = arith.constant 0 : index
    %235 = vector.load %arg2[%c0_160, %c0_161] : memref<16x144xbf16, #tpu.memory_space<vmem>>, vector<16x144xbf16>
    %cst_162 = arith.constant dense<0.000000e+00> : vector<16x256xf32>
    %236 = tpu.matmul %235, %234, %cst_162 {dimension_numbers = #tpu.dot_dimension_numbers<[1], [0], [0], [1], [0, 0, 1, 1], [], []>} : vector<16x144xbf16>, vector<144x256xbf16>, vector<16x256xf32> -> vector<16x256xf32>
    %c0_163 = arith.constant 0 : index
    %c0_164 = arith.constant 0 : index
    %237 = vector.load %arg3[%c0_163, %c0_164] : memref<16x1xf32, #tpu.memory_space<vmem>>, vector<16x1xf32>
    %238 = vector.broadcast %237 : vector<16x1xf32> to vector<16x256xf32>
    %239 = arith.addf %236, %238 : vector<16x256xf32>
    %cst_165 = arith.constant 0.000000e+00 : f32
    %240 = vector.broadcast %cst_165 : f32 to vector<16x256xf32>
    %241 = arith.maximumf %239, %240 : vector<16x256xf32>
    %242 = arith.truncf %241 : vector<16x256xf32> to vector<16x256xbf16>
    %c0_166 = arith.constant 0 : index
    %c128_167 = arith.constant 128 : index
    %243 = vector.load %arg11[%c0_166, %c128_167] : memref<64x512xbf16, #tpu.memory_space<vmem>>, vector<16x256xbf16>
    tpu.vector_store %arg11[%c0_166, %c128_167], %242 {strides = array<i32>} : memref<64x512xbf16, #tpu.memory_space<vmem>>, vector<16x256xbf16>,
    %c0_168 = arith.constant 0 : index
    %c111_169 = arith.constant 111 : index
    %244 = vector.load %arg11[%c0_168, %c111_169] : memref<64x512xbf16, #tpu.memory_space<vmem>>, vector<16x256xbf16>
    %cst_170 = arith.constant 0.000000e+00 : bf16
    %245 = vector.broadcast %cst_170 : bf16 to vector<16x256xbf16>
    %246 = vector.shape_cast %18 : vector<1x256xi1> to vector<1x256xi1>
    %247 = vector.broadcast %246 : vector<1x256xi1> to vector<16x256xi1>
    %248 = arith.select %247, %244, %245 : vector<16x256xi1>, vector<16x256xbf16>
    %c0_171 = arith.constant 0 : index
    %c112_172 = arith.constant 112 : index
    %249 = vector.load %arg11[%c0_171, %c112_172] : memref<64x512xbf16, #tpu.memory_space<vmem>>, vector<16x256xbf16>
    %c0_173 = arith.constant 0 : index
    %c113_174 = arith.constant 113 : index
    %250 = vector.load %arg11[%c0_173, %c113_174] : memref<64x512xbf16, #tpu.memory_space<vmem>>, vector<16x256xbf16>
    %cst_175 = arith.constant 0.000000e+00 : bf16
    %251 = vector.broadcast %cst_175 : bf16 to vector<16x256xbf16>
    %252 = vector.shape_cast %20 : vector<1x256xi1> to vector<1x256xi1>
    %253 = vector.broadcast %252 : vector<1x256xi1> to vector<16x256xi1>
    %254 = arith.select %253, %250, %251 : vector<16x256xi1>, vector<16x256xbf16>
    %c0_176 = arith.constant 0 : index
    %c127_177 = arith.constant 127 : index
    %255 = vector.load %arg11[%c0_176, %c127_177] : memref<64x512xbf16, #tpu.memory_space<vmem>>, vector<16x256xbf16>
    %cst_178 = arith.constant 0.000000e+00 : bf16
    %256 = vector.broadcast %cst_178 : bf16 to vector<16x256xbf16>
    %257 = vector.shape_cast %18 : vector<1x256xi1> to vector<1x256xi1>
    %258 = vector.broadcast %257 : vector<1x256xi1> to vector<16x256xi1>
    %259 = arith.select %258, %255, %256 : vector<16x256xi1>, vector<16x256xbf16>
    %c0_179 = arith.constant 0 : index
    %c128_180 = arith.constant 128 : index
    %260 = vector.load %arg11[%c0_179, %c128_180] : memref<64x512xbf16, #tpu.memory_space<vmem>>, vector<16x256xbf16>
    %c0_181 = arith.constant 0 : index
    %c129_182 = arith.constant 129 : index
    %261 = vector.load %arg11[%c0_181, %c129_182] : memref<64x512xbf16, #tpu.memory_space<vmem>>, vector<16x256xbf16>
    %cst_183 = arith.constant 0.000000e+00 : bf16
    %262 = vector.broadcast %cst_183 : bf16 to vector<16x256xbf16>
    %263 = vector.shape_cast %20 : vector<1x256xi1> to vector<1x256xi1>
    %264 = vector.broadcast %263 : vector<1x256xi1> to vector<16x256xi1>
    %265 = arith.select %264, %261, %262 : vector<16x256xi1>, vector<16x256xbf16>
    %c0_184 = arith.constant 0 : index
    %c143_185 = arith.constant 143 : index
    %266 = vector.load %arg11[%c0_184, %c143_185] : memref<64x512xbf16, #tpu.memory_space<vmem>>, vector<16x256xbf16>
    %cst_186 = arith.constant 0.000000e+00 : bf16
    %267 = vector.broadcast %cst_186 : bf16 to vector<16x256xbf16>
    %268 = vector.shape_cast %18 : vector<1x256xi1> to vector<1x256xi1>
    %269 = vector.broadcast %268 : vector<1x256xi1> to vector<16x256xi1>
    %270 = arith.select %269, %266, %267 : vector<16x256xi1>, vector<16x256xbf16>
    %c0_187 = arith.constant 0 : index
    %c144_188 = arith.constant 144 : index
    %271 = vector.load %arg11[%c0_187, %c144_188] : memref<64x512xbf16, #tpu.memory_space<vmem>>, vector<16x256xbf16>
    %c0_189 = arith.constant 0 : index
    %c145_190 = arith.constant 145 : index
    %272 = vector.load %arg11[%c0_189, %c145_190] : memref<64x512xbf16, #tpu.memory_space<vmem>>, vector<16x256xbf16>
    %cst_191 = arith.constant 0.000000e+00 : bf16
    %273 = vector.broadcast %cst_191 : bf16 to vector<16x256xbf16>
    %274 = vector.shape_cast %20 : vector<1x256xi1> to vector<1x256xi1>
    %275 = vector.broadcast %274 : vector<1x256xi1> to vector<16x256xi1>
    %276 = arith.select %275, %272, %273 : vector<16x256xi1>, vector<16x256xbf16>
    %277 = tpu.concatenate %248, %249, %254, %259, %260, %265, %270, %271, %276 in 0 : vector<16x256xbf16>, vector<16x256xbf16>, vector<16x256xbf16>, vector<16x256xbf16>, vector<16x256xbf16>, vector<16x256xbf16>, vector<16x256xbf16>, vector<16x256xbf16>, vector<16x256xbf16> -> vector<144x256xbf16>
    %c0_192 = arith.constant 0 : index
    %c0_193 = arith.constant 0 : index
    %278 = vector.load %arg4[%c0_192, %c0_193] : memref<32x144xbf16, #tpu.memory_space<vmem>>, vector<32x144xbf16>
    %cst_194 = arith.constant dense<0.000000e+00> : vector<32x256xf32>
    %279 = tpu.matmul %278, %277, %cst_194 {dimension_numbers = #tpu.dot_dimension_numbers<[1], [0], [0], [1], [0, 0, 1, 1], [], []>} : vector<32x144xbf16>, vector<144x256xbf16>, vector<32x256xf32> -> vector<32x256xf32>
    %c0_195 = arith.constant 0 : index
    %c0_196 = arith.constant 0 : index
    %280 = vector.load %arg5[%c0_195, %c0_196] : memref<32x1xf32, #tpu.memory_space<vmem>>, vector<32x1xf32>
    %281 = vector.broadcast %280 : vector<32x1xf32> to vector<32x256xf32>
    %282 = arith.addf %279, %281 : vector<32x256xf32>
    %cst_197 = arith.constant 0.000000e+00 : f32
    %283 = vector.broadcast %cst_197 : f32 to vector<32x256xf32>
    %284 = arith.maximumf %282, %283 : vector<32x256xf32>
    %285 = arith.addf %197, %284 : vector<32x256xf32>
    %cst_198 = arith.constant 0.333333343 : f32
    %286 = vector.broadcast %cst_198 : f32 to vector<32x256xf32>
    %287 = arith.mulf %285, %286 : vector<32x256xf32>
    %288 = arith.truncf %287 : vector<32x256xf32> to vector<32x256xbf16>
    %c0_199 = arith.constant 0 : index
    %c128_200 = arith.constant 128 : index
    %289 = vector.load %arg11[%c0_199, %c128_200] : memref<64x512xbf16, #tpu.memory_space<vmem>>, vector<32x256xbf16>
    tpu.vector_store %arg11[%c0_199, %c128_200], %288 {strides = array<i32>} : memref<64x512xbf16, #tpu.memory_space<vmem>>, vector<32x256xbf16>,
    %c0_201 = arith.constant 0 : index
    %c111_202 = arith.constant 111 : index
    %290 = vector.load %arg11[%c0_201, %c111_202] : memref<64x512xbf16, #tpu.memory_space<vmem>>, vector<32x256xbf16>
    %cst_203 = arith.constant 0.000000e+00 : bf16
    %291 = vector.broadcast %cst_203 : bf16 to vector<32x256xbf16>
    %292 = vector.shape_cast %18 : vector<1x256xi1> to vector<1x256xi1>
    %293 = vector.broadcast %292 : vector<1x256xi1> to vector<32x256xi1>
    %294 = arith.select %293, %290, %291 : vector<32x256xi1>, vector<32x256xbf16>
    %c0_204 = arith.constant 0 : index
    %c112_205 = arith.constant 112 : index
    %295 = vector.load %arg11[%c0_204, %c112_205] : memref<64x512xbf16, #tpu.memory_space<vmem>>, vector<32x256xbf16>
    %c0_206 = arith.constant 0 : index
    %c113_207 = arith.constant 113 : index
    %296 = vector.load %arg11[%c0_206, %c113_207] : memref<64x512xbf16, #tpu.memory_space<vmem>>, vector<32x256xbf16>
    %cst_208 = arith.constant 0.000000e+00 : bf16
    %297 = vector.broadcast %cst_208 : bf16 to vector<32x256xbf16>
    %298 = vector.shape_cast %20 : vector<1x256xi1> to vector<1x256xi1>
    %299 = vector.broadcast %298 : vector<1x256xi1> to vector<32x256xi1>
    %300 = arith.select %299, %296, %297 : vector<32x256xi1>, vector<32x256xbf16>
    %c0_209 = arith.constant 0 : index
    %c127_210 = arith.constant 127 : index
    %301 = vector.load %arg11[%c0_209, %c127_210] : memref<64x512xbf16, #tpu.memory_space<vmem>>, vector<32x256xbf16>
    %cst_211 = arith.constant 0.000000e+00 : bf16
    %302 = vector.broadcast %cst_211 : bf16 to vector<32x256xbf16>
    %303 = vector.shape_cast %18 : vector<1x256xi1> to vector<1x256xi1>
    %304 = vector.broadcast %303 : vector<1x256xi1> to vector<32x256xi1>
    %305 = arith.select %304, %301, %302 : vector<32x256xi1>, vector<32x256xbf16>
    %c0_212 = arith.constant 0 : index
    %c128_213 = arith.constant 128 : index
    %306 = vector.load %arg11[%c0_212, %c128_213] : memref<64x512xbf16, #tpu.memory_space<vmem>>, vector<32x256xbf16>
    %c0_214 = arith.constant 0 : index
    %c129_215 = arith.constant 129 : index
    %307 = vector.load %arg11[%c0_214, %c129_215] : memref<64x512xbf16, #tpu.memory_space<vmem>>, vector<32x256xbf16>
    %cst_216 = arith.constant 0.000000e+00 : bf16
    %308 = vector.broadcast %cst_216 : bf16 to vector<32x256xbf16>
    %309 = vector.shape_cast %20 : vector<1x256xi1> to vector<1x256xi1>
    %310 = vector.broadcast %309 : vector<1x256xi1> to vector<32x256xi1>
    %311 = arith.select %310, %307, %308 : vector<32x256xi1>, vector<32x256xbf16>
    %c0_217 = arith.constant 0 : index
    %c143_218 = arith.constant 143 : index
    %312 = vector.load %arg11[%c0_217, %c143_218] : memref<64x512xbf16, #tpu.memory_space<vmem>>, vector<32x256xbf16>
    %cst_219 = arith.constant 0.000000e+00 : bf16
    %313 = vector.broadcast %cst_219 : bf16 to vector<32x256xbf16>
    %314 = vector.shape_cast %18 : vector<1x256xi1> to vector<1x256xi1>
    %315 = vector.broadcast %314 : vector<1x256xi1> to vector<32x256xi1>
    %316 = arith.select %315, %312, %313 : vector<32x256xi1>, vector<32x256xbf16>
    %c0_220 = arith.constant 0 : index
    %c144_221 = arith.constant 144 : index
    %317 = vector.load %arg11[%c0_220, %c144_221] : memref<64x512xbf16, #tpu.memory_space<vmem>>, vector<32x256xbf16>
    %c0_222 = arith.constant 0 : index
    %c145_223 = arith.constant 145 : index
    %318 = vector.load %arg11[%c0_222, %c145_223] : memref<64x512xbf16, #tpu.memory_space<vmem>>, vector<32x256xbf16>
    %cst_224 = arith.constant 0.000000e+00 : bf16
    %319 = vector.broadcast %cst_224 : bf16 to vector<32x256xbf16>
    %320 = vector.shape_cast %20 : vector<1x256xi1> to vector<1x256xi1>
    %321 = vector.broadcast %320 : vector<1x256xi1> to vector<32x256xi1>
    %322 = arith.select %321, %318, %319 : vector<32x256xi1>, vector<32x256xbf16>
    %323 = tpu.concatenate %294, %295, %300, %305, %306, %311, %316, %317, %322 in 0 : vector<32x256xbf16>, vector<32x256xbf16>, vector<32x256xbf16>, vector<32x256xbf16>, vector<32x256xbf16>, vector<32x256xbf16>, vector<32x256xbf16>, vector<32x256xbf16>, vector<32x256xbf16> -> vector<288x256xbf16>
    %c0_225 = arith.constant 0 : index
    %c0_226 = arith.constant 0 : index
    %324 = vector.load %arg6[%c0_225, %c0_226] : memref<64x288xbf16, #tpu.memory_space<vmem>>, vector<64x288xbf16>
    %cst_227 = arith.constant dense<0.000000e+00> : vector<64x256xf32>
    %325 = tpu.matmul %324, %323, %cst_227 {dimension_numbers = #tpu.dot_dimension_numbers<[1], [0], [0], [1], [0, 0, 1, 1], [], []>} : vector<64x288xbf16>, vector<288x256xbf16>, vector<64x256xf32> -> vector<64x256xf32>
    %c0_228 = arith.constant 0 : index
    %c0_229 = arith.constant 0 : index
    %326 = vector.load %arg7[%c0_228, %c0_229] : memref<64x1xf32, #tpu.memory_space<vmem>>, vector<64x1xf32>
    %327 = vector.broadcast %326 : vector<64x1xf32> to vector<64x256xf32>
    %328 = arith.addf %325, %327 : vector<64x256xf32>
    %cst_230 = arith.constant 0.000000e+00 : f32
    %329 = vector.broadcast %cst_230 : f32 to vector<64x256xf32>
    %330 = arith.maximumf %328, %329 : vector<64x256xf32>
    %331 = arith.truncf %330 : vector<64x256xf32> to vector<64x256xbf16>
    %c0_231 = arith.constant 0 : index
    %c128_232 = arith.constant 128 : index
    %332 = vector.load %arg11[%c0_231, %c128_232] : memref<64x512xbf16, #tpu.memory_space<vmem>>, vector<64x256xbf16>
    tpu.vector_store %arg11[%c0_231, %c128_232], %331 {strides = array<i32>} : memref<64x512xbf16, #tpu.memory_space<vmem>>, vector<64x256xbf16>,
    %c0_233 = arith.constant 0 : index
    %c111_234 = arith.constant 111 : index
    %333 = vector.load %arg11[%c0_233, %c111_234] : memref<64x512xbf16, #tpu.memory_space<vmem>>, vector<64x256xbf16>
    %cst_235 = arith.constant 0.000000e+00 : bf16
    %334 = vector.broadcast %cst_235 : bf16 to vector<64x256xbf16>
    %335 = vector.shape_cast %18 : vector<1x256xi1> to vector<1x256xi1>
    %336 = vector.broadcast %335 : vector<1x256xi1> to vector<64x256xi1>
    %337 = arith.select %336, %333, %334 : vector<64x256xi1>, vector<64x256xbf16>
    %c0_236 = arith.constant 0 : index
    %c112_237 = arith.constant 112 : index
    %338 = vector.load %arg11[%c0_236, %c112_237] : memref<64x512xbf16, #tpu.memory_space<vmem>>, vector<64x256xbf16>
    %c0_238 = arith.constant 0 : index
    %c113_239 = arith.constant 113 : index
    %339 = vector.load %arg11[%c0_238, %c113_239] : memref<64x512xbf16, #tpu.memory_space<vmem>>, vector<64x256xbf16>
    %cst_240 = arith.constant 0.000000e+00 : bf16
    %340 = vector.broadcast %cst_240 : bf16 to vector<64x256xbf16>
    %341 = vector.shape_cast %20 : vector<1x256xi1> to vector<1x256xi1>
    %342 = vector.broadcast %341 : vector<1x256xi1> to vector<64x256xi1>
    %343 = arith.select %342, %339, %340 : vector<64x256xi1>, vector<64x256xbf16>
    %c0_241 = arith.constant 0 : index
    %c127_242 = arith.constant 127 : index
    %344 = vector.load %arg11[%c0_241, %c127_242] : memref<64x512xbf16, #tpu.memory_space<vmem>>, vector<64x256xbf16>
    %cst_243 = arith.constant 0.000000e+00 : bf16
    %345 = vector.broadcast %cst_243 : bf16 to vector<64x256xbf16>
    %346 = vector.shape_cast %18 : vector<1x256xi1> to vector<1x256xi1>
    %347 = vector.broadcast %346 : vector<1x256xi1> to vector<64x256xi1>
    %348 = arith.select %347, %344, %345 : vector<64x256xi1>, vector<64x256xbf16>
    %c0_244 = arith.constant 0 : index
    %c128_245 = arith.constant 128 : index
    %349 = vector.load %arg11[%c0_244, %c128_245] : memref<64x512xbf16, #tpu.memory_space<vmem>>, vector<64x256xbf16>
    %c0_246 = arith.constant 0 : index
    %c129_247 = arith.constant 129 : index
    %350 = vector.load %arg11[%c0_246, %c129_247] : memref<64x512xbf16, #tpu.memory_space<vmem>>, vector<64x256xbf16>
    %cst_248 = arith.constant 0.000000e+00 : bf16
    %351 = vector.broadcast %cst_248 : bf16 to vector<64x256xbf16>
    %352 = vector.shape_cast %20 : vector<1x256xi1> to vector<1x256xi1>
    %353 = vector.broadcast %352 : vector<1x256xi1> to vector<64x256xi1>
    %354 = arith.select %353, %350, %351 : vector<64x256xi1>, vector<64x256xbf16>
    %c0_249 = arith.constant 0 : index
    %c143_250 = arith.constant 143 : index
    %355 = vector.load %arg11[%c0_249, %c143_250] : memref<64x512xbf16, #tpu.memory_space<vmem>>, vector<64x256xbf16>
    %cst_251 = arith.constant 0.000000e+00 : bf16
    %356 = vector.broadcast %cst_251 : bf16 to vector<64x256xbf16>
    %357 = vector.shape_cast %18 : vector<1x256xi1> to vector<1x256xi1>
    %358 = vector.broadcast %357 : vector<1x256xi1> to vector<64x256xi1>
    %359 = arith.select %358, %355, %356 : vector<64x256xi1>, vector<64x256xbf16>
    %c0_252 = arith.constant 0 : index
    %c144_253 = arith.constant 144 : index
    %360 = vector.load %arg11[%c0_252, %c144_253] : memref<64x512xbf16, #tpu.memory_space<vmem>>, vector<64x256xbf16>
    %c0_254 = arith.constant 0 : index
    %c145_255 = arith.constant 145 : index
    %361 = vector.load %arg11[%c0_254, %c145_255] : memref<64x512xbf16, #tpu.memory_space<vmem>>, vector<64x256xbf16>
    %cst_256 = arith.constant 0.000000e+00 : bf16
    %362 = vector.broadcast %cst_256 : bf16 to vector<64x256xbf16>
    %363 = vector.shape_cast %20 : vector<1x256xi1> to vector<1x256xi1>
    %364 = vector.broadcast %363 : vector<1x256xi1> to vector<64x256xi1>
    %365 = arith.select %364, %361, %362 : vector<64x256xi1>, vector<64x256xbf16>
    %366 = tpu.concatenate %337, %338, %343, %348, %349, %354, %359, %360, %365 in 0 : vector<64x256xbf16>, vector<64x256xbf16>, vector<64x256xbf16>, vector<64x256xbf16>, vector<64x256xbf16>, vector<64x256xbf16>, vector<64x256xbf16>, vector<64x256xbf16>, vector<64x256xbf16> -> vector<576x256xbf16>
    %c0_257 = arith.constant 0 : index
    %c0_258 = arith.constant 0 : index
    %367 = vector.load %arg8[%c0_257, %c0_258] : memref<9x576xbf16, #tpu.memory_space<vmem>>, vector<9x576xbf16>
    %cst_259 = arith.constant dense<0.000000e+00> : vector<9x256xf32>
    %368 = tpu.matmul %367, %366, %cst_259 {dimension_numbers = #tpu.dot_dimension_numbers<[1], [0], [0], [1], [0, 0, 1, 1], [], []>} : vector<9x576xbf16>, vector<576x256xbf16>, vector<9x256xf32> -> vector<9x256xf32>
    %c0_260 = arith.constant 0 : index
    %c0_261 = arith.constant 0 : index
    %369 = vector.load %arg9[%c0_260, %c0_261] : memref<9x1xf32, #tpu.memory_space<vmem>>, vector<9x1xf32>
    %370 = vector.broadcast %369 : vector<9x1xf32> to vector<9x256xf32>
    %371 = arith.addf %368, %370 : vector<9x256xf32>
    %c0_262 = arith.constant 0 : index
    %c0_263 = arith.constant 0 : index
    %c0_264 = arith.constant 0 : index
    %372 = vector.load %arg10[%c0_262, %c0_263, %c0_264] : memref<1x9x256xf32, #tpu.memory_space<vmem>>, vector<1x9x256xf32>
    %373 = vector.shape_cast %372 : vector<1x9x256xf32> to vector<9x256xf32>
    %374 = vector.shape_cast %371 : vector<9x256xf32> to vector<1x9x256xf32>
    tpu.vector_store %arg10[%c0_262, %c0_263, %c0_264], %374 {strides = array<i32>} : memref<1x9x256xf32, #tpu.memory_space<vmem>>, vector<1x9x256xf32>,
    return
  }
  func.func @transform_0(%arg0: i32) -> (i32, i32, i32, i32) {
    %c0_i32 = arith.constant 0 : i32
    %c0_i32_0 = arith.constant 0 : i32
    %c0_i32_1 = arith.constant 0 : i32
    %c0_i32_2 = arith.constant 0 : i32
    return %arg0, %c0_i32, %c0_i32_0, %c0_i32_1 : i32, i32, i32, i32
  }
  func.func @transform_1(%arg0: i32) -> (i32, i32) {
    %c0_i32 = arith.constant 0 : i32
    %c0_i32_0 = arith.constant 0 : i32
    %c0_i32_1 = arith.constant 0 : i32
    return %c0_i32, %c0_i32_0 : i32, i32
  }
  func.func @transform_2(%arg0: i32) -> (i32, i32) {
    %c0_i32 = arith.constant 0 : i32
    %c0_i32_0 = arith.constant 0 : i32
    %c0_i32_1 = arith.constant 0 : i32
    return %c0_i32, %c0_i32_0 : i32, i32
  }
  func.func @transform_3(%arg0: i32) -> (i32, i32) {
    %c0_i32 = arith.constant 0 : i32
    %c0_i32_0 = arith.constant 0 : i32
    %c0_i32_1 = arith.constant 0 : i32
    return %c0_i32, %c0_i32_0 : i32, i32
  }
  func.func @transform_4(%arg0: i32) -> (i32, i32) {
    %c0_i32 = arith.constant 0 : i32
    %c0_i32_0 = arith.constant 0 : i32
    %c0_i32_1 = arith.constant 0 : i32
    return %c0_i32, %c0_i32_0 : i32, i32
  }
  func.func @transform_5(%arg0: i32) -> (i32, i32) {
    %c0_i32 = arith.constant 0 : i32
    %c0_i32_0 = arith.constant 0 : i32
    %c0_i32_1 = arith.constant 0 : i32
    return %c0_i32, %c0_i32_0 : i32, i32
  }
  func.func @transform_6(%arg0: i32) -> (i32, i32) {
    %c0_i32 = arith.constant 0 : i32
    %c0_i32_0 = arith.constant 0 : i32
    %c0_i32_1 = arith.constant 0 : i32
    return %c0_i32, %c0_i32_0 : i32, i32
  }
  func.func @transform_7(%arg0: i32) -> (i32, i32) {
    %c0_i32 = arith.constant 0 : i32
    %c0_i32_0 = arith.constant 0 : i32
    %c0_i32_1 = arith.constant 0 : i32
    return %c0_i32, %c0_i32_0 : i32, i32
  }
  func.func @transform_8(%arg0: i32) -> (i32, i32) {
    %c0_i32 = arith.constant 0 : i32
    %c0_i32_0 = arith.constant 0 : i32
    %c0_i32_1 = arith.constant 0 : i32
    return %c0_i32, %c0_i32_0 : i32, i32
  }
  func.func @transform_9(%arg0: i32) -> (i32, i32, i32) {
    %c0_i32 = arith.constant 0 : i32
    %c0_i32_0 = arith.constant 0 : i32
    %c0_i32_1 = arith.constant 0 : i32
    return %arg0, %c0_i32, %c0_i32_0 : i32, i32, i32
  }
}

</mosaic_0001>

<bundles_post_ra>
// kernel: optic_tst_forward.1
= control target key start
LH: loop header
LB: loop body
LE: loop exit
PB: predicated region body
PF: predicated region fallthrough
CT: control target
= control target key end

     0   :  { %s4474_s30 = smov 0   ;;  %s6873_s0 = inlined_call_operand.vmem [shape: bf16[2,3,16,256], index: 0, kind: input, shape index: {}]   ;;  %s6874_s1 = inlined_call_operand.vmem [shape: bf16[16,144], index: 1, kind: input, shape index: {}]   ;;  %s6875_s2 = inlined_call_operand.vmem [shape: f32[16,1], index: 2, kind: input, shape index: {}]   ;;  %s6876_s3 = inlined_call_operand.vmem [shape: bf16[32,144], index: 3, kind: input, shape index: {}]   ;;  %s6877_s4 = inlined_call_operand.vmem [shape: f32[32,1], index: 4, kind: input, shape index: {}]   ;;  %s6878_s5 = inlined_call_operand.vmem [shape: bf16[64,288], index: 5, kind: input, shape index: {}]   ;;  %s6879_s6 = inlined_call_operand.vmem [shape: f32[64,1], index: 6, kind: input, shape index: {}]   ;;  %s6880_s7 = inlined_call_operand.vmem [shape: bf16[9,576], index: 7, kind: input, shape index: {}]   ;;  %s6881_s8 = inlined_call_operand.vmem [shape: f32[9,1], index: 8, kind: input, shape index: {}]   ;;  %s6882_s9 = inlined_call_operand.vmem [shape: f32[2,9,256], index: 9, kind: output, shape index: {}]  }
   0x1 LB: > { %s4024_s10 = sadd.s32 4294967295, %s4409_s30   ;;  %p4028_p0 = scmp.ge.s32.totalorder %s4409_s30, 1  ;;  %s4409_s30 = sphi %s4474_s30, %s19_s30  }
   0x2   : > { %p287_p1 = scmp.lt.s32.totalorder %s4409_s30, 3 }
   0x4   : > { %p288_p2 = pnand %p4028_p0, %p287_p1 }
   0x5   : > { %v336_v0 = vlaneseq (!%p288_p2)  ;;  %v4411_v1 = vmov (!%p288_p2), 0   ;;  %p323_p3 = scmp.lt.s32.totalorder (!%p288_p2), %s4024_s10, 1  ;;  %s4412_s15 = smov (!%p288_p2), 113   ;;  %vm418_vm6 = vcmask (!%p288_p2), 908288   ;;  %vm456_vm8 = vcmask (!%p288_p2), 1039360  }
   0x6   : > { %291 = sbr.rel (%p288_p2) target bundleno = 2571 (0xa0b), region = 56  ;;  %4201 = vset.pattern.permute.xlu1 (!%p288_p2), %v4411_v1  ;;  %4200 = vset.pattern.permute.xlu0 (!%p288_p2), %v4411_v1  ;;  %s4413_s16 = smov (!%p288_p2), 127   ;;  %vm444_vm11 = vcmask (!%p288_p2), 924672   ;;  %vm481_vm13 = vcmask (!%p288_p2), 121856  }
   0x7   : > { %v337_v2 = vand.u32 (!%p288_p2), 127, %v336_v0  ;;  %v407_v3 = vshrl.u32 (!%p288_p2), %v336_v0, 7  ;;  %s4414_s17 = smov (!%p288_p2), 1   ;;  %s4415_s18 = smov (!%p288_p2), 15  }
   0x8   : > { %s4416_s19 = smov (!%p288_p2), 17   ;;  %s4417_s20 = smov (!%p288_p2), 111  }
   0x9   : > { %v338_v4 = vadd.s32 (!%p288_p2), 128, %v337_v2  ;;  %v343_v5 = vand.u32 (!%p288_p2), 15, %v337_v2  ;;  %v408_v7 = vsub.s32 (!%p288_p2), 0, %v407_v3  ;;  %v412_v8 = vsub.s32 (!%p288_p2), 4, %v407_v3  ;;  %s4418_s21 = smov (!%p288_p2), 126   ;;  %s4419_s22 = smov (!%p288_p2), 112  }
   0xa   : > { %s4420_s23 = smov (!%p288_p2), 110   ;;  %s4421_s24 = smov (!%p288_p2), 96  }
   0xb   : > { %v350_v6 = vand.u32 (!%p288_p2), 15, %v338_v4  ;;  %vm365_vm0 = vcmp.ne.s32.totalorder (!%p288_p2), %v343_v5, 15  ;;  %vm363_vm1 = vcmp.ne.s32.totalorder (!%p288_p2), %v343_v5, 0  ;;  %s4422_s25 = smov (!%p288_p2), 95   ;;  %s4423_s26 = smov (!%p288_p2), 94  }
   0xd   : > { %s7004_s10 = smov (!%p323_p3, %s4024_s10), 1  ;;  %vm366_vm2 = vcmp.ne.s32.totalorder %v350_v6, 15  ;;  %vm364_vm3 = vcmp.ne.s32.totalorder %v350_v6, 0 }
   0xe   : > { %s4138_s11 = smul.u32 48, %s7004_s10  ;;  %vm430_vm4 = vmpackc.low %vm366_vm2, %vm365_vm0  ;;  %vm493_vm0 = vcmask 138240  }
   0xf   : > { %v431_v9 = vsel %vm430_vm4, 65537, %v4411_v1  ;;  %vm404_vm5 = vmpackc.low %vm364_vm3, %vm363_vm1 }
  0x10   : > { %s4490_s14 = scalar_lea.vmem %s6873_s0, %s4138_s11  ;;  %v435_v10 = vrot.slane %v431_v9, %v408_v7  ;;  %v405_v11 = vsel %vm404_vm5, 65537, %v4411_v1  ;;  %v439_v13 = vrot.slane %v431_v9, %v412_v8 }
  0x11   : > { %v409_v12 = vrot.slane %v405_v11, %v408_v7  ;;  %v413_v14 = vrot.slane %v405_v11, %v412_v8  ;;  %v4500_v15 = vld [vmem:[%s4490_s14] ss:$8 sps:$4 sm:$0xff]   ;;  %v4504_v16 = vld [vmem:[%s4490_s14 + $0x4] ss:$8 sps:$4 sm:$0xff]   ;;  %v4531_v17 = vld [vmem:[%s4490_s14 + $0x10] ss:$8 sps:$4 sm:$0xff]  }
  0x12   : > { %440 = vrot.lane.b32.xlu0 %v435_v10, %s4412_s15  ;;  %v4536_v18 = vld [vmem:[%s4490_s14 + $0x14] ss:$8 sps:$4 sm:$0xff]   ;;  %v4553_v19 = vld [vmem:[%s4490_s14 + $0x20] ss:$8 sps:$4 sm:$0xff]   ;;  %v4556_v20 = vld [vmem:[%s4490_s14 + $0x24] ss:$8 sps:$4 sm:$0xff]  }
  0x13   : > { %452 = vrot.lane.b32.xlu1 %v409_v12, %s4413_s16 }
  0x16   : > { %442 = vrot.lane.b32.xlu0 %v439_v13, %s4412_s15 }
  0x17   : > { %454 = vrot.lane.b32.xlu1 %v413_v14, %s4413_s16 }
  0x1a   : > { %465 = vrot.lane.b32.xlu0 %v435_v10, %s4414_s17 }
  0x1b   : > { %467 = vrot.lane.b32.xlu1 %v439_v13, %s4414_s17 }
  0x1e   : > { %477 = vrot.lane.b32.xlu0 %v409_v12, %s4415_s18 }
  0x1f   : > { %479 = vrot.lane.b32.xlu1 %v413_v14, %s4415_s18  ;;  %s4093_s18 = sshll.u32 %s7004_s10, 5 }
  0x20   : > { %s332_s29 = scalar_lea.vmem %s6882_s9, %s4093_s18 }
  0x22   : > { %489 = vrot.lane.b32.xlu0 %v435_v10, %s4416_s19 }
  0x23   : > { %491 = vrot.lane.b32.xlu1 %v439_v13, %s4416_s19 }
  0x26   : > { %414 = vrot.lane.b32.xlu0 %v409_v12, %s4417_s20 }
  0x27   : > { %416 = vrot.lane.b32.xlu1 %v413_v14, %s4417_s20 }
  0x2a   : > { %506 = vrot.lane.b32.xlu0 %v4500_v15, %s4413_s16 }
  0x2b   : > { %508 = vrot.lane.b32.xlu1 %v4504_v16, %s4413_s16 }
  0x2e   : > { %4161 = vrot.lane.b32.xlu0 %v4411_v1, %s4413_s16 }
  0x2f   : > { %4166 = vrot.lane.b32.xlu1 %v4411_v1, %s4418_s21 }
  0x32   : > { %4171 = vrot.lane.b32.xlu0 %v4411_v1, %s4419_s22 }
  0x33   : > { %536 = vrot.lane.b32.xlu1 %v4500_v15, %s4417_s20 }
  0x36   : > { %538 = vrot.lane.b32.xlu0 %v4504_v16, %s4417_s20 }
  0x37   : > { %4176 = vrot.lane.b32.xlu1 %v4411_v1, %s4420_s23 }
  0x3a   : > { %4181 = vrot.lane.b32.xlu0 %v4411_v1, %s4421_s24 }
  0x3b   : > { %566 = vrot.lane.b32.xlu1 %v4500_v15, %s4422_s25 }
  0x3e   : > { %568 = vrot.lane.b32.xlu0 %v4504_v16, %s4422_s25 }
  0x3f   : > { %4186 = vrot.lane.b32.xlu1 %v4411_v1, %s4422_s25 }
  0x42   : > { %4191 = vrot.lane.b32.xlu0 %v4411_v1, %s4423_s26 }
  0x43   : > { %1108 = vrot.lane.b32.xlu1 %v4531_v17, %s4413_s16 }
  0x46   : > { %1110 = vrot.lane.b32.xlu0 %v4536_v18, %s4413_s16 }
  0x47   : > { %1136 = vrot.lane.b32.xlu1 %v4531_v17, %s4417_s20 }
  0x4a   : > { %1138 = vrot.lane.b32.xlu0 %v4536_v18, %s4417_s20 }
  0x4b   : > { %4196 = vrot.lane.b32.xlu1 %v4411_v1, %s4416_s19 }
  0x4e   : > { %1166 = vrot.lane.b32.xlu0 %v4536_v18, %s4422_s25 }
  0x4f   : > { %1164 = vrot.lane.b32.xlu1 %v4531_v17, %s4422_s25 }
  0x52   : > { %1711 = vrot.lane.b32.xlu0 %v4553_v19, %s4413_s16 }
  0x53   : > { %1713 = vrot.lane.b32.xlu1 %v4556_v20, %s4413_s16 }
  0x56   : > { %1709 = vrot.lane.b32.xlu0 %v4411_v1, %s4413_s16 }
  0x84   : > { %v441_v21 = vpop.permute.xlu0 %440 }
  0x85   : > { %v4564_v22 = vpop.permute.xlu1 %452 }
  0x88   : > { %v4566_v23 = vpop.permute.xlu0 %442 }
  0x89   : > { %v4568_v24 = vpop.permute.xlu1 %454  ;;  %vm6887_vm10 = vcmp.ne.s16.totalorder %v4566_v23, 0  ;;  %v4619_v48 = vsel %vm444_vm11, %v441_v21, %v4566_v23  ;;  %vm469_vm11 = vcmask 7168  }
  0x8a   : > { %vm6886_vm7 = vcmp.ne.s16.totalorder %v4568_v24, 0  ;;  %v451_v46 = vsel %vm6887_vm10, %v4504_v16, 0  ;;  %v1692_v50 = vsel %vm6887_vm10, %v4556_v20, 0  ;;  %vm447_vm15 = vcmp.ne.s16.totalorder %v4619_v48, 0 }
  0x8b   : > { %v463_v43 = vsel %vm6886_vm7, %v4504_v16, 0  ;;  %v450_v53 = vsel %vm447_vm15, %v4500_v15, 0  ;;  %v1089_v55 = vsel %vm6887_vm10, %v4536_v18, 0  ;;  %v1092_v57 = vsel %vm6886_vm7, %v4536_v18, 0 }
  0x8c   : > { %v4570_v25 = vpop.permute.xlu0 %465  ;;  %v4668_v59 = vsel %vm456_vm8, %v4564_v22, %v4568_v24  ;;  %v1088_v61 = vsel %vm447_vm15, %v4531_v17, 0  ;;  %v1695_v13 = vsel %vm6886_vm7, %v4556_v20, 0  ;;  %vm6891_vm7 = vcmask 785408  }
  0x8d   : > { %v4572_v26 = vpop.permute.xlu1 %467  ;;  %vm471_vm9 = vcmp.ne.s16.totalorder %v4570_v25, 0  ;;  %vm459_vm4 = vcmp.ne.s16.totalorder %v4668_v59, 0  ;;  %vm6889_vm10 = vcmask 130048  }
  0x8e   : > { %v474_v45 = vsel %vm471_vm9, %v4500_v15, 0  ;;  %v1094_v47 = vsel %vm471_vm9, %v4531_v17, 0  ;;  %v1091_v0 = vsel %vm459_vm4, %v4531_v17, 0  ;;  %v4702_v4 = vsel %vm469_vm11, %v4570_v25, %v4572_v26 }
  0x8f   : > { %v462_v5 = vsel %vm459_vm4, %v4500_v15, 0  ;;  %vm572_vm11 = vcmask 777216   ;;  %v1694_v21 = vsel %vm459_vm4, %v4553_v19, 0 }
  0x90   : > { %v4574_v27 = vpop.permute.xlu0 %477 }
  0x91   : > { %v480_v28 = vpop.permute.xlu1 %479  ;;  %vm6893_vm12 = vcmp.ne.s16.totalorder %v4574_v27, 0 }
  0x92   : > { %v486_v49 = vsel %vm6893_vm12, %v4500_v15, 0  ;;  %v4632_v51 = vsel %vm481_vm13, %v4574_v27, %v480_v28  ;;  %v1097_v63 = vsel %vm6893_vm12, %v4531_v17, 0  ;;  %vm6885_vm13 = vcmp.ne.s16.totalorder %v4702_v4, 0 }
  0x93   : > { %vm6884_vm1 = vcmp.ne.s16.totalorder %v4632_v51, 0  ;;  %v475_v9 = vsel %vm6885_vm13, %v4504_v16, 0  ;;  %v1095_v11 = vsel %vm6885_vm13, %v4536_v18, 0  ;;  %v1697_v28 = vsel %vm471_vm9, %v4553_v19, 0 }
  0x94   : > { %v4576_v29 = vpop.permute.xlu0 %489  ;;  %v487_v56 = vsel %vm6884_vm1, %v4504_v16, 0  ;;  %v1098_v6 = vsel %vm6884_vm1, %v4536_v18, 0 }
  0x95   : > { %v492_v30 = vpop.permute.xlu1 %491  ;;  %vm6888_vm14 = vcmp.ne.s16.totalorder %v4576_v29, 0 }
  0x96   : > { %v498_v52 = vsel %vm6888_vm14, %v4500_v15, 0  ;;  %v4645_v54 = vsel %vm493_vm0, %v4576_v29, %v492_v30  ;;  %v1100_v2 = vsel %vm6888_vm14, %v4531_v17, 0 }
  0x97   : > { %vm6883_vm2 = vcmp.ne.s16.totalorder %v4645_v54, 0 }
  0x98   : > { %v4578_v31 = vpop.permute.xlu0 %414  ;;  %v499_v58 = vsel %vm6883_vm2, %v4504_v16, 0  ;;  %v1101_v10 = vsel %vm6883_vm2, %v4536_v18, 0 }
  0x99   : > { %v4580_v32 = vpop.permute.xlu1 %416 }
  0x9a   : > { %vm422_vm3 = vcmp.ne.s16.totalorder %v4580_v32, 0  ;;  %v4682_v62 = vsel %vm418_vm6, %v4578_v31, %v4580_v32 }
  0x9b   : > { %v425_v60 = vsel %vm422_vm3, %v4504_v16, 0  ;;  %vm421_vm5 = vcmp.ne.s16.totalorder %v4682_v62, 0  ;;  %v1691_v16 = vsel %vm447_vm15, %v4553_v19, 0 }
  0x9c   : > { %v507_v33 = vpop.permute.xlu0 %506  ;;  %v424_v3 = vsel %vm421_vm5, %v4500_v15, 0 }
  0x9d   : > { %v509_v34 = vpop.permute.xlu1 %508 }
  0x9e   : > { %623 = vrot.lane.b32.xlu1 %v509_v34, %s4416_s19  ;;  %v511_v42 = vsel %vm456_vm8, %v507_v33, %v509_v34 }
  0xa0   : > { %v4583_v35 = vpop.permute.xlu0 %4161 }
  0xa1   : > { %v4585_v36 = vpop.permute.xlu1 %4166  ;;  %v4163_v41 = vunpack.i.l.bf16 %v4583_v35 }
  0xa3   : > { %v510_v44 = vsel %vm456_vm8, %v4163_v41, %v507_v33  ;;  %v1086_v33 = vsel %vm422_vm3, %v4536_v18, 0 }
  0xa4   : > { %v4587_v37 = vpop.permute.xlu0 %4171 }
  0xa5   : > { %v537_v38 = vpop.permute.xlu1 %536 }
  0xa6   : > { %637 = vrot.lane.b32.xlu1 %v537_v38, %s4416_s19 }
  0xa8   : > { %v539_v39 = vpop.permute.xlu0 %538 }
  0xa9   : > { %641 = vrot.lane.b32.xlu0 %v539_v39, %s4416_s19  ;;  %v540_v40 = vsel %vm418_vm6, %v537_v38, %v539_v39  ;;  %v4716_v8 = vpop.permute.xlu1 %4176  ;;  %v1698_v38 = vsel %vm6885_vm13, %v4556_v20, 0  ;;  %vm6892_vm13 = vcmask 900096  }
  0xaa   : > { %639 = vrot.lane.b32.xlu1 %v540_v40, %s4416_s19  ;;  %v1701_v40 = vsel %vm6884_vm1, %v4556_v20, 0  ;;  %vm533_vm1 = vcmask 916480  }
  0xac   : > { %v4714_v7 = vpop.permute.xlu0 %4181 }
  0xad   : > { %621 = vrot.lane.b32.xlu0 %v511_v42, %s4416_s19  ;;  %v567_v14 = vpop.permute.xlu1 %566  ;;  %v1085_v42 = vsel %vm421_vm5, %v4531_v17, 0 }
  0xae   : > { %531 = vrot.lane.b32.xlu1 %v463_v43, %s4419_s22  ;;  %v4164_v43 = vunpack.i.h.bf16 %v4583_v35 }
  0xb0   : > { %v569_v12 = vpop.permute.xlu0 %568 }
  0xb1   : > { %619 = vrot.lane.b32.xlu0 %v510_v44, %s4416_s19  ;;  %v573_v15 = vsel %vm572_vm11, %v567_v14, %v569_v12  ;;  %v4746_v22 = vpop.permute.xlu1 %4186  ;;  %v1700_v44 = vsel %vm6893_vm12, %v4553_v19, 0 }
  0xb2   : > { %544 = vrot.lane.b32.xlu1 %v474_v45, %s4420_s23  ;;  %v4188_v26 = vunpack.i.l.bf16 %v4746_v22 }
  0xb4   : > { %v574_v30 = vsel %vm572_vm11, %v569_v12, %v4188_v26  ;;  %v4762_v31 = vpop.permute.xlu0 %4191 }
  0xb5   : > { %519 = vrot.lane.b32.xlu0 %v451_v46, %s4418_s21  ;;  %v1109_v34 = vpop.permute.xlu1 %1108 }
  0xb6   : > { %1144 = vrot.lane.b32.xlu1 %v1094_v47, %s4420_s23  ;;  %v1112_v46 = vsel %vm456_vm8, %v4164_v43, %v1109_v34  ;;  %v1704_v47 = vsel %vm6883_vm2, %v4556_v20, 0  ;;  %vm521_vm2 = vcmask 1031168  }
  0xb8   : > { %v1111_v39 = vpop.permute.xlu0 %1110 }
  0xb9   : > { %556 = vrot.lane.b32.xlu0 %v486_v49, %s4421_s24  ;;  %v4778_v41 = vpop.permute.xlu1 %1136  ;;  %v1113_v18 = vsel %vm456_vm8, %v1109_v34, %v1111_v39 }
  0xba   : > { %1724 = vrot.lane.b32.xlu1 %v1692_v50, %s4418_s21 }
  0xbc   : > { %v1139_v35 = vpop.permute.xlu0 %1138 }
  0xbd   : > { %578 = vrot.lane.b32.xlu0 %v498_v52, %s4423_s26  ;;  %v4790_v45 = vpop.permute.xlu1 %4196 }
  0xbe   : > { %517 = vrot.lane.b32.xlu1 %v450_v53, %s4418_s21 }
  0xc0   : > { %v4808_v50 = vpop.permute.xlu0 %1166 }
  0xc1   : > { %1121 = vrot.lane.b32.xlu0 %v1089_v55, %s4418_s21  ;;  %v4799_v17 = vpop.permute.xlu1 %1164  ;;  %v1703_v55 = vsel %vm6888_vm14, %v4553_v19, 0  ;;  %vm6890_vm14 = vcmask 769024  }
  0xc2   : > { %558 = vrot.lane.b32.xlu1 %v487_v56, %s4421_s24 }
  0xc4   : > { %v4813_v52 = vpop.permute.xlu0 %1711 }
  0xc5   : > { %1132 = vrot.lane.b32.xlu0 %v1092_v57, %s4419_s22  ;;  %v4806_v49 = vpop.permute.xlu1 %1713 }
  0xc6   : > { %580 = vrot.lane.b32.xlu1 %v499_v58, %s4423_s26 }
  0xc8   : > { %v4821_v56 = vpop.permute.xlu0 %1709 }
  0xc9   : > { %617 = vrot.lane.b32.xlu0 %v425_v60, %s4416_s19 }
  0xca   : > { %1119 = vrot.lane.b32.xlu1 %v1088_v61, %s4418_s21  ;;  %v1140_v61 = vsel %vm418_vm6, %v4778_v41, %v1139_v35 }
  0xcd   : > { %1155 = vrot.lane.b32.xlu0 %v1097_v63, %s4421_s24 }
  0xce   : > { %1130 = vrot.lane.b32.xlu1 %v1091_v0, %s4419_s22 }
  0xd1   : > { %1175 = vrot.lane.b32.xlu0 %v1100_v2, %s4423_s26 }
  0xd2   : > { %615 = vrot.lane.b32.xlu1 %v424_v3, %s4416_s19 }
  0xd5   : > { %529 = vrot.lane.b32.xlu0 %v462_v5, %s4419_s22 }
  0xd6   : > { %1157 = vrot.lane.b32.xlu1 %v1098_v6, %s4421_s24 }
  0xd9   : > { %546 = vrot.lane.b32.xlu0 %v475_v9, %s4420_s23 }
  0xda   : > { %1177 = vrot.lane.b32.xlu1 %v1101_v10, %s4423_s26 }
  0xdd   : > { %1146 = vrot.lane.b32.xlu0 %v1095_v11, %s4420_s23 }
  0xde   : > { %1735 = vrot.lane.b32.xlu1 %v1695_v13, %s4419_s22 }
  0xe1   : > { %1722 = vrot.lane.b32.xlu0 %v1691_v16, %s4418_s21 }
  0xe2   : > { %657 = vrot.lane.b32.xlu1 %v573_v15, %s4416_s19 }
  0xe5   : > { %1720 = vrot.lane.b32.xlu0 %v4411_v1, %s4418_s21 }
  0xe6   : > { %655 = vrot.lane.b32.xlu1 %v567_v14, %s4416_s19  ;;  %v4168_v14 = vunpack.i.l.bf16 %v4585_v36 }
  0xe9   : > { %1733 = vrot.lane.b32.xlu0 %v1694_v21, %s4419_s22 }
  0xea   : > { %1741 = vrot.lane.b32.xlu1 %v4556_v20, %s4417_s20 }
  0xed   : > { %1731 = vrot.lane.b32.xlu0 %v4411_v1, %s4419_s22 }
  0xee   : > { %1747 = vrot.lane.b32.xlu1 %v1697_v28, %s4420_s23 }
  0xf1   : > { %659 = vrot.lane.b32.xlu0 %v574_v30, %s4416_s19 }
  0xf2   : > { %1751 = vrot.lane.b32.xlu1 %v4411_v1, %s4420_s23 }
  0xf5   : > { %1739 = vrot.lane.b32.xlu0 %v4553_v19, %s4417_s20 }
  0xf6   : > { %1213 = vrot.lane.b32.xlu1 %v1086_v33, %s4416_s19 }
  0xf9   : > { %1749 = vrot.lane.b32.xlu0 %v1698_v38, %s4420_s23 }
  0xfa   : > { %1760 = vrot.lane.b32.xlu1 %v1701_v40, %s4421_s24 }
  0xfd   : > { %1211 = vrot.lane.b32.xlu0 %v1085_v42, %s4416_s19 }
  0xfe   : > { %1217 = vrot.lane.b32.xlu1 %v1113_v18, %s4416_s19 }
 0x101   : > { %1758 = vrot.lane.b32.xlu0 %v1700_v44, %s4421_s24 }
 0x102   : > { %1215 = vrot.lane.b32.xlu1 %v1112_v46, %s4416_s19 }
 0x105   : > { %1762 = vrot.lane.b32.xlu0 %v4411_v1, %s4421_s24 }
 0x106   : > { %1769 = vrot.lane.b32.xlu1 %v4556_v20, %s4422_s25 }
 0x109   : > { %1219 = vrot.lane.b32.xlu0 %v1111_v39, %s4416_s19  ;;  %v4198_v39 = vunpack.i.l.bf16 %v4790_v45 }
 0x10a   : > { %1780 = vrot.lane.b32.xlu1 %v1704_v47, %s4423_s26 }
 0x10d   : > { %1767 = vrot.lane.b32.xlu0 %v4553_v19, %s4422_s25 }
 0x10e   : > { %1237 = vrot.lane.b32.xlu1 %v1139_v35, %s4416_s19 }
 0x110   : > { %v624_v53 = vpop.permute.xlu1 %623 }
 0x111   : > { %1771 = vrot.lane.b32.xlu0 %v4411_v1, %s4422_s25 }
 0x115   : > { %1778 = vrot.lane.b32.xlu0 %v1703_v55, %s4423_s26  ;;  %v4173_v55 = vunpack.i.l.bf16 %v4587_v37 }
 0x118   : > { %v4823_v57 = vpop.permute.xlu1 %637 }
 0x119   : > { %1782 = vrot.lane.b32.xlu0 %v4411_v1, %s4423_s26 }
 0x11b   : > { %v4827_v58 = vpop.permute.xlu0 %641 }
 0x11c   : > { %v4829_v60 = vpop.permute.xlu1 %639 }
 0x11d   : > { %1235 = vrot.lane.b32.xlu0 %v1140_v61, %s4416_s19 }
 0x11f   : > { %v622_v63 = vpop.permute.xlu0 %621 }
 0x120   : > { %v532_v0 = vpop.permute.xlu1 %531  ;;  %v670_v46 = vsel %vm493_vm0, %v622_v63, %v624_v53 }
 0x121   : > { %635 = vrot.lane.b32.xlu1 %v532_v0, %s4416_s19 }
 0x123   : > { %v620_v2 = vpop.permute.xlu0 %619 }
 0x124   : > { %v545_v3 = vpop.permute.xlu1 %544  ;;  %v669_v61 = vsel %vm493_vm0, %v620_v2, %v622_v63  ;;  %v4178_v63 = vunpack.i.l.bf16 %v4716_v8 }
 0x125   : > { %643 = vrot.lane.b32.xlu1 %v545_v3, %s4416_s19 }
 0x127   : > { %v520_v5 = vpop.permute.xlu0 %519 }
 0x128   : > { %v4836_v6 = vpop.permute.xlu1 %1144  ;;  %629 = vrot.lane.b32.xlu0 %v520_v5, %s4416_s19 }
 0x12b   : > { %v557_v9 = vpop.permute.xlu0 %556 }
 0x12c   : > { %v4839_v10 = vpop.permute.xlu1 %1724  ;;  %649 = vrot.lane.b32.xlu1 %v557_v9, %s4416_s19 }
 0x12f   : > { %v4842_v11 = vpop.permute.xlu0 %578 }
 0x130   : > { %661 = vrot.lane.b32.xlu0 %v4842_v11, %s4416_s19  ;;  %v518_v12 = vpop.permute.xlu1 %517 }
 0x131   : > { %v523_v13 = vsel %vm521_vm2, %v518_v12, %v520_v5  ;;  %v522_v21 = vsel %vm521_vm2, %v4168_v14, %v518_v12 }
 0x132   : > { %627 = vrot.lane.b32.xlu1 %v523_v13, %s4416_s19 }
 0x133   : > { %v4849_v15 = vpop.permute.xlu0 %1121 }
 0x134   : > { %1225 = vrot.lane.b32.xlu0 %v4849_v15, %s4416_s19  ;;  %v559_v16 = vpop.permute.xlu1 %558 }
 0x136   : > { %625 = vrot.lane.b32.xlu1 %v522_v21, %s4416_s19  ;;  %v563_v21 = vsel %vm6891_vm7, %v557_v9, %v559_v16 }
 0x137   : > { %v4855_v26 = vpop.permute.xlu0 %1132 }
 0x138   : > { %1231 = vrot.lane.b32.xlu0 %v4855_v26, %s4416_s19  ;;  %v581_v28 = vpop.permute.xlu1 %580 }
 0x13a   : > { %1239 = vrot.lane.b32.xlu1 %v4836_v6, %s4416_s19 }
 0x13b   : > { %v618_v30 = vpop.permute.xlu0 %617 }
 0x13c   : > { %v4861_v33 = vpop.permute.xlu1 %1119 }
 0x13f   : > { %v4863_v34 = vpop.permute.xlu0 %1155 }
 0x140   : > { %v4865_v38 = vpop.permute.xlu1 %1130 }
 0x143   : > { %v4868_v40 = vpop.permute.xlu0 %1175 }
 0x144   : > { %v616_v18 = vpop.permute.xlu1 %615 }
 0x145   : > { %v668_v42 = vsel %vm493_vm0, %v616_v18, %v618_v30  ;;  %v667_v43 = vsel %vm493_vm0, %v4198_v39, %v616_v18  ;;  %v1170_v39 = vsel %vm572_vm11, %v4799_v17, %v4808_v50 }
 0x146   : > { %707 = vmatprep.subr.bf16.mxu0 %v668_v42 }
 0x147   : > { %v530_v44 = vpop.permute.xlu0 %529  ;;  %708 = vmatpush1.bf16.msra.mxu0 %v667_v43  ;;  %v4911_v43 = vld [vmem:[%s6874_s1 + $0x4] ss:$8 sps:$4 sm:$0xff]  }
 0x148   : > { %709 = vmatprep.subr.bf16.mxu0 %v670_v46  ;;  %v4873_v35 = vpop.permute.xlu1 %1157  ;;  %v535_v47 = vsel %vm533_vm1, %v530_v44, %v532_v0  ;;  %v534_v13 = vsel %vm533_vm1, %v4173_v55, %v530_v44  ;;  %v4193_v44 = vunpack.i.l.bf16 %v4762_v31  ;;  %4036 = vmatprep.mubr.msk.bf16.mxu0 %vm6889_vm10, %v4911_v43 }
 0x149   : > { %633 = vrot.lane.b32.xlu0 %v535_v47, %s4416_s19 }
 0x14a   : > { %v586_v47 = vsel %vm6890_vm14, %v581_v28, %v4193_v44 }
 0x14b   : > { %v547_v5 = vpop.permute.xlu0 %546  ;;  %710 = vmatpush1.bf16.msra.mxu0 %v669_v61  ;;  %v585_v61 = vsel %vm6890_vm14, %v4842_v11, %v581_v28 }
 0x14c   : > { %v4879_v12 = vpop.permute.xlu1 %1177  ;;  %v551_v53 = vsel %vm6892_vm13, %v545_v3, %v547_v5  ;;  %v552_v30 = vsel %vm6892_vm13, %v547_v5, %v4178_v63  ;;  %v1124_v5 = vsel %vm521_vm2, %v4861_v33, %v4849_v15  ;;  %v4179_v15 = vunpack.i.h.bf16 %v4716_v8 }
 0x14d   : > { %631 = vrot.lane.b32.xlu0 %v534_v13, %s4416_s19  ;;  %645 = vrot.lane.b32.xlu1 %v551_v53, %s4416_s19  ;;  %v4169_v13 = vunpack.i.h.bf16 %v4585_v36  ;;  %v1161_v8 = vsel %vm6891_vm7, %v4863_v34, %v4873_v35 }
 0x14f   : > { %v1147_v0 = vpop.permute.xlu0 %1146  ;;  %v1123_v11 = vsel %vm521_vm2, %v4169_v13, %v4861_v33 }
 0x150   : > { %v4885_v14 = vpop.permute.xlu1 %1735  ;;  %v1151_v36 = vsel %vm6892_vm13, %v1147_v0, %v4179_v15 }
 0x151   : > { %1233 = vrot.lane.b32.xlu0 %v4778_v41, %s4416_s19  ;;  %651 = vrot.lane.b32.xlu1 %v563_v21, %s4416_s19  ;;  %v4183_v41 = vunpack.i.l.bf16 %v4714_v7 }
 0x153   : > { %v4892_v2 = vpop.permute.xlu0 %1722  ;;  %v564_v42 = vsel %vm6891_vm7, %v559_v16, %v4183_v41 }
 0x154   : > { %v4894_v3 = vpop.permute.xlu1 %657 }
 0x155   : > { %647 = vrot.lane.b32.xlu0 %v552_v30, %s4416_s19  ;;  %1253 = vrot.lane.b32.xlu1 %v1170_v39, %s4416_s19  ;;  %v1135_v30 = vsel %vm533_vm1, %v4865_v38, %v4855_v26 }
 0x157   : > { %v4903_v9 = vpop.permute.xlu0 %1720 }
 0x158   : > { %v4905_v18 = vpop.permute.xlu1 %655 }
 0x159   : > { %653 = vrot.lane.b32.xlu0 %v564_v42, %s4416_s19  ;;  %1251 = vrot.lane.b32.xlu1 %v4799_v17, %s4416_s19  ;;  %v4189_v17 = vunpack.i.h.bf16 %v4746_v22  ;;  %v1150_v42 = vsel %vm6892_vm13, %v4836_v6, %v1147_v0  ;;  %v4194_v6 = vunpack.i.h.bf16 %v4762_v31  ;;  %v1688_v31 = vsel %vm421_vm5, %v4553_v19, 0 }
 0x15b   : > { %v4919_v46 = vpop.permute.xlu0 %1733  ;;  %v1171_v22 = vsel %vm572_vm11, %v4808_v50, %v4189_v17  ;;  %v4174_v50 = vunpack.i.h.bf16 %v4587_v37  ;;  %v1181_v37 = vsel %vm6890_vm14, %v4868_v40, %v4879_v12  ;;  %v1689_v17 = vsel %vm422_vm3, %v4556_v20, 0 }
 0x15c   : > { %v4921_v16 = vpop.permute.xlu1 %1741  ;;  %v1715_v20 = vsel %vm456_vm8, %v4821_v56, %v4813_v52  ;;  %v1738_v56 = vsel %vm533_vm1, %v4919_v46, %v4885_v14 }
 0x15d   : > { %1245 = vrot.lane.b32.xlu0 %v4863_v34, %s4416_s19  ;;  %665 = vrot.lane.b32.xlu1 %v586_v47, %s4416_s19  ;;  %v1134_v39 = vsel %vm533_vm1, %v4174_v50, %v4865_v38  ;;  %v4184_v34 = vunpack.i.h.bf16 %v4714_v7  ;;  %v1182_v47 = vsel %vm6890_vm14, %v4879_v12, %v4194_v6 }
 0x15f   : > { %v4927_v55 = vpop.permute.xlu0 %1731  ;;  %v1162_v44 = vsel %vm6891_vm7, %v4873_v35, %v4184_v34 }
 0x160   : > { %v4938_v53 = vpop.permute.xlu1 %1747  ;;  %v1737_v13 = vsel %vm533_vm1, %v4927_v55, %v4919_v46 }
 0x161   : > { %663 = vrot.lane.b32.xlu0 %v585_v61, %s4416_s19  ;;  %1223 = vrot.lane.b32.xlu1 %v1124_v5, %s4416_s19 }
 0x163   : > { %v4940_v21 = vpop.permute.xlu0 %659 }
 0x164   : > { %v4949_v63 = vpop.permute.xlu1 %1751 }
 0x165   : > { %1255 = vrot.lane.b32.xlu0 %v1171_v22, %s4416_s19  ;;  %1221 = vrot.lane.b32.xlu1 %v1123_v11, %s4416_s19 }
 0x167   : > { %v1740_v28 = vpop.permute.xlu0 %1739 }
 0x168   : > { %v4965_v41 = vpop.permute.xlu1 %1213 }
 0x169   : > { %1243 = vrot.lane.b32.xlu0 %v1151_v36, %s4416_s19  ;;  %1229 = vrot.lane.b32.xlu1 %v1135_v30, %s4416_s19 }
 0x16b   : > { %v1750_v33 = vpop.permute.xlu0 %1749 }
 0x16c   : > { %v1761_v38 = vpop.permute.xlu1 %1760 }
 0x16d   : > { %1227 = vrot.lane.b32.xlu1 %v1134_v39, %s4416_s19  ;;  %1247 = vrot.lane.b32.xlu0 %v1161_v8, %s4416_s19 }
 0x16f   : > { %v4967_v26 = vpop.permute.xlu0 %1211 }
 0x170   : > { %v4990_v7 = vpop.permute.xlu1 %1217 }
 0x171   : > { %1241 = vrot.lane.b32.xlu1 %v1150_v42, %s4416_s19  ;;  %1259 = vrot.lane.b32.xlu0 %v1181_v37, %s4416_s19 }
 0x173   : > { %v1759_v0 = vpop.permute.xlu0 %1758 }
 0x174   : > { %v5003_v12 = vpop.permute.xlu1 %1215 }
 0x175   : > { %1249 = vrot.lane.b32.xlu1 %v1162_v44, %s4416_s19  ;;  %1257 = vrot.lane.b32.xlu0 %v4868_v40, %s4416_s19  ;;  %v1716_v40 = vsel %vm456_vm8, %v4813_v52, %v4806_v49  ;;  %v1727_v52 = vsel %vm521_vm2, %v4892_v2, %v4839_v10 }
 0x177   : > { %v1763_v35 = vpop.permute.xlu0 %1762 }
 0x178   : > { %v1770_v19 = vpop.permute.xlu1 %1769  ;;  %v1765_v55 = vsel %vm6891_vm7, %v1761_v38, %v1763_v35 }
 0x179   : > { %1261 = vrot.lane.b32.xlu1 %v1182_v47, %s4416_s19  ;;  %1816 = vrot.lane.b32.xlu0 %v1689_v17, %s4416_s19 }
 0x17b   : > { %v5008_v61 = vpop.permute.xlu0 %1219 }
 0x17c   : > { %v1781_v22 = vpop.permute.xlu1 %1780 }
 0x17d   : > { %1814 = vrot.lane.b32.xlu1 %v1688_v31, %s4416_s19  ;;  %1820 = vrot.lane.b32.xlu0 %v1716_v40, %s4416_s19 }
 0x17f   : > { %v1768_v5 = vpop.permute.xlu0 %1767 }
 0x180   : > { %v5034_v11 = vpop.permute.xlu1 %1237  ;;  %v1773_v39 = vsel %vm572_vm11, %v1768_v5, %v1770_v19 }
 0x181   : > { %1812 = vrot.lane.b32.xlu1 %v4411_v1, %s4416_s19  ;;  %1818 = vrot.lane.b32.xlu0 %v1715_v20, %s4416_s19 }
 0x185   : > { %1822 = vrot.lane.b32.xlu1 %v4806_v49, %s4416_s19  ;;  %1828 = vrot.lane.b32.xlu0 %v4839_v10, %s4416_s19  ;;  %v1726_v49 = vsel %vm521_vm2, %v4903_v9, %v4892_v2  ;;  %v1772_v10 = vpop.permute.xlu0 %1771  ;;  %v1743_v2 = vsel %vm418_vm6, %v1740_v28, %v4921_v16  ;;  %v1753_v9 = vsel %vm6892_vm13, %v4938_v53, %v1750_v33 }
 0x189   : > { %1826 = vrot.lane.b32.xlu1 %v1727_v52, %s4416_s19  ;;  %1832 = vrot.lane.b32.xlu0 %v1738_v56, %s4416_s19  ;;  %v1779_v15 = vpop.permute.xlu0 %1778  ;;  %v676_v52 = vsel %vm493_vm0, %v4829_v60, %v4827_v58 }
 0x18a   : > { %v1784_v6 = vsel %vm6890_vm14, %v1779_v15, %v1781_v22 }
 0x18d   : > { %1824 = vrot.lane.b32.xlu1 %v1726_v49, %s4416_s19  ;;  %1830 = vrot.lane.b32.xlu0 %v1737_v13, %s4416_s19  ;;  %v675_v13 = vsel %vm493_vm0, %v4823_v57, %v4829_v60 }
 0x191   : > { %1834 = vrot.lane.b32.xlu1 %v4885_v14, %s4416_s19  ;;  %1840 = vrot.lane.b32.xlu0 %v4921_v16, %s4416_s19  ;;  %v1783_v14 = vpop.permute.xlu0 %1782  ;;  %v1754_v16 = vsel %vm6892_vm13, %v1750_v33, %v4949_v63  ;;  %v1774_v33 = vsel %vm572_vm11, %v1770_v19, %v1772_v10  ;;  %vm6898_vm13 = vcmp.ne.s16.totalorder %v4632_v51, 0 }
 0x192   : > { %v1785_v42 = vsel %vm6890_vm14, %v1781_v22, %v1783_v14  ;;  %vm6895_vm14 = vcmp.ne.s16.totalorder %v4566_v23, 0 }
 0x193   : > { %v636_v46 = vpop.permute.xlu1 %635 }
 0x195   : > { %1838 = vrot.lane.b32.xlu1 %v1743_v2, %s4416_s19  ;;  %1844 = vrot.lane.b32.xlu0 %v1753_v9, %s4416_s19  ;;  %v5050_v30 = vpop.permute.xlu0 %1235 }
 0x197   : > { %v644_v36 = vpop.permute.xlu1 %643 }
 0x199   : > { %1836 = vrot.lane.b32.xlu1 %v1740_v28, %s4416_s19  ;;  %1842 = vrot.lane.b32.xlu0 %v4938_v53, %s4416_s19  ;;  %v1764_v28 = vsel %vm6891_vm7, %v1759_v0, %v1761_v38  ;;  %v589_v38 = vld [vmem:[%s6875_s2] sm:$0xff]  ;;  %vm6896_vm7 = vcmp.ne.s16.totalorder %v4568_v24, 0 }
 0x19a   : > { %v630_v53 = vpop.permute.xlu0 %629 }
 0x19d   : > { %1846 = vrot.lane.b32.xlu1 %v1754_v16, %s4416_s19  ;;  %1852 = vrot.lane.b32.xlu0 %v1765_v55, %s4416_s19 }
 0x19e   : > { %v5052_v50 = vpop.permute.xlu1 %649 }
 0x1a1   : > { %1850 = vrot.lane.b32.xlu1 %v1764_v28, %s4416_s19  ;;  %1856 = vrot.lane.b32.xlu0 %v1773_v39, %s4416_s19  ;;  %v5133_v39 = vld [vmem:[%s6874_s1] ss:$8 sps:$4 sm:$0xff]  }
 0x1a2   : > { %v662_v44 = vpop.permute.xlu0 %661 }
 0x1a4   : > { %v628_v8 = vpop.permute.xlu1 %627 }
 0x1a5   : > { %1848 = vrot.lane.b32.xlu1 %v1759_v0, %s4416_s19  ;;  %1854 = vrot.lane.b32.xlu0 %v1768_v5, %s4416_s19  ;;  %v672_v63 = vsel %vm493_vm0, %v628_v8, %v630_v53  ;;  %v590_v0 = vld [vmem:[%s6875_s2 + $0x8] sm:$0xff] }
 0x1a6   : > { %711 = vmatprep.subr.bf16.mxu0 %v672_v63  ;;  %v5074_v47 = vpop.permute.xlu0 %1225 }
 0x1a8   : > { %v626_v37 = vpop.permute.xlu1 %625 }
 0x1a9   : > { %1858 = vrot.lane.b32.xlu1 %v1774_v33, %s4416_s19  ;;  %1864 = vrot.lane.b32.xlu0 %v1785_v42, %s4416_s19  ;;  %v671_v34 = vsel %vm493_vm0, %v626_v37, %v628_v8  ;;  %v1266_v33 = vsel %vm493_vm0, %v4990_v7, %v5008_v61  ;;  %v1265_v42 = vsel %vm493_vm0, %v5003_v12, %v4990_v7 }
 0x1aa   : > { %712 = vmatpush1.bf16.msra.mxu0 %v671_v34  ;;  %v5077_v17 = vpop.permute.xlu0 %1231 }
 0x1ac   : > { %v5081_v40 = vpop.permute.xlu1 %1239 }
 0x1ad   : > { %1862 = vrot.lane.b32.xlu1 %v1784_v6, %s4416_s19  ;;  %593 = vperm.xlu0 %4200, %v589_v38   ;;  %v1272_v6 = vsel %vm493_vm0, %v5050_v30, %v5034_v11 }
 0x1b1   : > { %1860 = vrot.lane.b32.xlu1 %v1779_v15, %s4416_s19  ;;  %1194 = vperm.xlu0 %4200, %v590_v0  }
 0x1b5   : > { %598 = vperm.xlu1 %4201, %v590_v0   ;;  %1792 = vperm.xlu0 %4200, %v589_v38  }
 0x1b9   : > { %1189 = vperm.xlu1 %4201, %v589_v38   ;;  %4208 = vrot.lane.b32.xlu0 %v4411_v1, %s4418_s21 }
 0x1bb   : > { %v634_v35 = vpop.permute.xlu0 %633 }
 0x1bc   : > { %v674_v31 = vsel %vm493_vm0, %v634_v35, %v636_v46  ;;  %v682_v46 = vsel %vm493_vm0, %v4894_v3, %v4940_v21 }
 0x1bd   : > { %713 = vmatprep.subr.bf16.mxu0 %v674_v31  ;;  %4203 = vrot.lane.b32.xlu1 %v4411_v1, %s4413_s16 }
 0x1be   : > { %4218 = vrot.lane.b32.xlu0 %v4411_v1, %s4420_s23 }
 0x1bf   : > { %v632_v20 = vpop.permute.xlu0 %631  ;;  %v646_v19 = vpop.permute.xlu1 %645 }
 0x1c0   : > { %v673_v5 = vsel %vm493_vm0, %v632_v20, %v634_v35  ;;  %v677_v15 = vsel %vm493_vm0, %v644_v36, %v646_v19  ;;  %v681_v36 = vsel %vm493_vm0, %v4905_v18, %v4894_v3  ;;  %v1264_v3 = vsel %vm493_vm0, %v4967_v26, %v4965_v41 }
 0x1c1   : > { %714 = vmatpush1.bf16.msra.mxu0 %v673_v5  ;;  %1797 = vperm.xlu1 %4201, %v590_v0   ;;  %v4199_v18 = vunpack.i.h.bf16 %v4790_v45 }
 0x1c2   : > { %715 = vmatprep.subr.bf16.mxu0 %v676_v52  ;;  %4228 = vrot.lane.b32.xlu0 %v4411_v1, %s4422_s25 }
 0x1c3   : > { %v5094_v56 = vpop.permute.xlu0 %1233  ;;  %v652_v49 = vpop.permute.xlu1 %651  ;;  %v1263_v63 = vsel %vm493_vm0, %v4199_v18, %v4967_v26 }
 0x1c4   : > { %v679_v9 = vsel %vm493_vm0, %v5052_v50, %v652_v49 }
 0x1c5   : > { %716 = vmatpush1.bf16.msra.mxu0 %v675_v13  ;;  %4213 = vrot.lane.b32.xlu1 %v4411_v1, %s4419_s22 }
 0x1c6   : > { %4238 = vrot.lane.b32.xlu0 %v4411_v1, %s4416_s19 }
 0x1c7   : > { %v648_v58 = vpop.permute.xlu0 %647  ;;  %v5103_v22 = vpop.permute.xlu1 %1253 }
 0x1c8   : > { %v678_v10 = vsel %vm493_vm0, %v646_v19, %v648_v58 }
 0x1c9   : > { %717 = vmatprep.subr.bf16.mxu0 %v678_v10  ;;  %4223 = vrot.lane.b32.xlu1 %v4411_v1, %s4421_s24 }
 0x1ca   : > { %718 = vmatpush1.bf16.msra.mxu0 %v677_v15  ;;  %2023 = vrot.lane.b32.xlu0 %v4411_v1, %s4420_s23 }
 0x1cb   : > { %v654_v57 = vpop.permute.xlu0 %653  ;;  %v5111_v60 = vpop.permute.xlu1 %1251 }
 0x1cc   : > { %v680_v2 = vsel %vm493_vm0, %v652_v49, %v654_v57  ;;  %v1277_v58 = vsel %vm493_vm0, %v5111_v60, %v5103_v22 }
 0x1cd   : > { %719 = vmatprep.subr.bf16.mxu0 %v680_v2  ;;  %4233 = vrot.lane.b32.xlu1 %v4411_v1, %s4423_s26 }
 0x1ce   : > { %720 = vmatpush1.bf16.msra.mxu0 %v679_v9  ;;  %2107 = vrot.lane.b32.xlu0 %v4411_v1, %s4416_s19 }
 0x1cf   : > { %v1246_v14 = vpop.permute.xlu0 %1245  ;;  %721 = vmatprep.subr.bf16.mxu0 %v682_v46  ;;  %v666_v55 = vpop.permute.xlu1 %665 }
 0x1d1   : > { %1981 = vrot.lane.b32.xlu1 %v4411_v1, %s4413_s16 }
 0x1d2   : > { %722 = vmatpush1.bf16.msra.mxu0 %v681_v36 }
 0x1d3   : > { %v664_v16 = vpop.permute.xlu0 %663  ;;  %v1224_v50 = vpop.permute.xlu1 %1223 }
 0x1d4   : > { %v684_v28 = vsel %vm493_vm0, %v664_v16, %v666_v55  ;;  %v683_v21 = vsel %vm493_vm0, %v662_v44, %v664_v16  ;;  %v1268_v26 = vsel %vm493_vm0, %v1224_v50, %v5074_v47 }
 0x1d5   : > { %723 = vmatprep.subr.bf16.mxu0 %v684_v28  ;;  %1992 = vrot.lane.b32.xlu1 %v4411_v1, %s4418_s21 }
 0x1d6   : > { %724 = vmatpush1.bf16.msra.mxu0 %v683_v21 }
 0x1d7   : > { %v1256_v53 = vpop.permute.xlu0 %1255  ;;  %1302 = vmatprep.subr.bf16.mxu0 %v1264_v3  ;;  %v1222_v8 = vpop.permute.xlu1 %1221 }
 0x1d8   : > { %v1267_v34 = vsel %vm493_vm0, %v1222_v8, %v1224_v50 }
 0x1d9   : > { %740 = vmatmul.mubr.bf16.vlgmr.msra.gmra.mrb[0].mxu0 %v5133_v39  ;;  %2003 = vrot.lane.b32.xlu1 %v4411_v1, %s4419_s22 }
 0x1da   : > { %1303 = vmatpush1.bf16.msra.mxu0 %v1263_v63  ;;  %4049 = vmatprep.mubr.msk.bf16.mxu0 %vm6889_vm10, %v4911_v43 }
 0x1db   : > { %v1244_v45 = vpop.permute.xlu0 %1243  ;;  %1304 = vmatprep.subr.bf16.mxu0 %v1266_v33  ;;  %v1230_v41 = vpop.permute.xlu1 %1229 }
 0x1dc   : > { %v1270_v38 = vsel %vm493_vm0, %v1230_v41, %v5077_v17  ;;  %v1271_v17 = vsel %vm493_vm0, %v5094_v56, %v5050_v30  ;;  %v1278_v30 = vsel %vm493_vm0, %v5103_v22, %v1256_v53 }
 0x1dd   : > { %2034 = vrot.lane.b32.xlu1 %v4411_v1, %s4421_s24 }
 0x1de   : > { %1305 = vmatpush1.bf16.msra.mxu0 %v1265_v42 }
 0x1df   : > { %v1248_v37 = vpop.permute.xlu0 %1247  ;;  %1306 = vmatprep.subr.bf16.mxu0 %v1268_v26  ;;  %v1228_v61 = vpop.permute.xlu1 %1227 }
 0x1e0   : > { %v1269_v44 = vsel %vm493_vm0, %v1228_v61, %v1230_v41  ;;  %v1275_v49 = vsel %vm493_vm0, %v1246_v14, %v1248_v37 }
 0x1e1   : > { %2043 = vrot.lane.b32.xlu1 %v4411_v1, %s4422_s25 }
 0x1e2   : > { %1307 = vmatpush1.bf16.msra.mxu0 %v1267_v34 }
 0x1e3   : > { %v1260_v7 = vpop.permute.xlu0 %1259  ;;  %1308 = vmatprep.subr.bf16.mxu0 %v1270_v38  ;;  %v1242_v12 = vpop.permute.xlu1 %1241 }
 0x1e4   : > { %v1274_v35 = vsel %vm493_vm0, %v1242_v12, %v1244_v45  ;;  %v1273_v19 = vsel %vm493_vm0, %v5081_v40, %v1242_v12 }
 0x1e5   : > { %2054 = vrot.lane.b32.xlu1 %v4411_v1, %s4423_s26 }
 0x1e6   : > { %1309 = vmatpush1.bf16.msra.mxu0 %v1269_v44 }
 0x1e7   : > { %v1258_v0 = vpop.permute.xlu0 %1257  ;;  %1310 = vmatprep.subr.bf16.mxu0 %v1272_v6  ;;  %v1250_v47 = vpop.permute.xlu1 %1249 }
 0x1e8   : > { %v1276_v5 = vsel %vm493_vm0, %v1248_v37, %v1250_v47  ;;  %v1279_v57 = vsel %vm493_vm0, %v1258_v0, %v1260_v7 }
 0x1ea   : > { %1311 = vmatpush1.bf16.msra.mxu0 %v1271_v17 }
 0x1eb   : > { %v1817_v31 = vpop.permute.xlu0 %1816  ;;  %1312 = vmatprep.subr.bf16.mxu0 %v1274_v35  ;;  %v1262_v20 = vpop.permute.xlu1 %1261 }
 0x1ec   : > { %v1280_v40 = vsel %vm493_vm0, %v1260_v7, %v1262_v20 }
 0x1ee   : > { %1313 = vmatpush1.bf16.msra.mxu0 %v1273_v19 }
 0x1ef   : > { %v1821_v11 = vpop.permute.xlu0 %1820  ;;  %1314 = vmatprep.subr.bf16.mxu0 %v1276_v5  ;;  %v1815_v52 = vpop.permute.xlu1 %1814 }
 0x1f0   : > { %v1867_v2 = vsel %vm493_vm0, %v1815_v52, %v1817_v31 }
 0x1f2   : > { %1315 = vmatpush1.bf16.msra.mxu0 %v1275_v49 }
 0x1f3   : > { %v1819_v56 = vpop.permute.xlu0 %1818  ;;  %1316 = vmatprep.subr.bf16.mxu0 %v1278_v30  ;;  %v1813_v13 = vpop.permute.xlu1 %1812 }
 0x1f4   : > { %v1866_v14 = vsel %vm493_vm0, %v1813_v13, %v1815_v52  ;;  %v1868_v36 = vsel %vm493_vm0, %v1819_v56, %v1821_v11 }
 0x1f6   : > { %1317 = vmatpush1.bf16.msra.mxu0 %v1277_v58 }
 0x1f7   : > { %v1829_v10 = vpop.permute.xlu0 %1828  ;;  %1318 = vmatprep.subr.bf16.mxu0 %v1280_v40  ;;  %v1823_v15 = vpop.permute.xlu1 %1822 }
 0x1f8   : > { %v1869_v22 = vsel %vm493_vm0, %v1821_v11, %v1823_v15 }
 0x1fa   : > { %1319 = vmatpush1.bf16.msra.mxu0 %v1279_v57 }
 0x1fb   : > { %v1833_v9 = vpop.permute.xlu0 %1832  ;;  %1905 = vmatprep.subr.bf16.mxu0 %v1867_v2  ;;  %v1827_v46 = vpop.permute.xlu1 %1826 }
 0x1fc   : > { %v1871_v16 = vsel %vm493_vm0, %v1827_v46, %v1829_v10 }
 0x1fd   : > { %1335 = vmatmul.mubr.bf16.vlgmr.msra.gmra.mrb[4].mxu0 %v5133_v39 }
 0x1fe   : > { %1906 = vmatpush1.bf16.msra.mxu0 %v1866_v14  ;;  %4062 = vmatprep.mubr.msk.bf16.mxu0 %vm6889_vm10, %v4911_v43  ;;  %vm6894_vm10 = vcmp.ne.s16.totalorder %v4576_v29, 0 }
 0x1ff   : > { %v1831_v60 = vpop.permute.xlu0 %1830  ;;  %1907 = vmatprep.subr.bf16.mxu0 %v1869_v22  ;;  %v1825_v55 = vpop.permute.xlu1 %1824 }
 0x200   : > { %v1870_v21 = vsel %vm493_vm0, %v1825_v55, %v1827_v46  ;;  %v1872_v43 = vsel %vm493_vm0, %v1831_v60, %v1833_v9 }
 0x202   : > { %1908 = vmatpush1.bf16.msra.mxu0 %v1868_v36 }
 0x203   : > { %v1841_v50 = vpop.permute.xlu0 %1840  ;;  %1909 = vmatprep.subr.bf16.mxu0 %v1871_v16  ;;  %v1835_v28 = vpop.permute.xlu1 %1834 }
 0x204   : > { %v1873_v3 = vsel %vm493_vm0, %v1833_v9, %v1835_v28 }
 0x206   : > { %1910 = vmatpush1.bf16.msra.mxu0 %v1870_v21 }
 0x207   : > { %v1845_v18 = vpop.permute.xlu0 %1844  ;;  %1911 = vmatprep.subr.bf16.mxu0 %v1873_v3  ;;  %v1839_v53 = vpop.permute.xlu1 %1838 }
 0x208   : > { %v1875_v8 = vsel %vm493_vm0, %v1839_v53, %v1841_v50 }
 0x20a   : > { %1912 = vmatpush1.bf16.msra.mxu0 %v1872_v43 }
 0x20b   : > { %v1843_v63 = vpop.permute.xlu0 %1842  ;;  %1913 = vmatprep.subr.bf16.mxu0 %v1875_v8  ;;  %v1837_v33 = vpop.permute.xlu1 %1836 }
 0x20c   : > { %v1874_v45 = vsel %vm493_vm0, %v1837_v33, %v1839_v53  ;;  %v1876_v37 = vsel %vm493_vm0, %v1843_v63, %v1845_v18 }
 0x20e   : > { %1914 = vmatpush1.bf16.msra.mxu0 %v1874_v45 }
 0x20f   : > { %v1853_v41 = vpop.permute.xlu0 %1852  ;;  %v1847_v42 = vpop.permute.xlu1 %1846 }
 0x210   : > { %v1877_v26 = vsel %vm493_vm0, %v1845_v18, %v1847_v42 }
 0x211   : > { %1915 = vmatprep.subr.bf16.mxu0 %v1877_v26 }
 0x212   : > { %1916 = vmatpush1.bf16.msra.mxu0 %v1876_v37 }
 0x213   : > { %v1857_v61 = vpop.permute.xlu0 %1856  ;;  %v1851_v34 = vpop.permute.xlu1 %1850 }
 0x214   : > { %v1879_v38 = vsel %vm493_vm0, %v1851_v34, %v1853_v41 }
 0x215   : > { %1917 = vmatprep.subr.bf16.mxu0 %v1879_v38 }
 0x217   : > { %v1849_v7 = vpop.permute.xlu1 %1848  ;;  %v1855_v44 = vpop.permute.xlu0 %1854 }
 0x218   : > { %v1878_v12 = vsel %vm493_vm0, %v1849_v7, %v1851_v34  ;;  %v1880_v47 = vsel %vm493_vm0, %v1855_v44, %v1857_v61 }
 0x219   : > { %1918 = vmatpush1.bf16.msra.mxu0 %v1878_v12 }
 0x21b   : > { %v1859_v6 = vpop.permute.xlu1 %1858  ;;  %v1865_v17 = vpop.permute.xlu0 %1864 }
 0x21c   : > { %v1881_v0 = vsel %vm493_vm0, %v1857_v61, %v1859_v6 }
 0x21d   : > { %1919 = vmatprep.subr.bf16.mxu0 %v1881_v0 }
 0x21e   : > { %1920 = vmatpush1.bf16.msra.mxu0 %v1880_v47 }
 0x21f   : > { %v1863_v35 = vpop.permute.xlu1 %1862 }
 0x220   : > { %v1883_v31 = vsel %vm493_vm0, %v1863_v35, %v1865_v17 }
 0x221   : > { %1921 = vmatprep.subr.bf16.mxu0 %v1883_v31 }
 0x223   : > { %v1861_v20 = vpop.permute.xlu1 %1860 }
 0x224   : > { %v1882_v19 = vsel %vm493_vm0, %v1861_v20, %v1863_v35 }
 0x225   : > { %1922 = vmatpush1.bf16.msra.mxu0 %v1882_v19 }
 0x228   : > { %1938 = vmatmul.mubr.bf16.vlgmr.msra.gmra.mrb[8].mxu0 %v5133_v39 }
 0x22c   : > { %v594_v5 = vpop.permute.xlu0 %593 }
 0x230   : > { %v1195_v63 = vpop.permute.xlu0 %1194 }
 0x234   : > { %v599_v30 = vpop.permute.xlu1 %598 }
 0x238   : > { %v1190_v21 = vpop.permute.xlu1 %1189 }
 0x23c   : > { %v5260_v17 = vpop.permute.xlu1 %4203 }
 0x240   : > { %v1798_v19 = vpop.permute.xlu1 %1797 }
 0x2ac   : > { %v741_v11 = vpop.f32.mrb[0].mxu0 }
 0x2ad   : > { %v742_v52 = vadd.f32 %v741_v11, %v594_v5  ;;  %v743_v49 = vpop.f32.mrb[1].mxu0 }
 0x2ae   : > { %v744_v56 = vadd.f32 %v743_v49, %v594_v5  ;;  %v745_v13 = vpop.f32.mrb[2].mxu0  ;;  %v5279_v49 = vpop.permute.xlu1 %4213 }
 0x2af   : > { %v746_v58 = vadd.f32 %v745_v13, %v599_v30  ;;  %v747_v40 = vpop.f32.mrb[3].mxu0  ;;  %v750_v15 = vmax.f32 %v742_v52, 0.0 }
 0x2b0   : > { %v748_v10 = vadd.f32 %v747_v40, %v599_v30  ;;  %v751_v2 = vmax.f32 %v744_v56, 0.0 }
 0x2b1   : > { %v752_v57 = vmax.f32 %v746_v58, 0.0 }
 0x2b2   : > { %v753_v9 = vmax.f32 %v748_v10, 0.0  ;;  %v5288_v13 = vpop.permute.xlu1 %4223  ;;  %v1793_v10 = vpop.permute.xlu0 %1792 }
 0x2b3   : > { %v754_v46 = vpack.c.bf16 %v752_v57, %v750_v15 }
 0x2b4   : > { %v755_v14 = vpack.c.bf16 %v753_v9, %v751_v2 }
 0x2b5   : > { %813 = vrot.lane.b32.xlu0 %v754_v46, %s4417_s20  ;;  %785 = vrot.lane.b32.xlu1 %v754_v46, %s4413_s16  ;;  %v768_v39 = vsel %vm459_vm4, %v754_v46, 0  ;;  %v774_v22 = vsel %vm6893_vm12, %v754_v46, 0  ;;  %v765_v60 = vsel %vm447_vm15, %v754_v46, 0  ;;  %v771_v55 = vsel %vm471_vm9, %v754_v46, 0 }
 0x2b6   : > { %v777_v36 = vsel %vm6894_vm10, %v754_v46, 0  ;;  %v762_v16 = vsel %vm421_vm5, %v754_v46, 0  ;;  %v766_v50 = vsel %vm6895_vm14, %v755_v14, 0  ;;  %v769_v28 = vsel %vm6896_vm7, %v755_v14, 0 }
 0x2b7   : > { %vm6897_vm10 = vcmp.ne.s16.totalorder %v4702_v4, 0  ;;  %v775_v53 = vsel %vm6898_vm13, %v755_v14, 0  ;;  %v763_v37 = vsel %vm422_vm3, %v755_v14, 0  ;;  %vm6899_vm7 = vcmp.ne.s16.totalorder %v4645_v54, 0 }
 0x2b8   : > { %v772_v18 = vsel %vm6897_vm10, %v755_v14, 0  ;;  %v778_v61 = vsel %vm6899_vm7, %v755_v14, 0  ;;  %vm6900_vm14 = vcmp.ne.s16.totalorder %v4576_v29, 0  ;;  %vm6901_vm10 = vcmp.ne.s16.totalorder %v4566_v23, 0 }
 0x2b9   : > { %841 = vrot.lane.b32.xlu0 %v754_v46, %s4422_s25  ;;  %807 = vrot.lane.b32.xlu1 %v768_v39, %s4419_s22 }
 0x2bd   : > { %787 = vrot.lane.b32.xlu0 %v755_v14, %s4413_s16  ;;  %815 = vrot.lane.b32.xlu1 %v755_v14, %s4417_s20 }
 0x2c1   : > { %832 = vrot.lane.b32.xlu1 %v774_v22, %s4421_s24  ;;  %796 = vrot.lane.b32.xlu0 %v765_v60, %s4418_s21 }
 0x2c5   : > { %843 = vrot.lane.b32.xlu1 %v755_v14, %s4422_s25  ;;  %821 = vrot.lane.b32.xlu0 %v771_v55, %s4420_s23  ;;  %v5296_v14 = vpop.permute.xlu1 %4233 }
 0x2c9   : > { %852 = vrot.lane.b32.xlu1 %v777_v36, %s4423_s26  ;;  %911 = vrot.lane.b32.xlu0 %v762_v16, %s4416_s19 }
 0x2cd   : > { %798 = vrot.lane.b32.xlu1 %v766_v50, %s4418_s21  ;;  %809 = vrot.lane.b32.xlu0 %v769_v28, %s4419_s22 }
 0x2d0   : > { %v1336_v3 = vpop.f32.mrb[4].mxu0 }
 0x2d1   : > { %v1337_v43 = vadd.f32 %v1336_v3, %v1190_v21  ;;  %v1338_v8 = vpop.f32.mrb[5].mxu0  ;;  %823 = vrot.lane.b32.xlu1 %v772_v18, %s4420_s23  ;;  %834 = vrot.lane.b32.xlu0 %v775_v53, %s4421_s24  ;;  %v5298_v3 = vpop.permute.xlu0 %4208 }
 0x2d2   : > { %v1339_v33 = vadd.f32 %v1338_v8, %v1190_v21  ;;  %v1340_v45 = vpop.f32.mrb[6].mxu0  ;;  %v5300_v18 = vpop.permute.xlu1 %1981 }
 0x2d3   : > { %v1341_v41 = vadd.f32 %v1340_v45, %v1195_v63  ;;  %v1342_v42 = vpop.f32.mrb[7].mxu0  ;;  %v1345_v34 = vmax.f32 %v1337_v43, 0.0 }
 0x2d4   : > { %v1343_v26 = vadd.f32 %v1342_v42, %v1195_v63  ;;  %v1346_v7 = vmax.f32 %v1339_v33, 0.0 }
 0x2d5   : > { %v1347_v38 = vmax.f32 %v1341_v41, 0.0  ;;  %913 = vrot.lane.b32.xlu1 %v763_v37, %s4416_s19  ;;  %854 = vrot.lane.b32.xlu0 %v778_v61, %s4423_s26  ;;  %v5306_v53 = vpop.permute.xlu0 %4218 }
 0x2d6   : > { %v1348_v12 = vmax.f32 %v1343_v26, 0.0  ;;  %v5308_v43 = vpop.permute.xlu1 %1992 }
 0x2d7   : > { %v1349_v44 = vpack.c.bf16 %v1347_v38, %v1345_v34 }
 0x2d8   : > { %v1350_v6 = vpack.c.bf16 %v1348_v12, %v1346_v7 }
 0x2d9   : > { %1380 = vrot.lane.b32.xlu0 %v1349_v44, %s4413_s16  ;;  %v1369_v0 = vsel %vm6893_vm12, %v1349_v44, 0  ;;  %v1360_v47 = vsel %vm447_vm15, %v1349_v44, 0  ;;  %v1363_v35 = vsel %vm459_vm4, %v1349_v44, 0  ;;  %v1372_v31 = vsel %vm6900_vm14, %v1349_v44, 0  ;;  %v5316_v33 = vpop.permute.xlu0 %4228 }
 0x2da   : > { %1382 = vrot.lane.b32.xlu1 %v1350_v6, %s4413_s16  ;;  %v1366_v20 = vsel %vm471_vm9, %v1349_v44, 0  ;;  %v1357_v5 = vsel %vm421_vm5, %v1349_v44, 0  ;;  %v1370_v11 = vsel %vm6898_vm13, %v1350_v6, 0  ;;  %v1361_v52 = vsel %vm6901_vm10, %v1350_v6, 0  ;;  %v5318_v45 = vpop.permute.xlu1 %2003 }
 0x2db   : > { %v1373_v30 = vsel %vm6899_vm7, %v1350_v6, 0  ;;  %vm6902_vm14 = vcmp.ne.s16.totalorder %v4568_v24, 0  ;;  %v1358_v58 = vsel %vm422_vm3, %v1350_v6, 0  ;;  %vm6903_vm13 = vcmp.ne.s16.totalorder %v4702_v4, 0 }
 0x2dc   : > { %v1364_v56 = vsel %vm6902_vm14, %v1350_v6, 0  ;;  %v1367_v40 = vsel %vm6903_vm13, %v1350_v6, 0  ;;  %vm6904_vm7 = vcmp.ne.s16.totalorder %v4576_v29, 0 }
 0x2dd   : > { %1408 = vrot.lane.b32.xlu0 %v1349_v44, %s4417_s20  ;;  %v5328_v26 = vpop.permute.xlu0 %4238 }
 0x2de   : > { %1410 = vrot.lane.b32.xlu1 %v1350_v6, %s4417_s20  ;;  %v5330_v37 = vpop.permute.xlu1 %2034 }
 0x2e1   : > { %1436 = vrot.lane.b32.xlu0 %v1349_v44, %s4422_s25  ;;  %v5340_v7 = vpop.permute.xlu0 %2023 }
 0x2e2   : > { %1427 = vrot.lane.b32.xlu1 %v1369_v0, %s4421_s24  ;;  %v5342_v12 = vpop.permute.xlu1 %2043 }
 0x2e5   : > { %1391 = vrot.lane.b32.xlu0 %v1360_v47, %s4418_s21  ;;  %v5354_v47 = vpop.permute.xlu0 %2107 }
 0x2e6   : > { %1438 = vrot.lane.b32.xlu1 %v1350_v6, %s4422_s25 }
 0x2e9   : > { %1402 = vrot.lane.b32.xlu0 %v1363_v35, %s4419_s22  ;;  %v5356_v35 = vpop.permute.xlu1 %2054 }
 0x2ea   : > { %1447 = vrot.lane.b32.xlu1 %v1372_v31, %s4423_s26 }
 0x2ed   : > { %1416 = vrot.lane.b32.xlu0 %v1366_v20, %s4420_s23 }
 0x2ee   : > { %1506 = vrot.lane.b32.xlu1 %v1357_v5, %s4416_s19 }
 0x2f1   : > { %1429 = vrot.lane.b32.xlu0 %v1370_v11, %s4421_s24 }
 0x2f2   : > { %1393 = vrot.lane.b32.xlu1 %v1361_v52, %s4418_s21 }
 0x2f5   : > { %1449 = vrot.lane.b32.xlu0 %v1373_v30, %s4423_s26 }
 0x2f6   : > { %1404 = vrot.lane.b32.xlu1 %v1364_v56, %s4419_s22 }
 0x2f9   : > { %1508 = vrot.lane.b32.xlu0 %v1358_v58, %s4416_s19 }
 0x2fa   : > { %1418 = vrot.lane.b32.xlu1 %v1367_v40, %s4420_s23 }
 0x2fb   : > { %v1939_v15 = vpop.f32.mrb[8].mxu0 }
 0x2fc   : > { %v1940_v57 = vadd.f32 %v1939_v15, %v1793_v10  ;;  %v1941_v2 = vpop.f32.mrb[9].mxu0 }
 0x2fd   : > { %v1942_v9 = vadd.f32 %v1941_v2, %v1793_v10  ;;  %v1943_v46 = vpop.f32.mrb[10].mxu0 }
 0x2fe   : > { %v1944_v39 = vadd.f32 %v1943_v46, %v1798_v19  ;;  %v1945_v22 = vpop.f32.mrb[11].mxu0  ;;  %v1948_v55 = vmax.f32 %v1940_v57, 0.0 }
 0x2ff   : > { %v1946_v60 = vadd.f32 %v1945_v22, %v1798_v19  ;;  %v1949_v16 = vmax.f32 %v1942_v9, 0.0  ;;  %v4205_v19 = vunpack.i.l.bf16 %v5260_v17 }
 0x300   : > { %v1950_v36 = vmax.f32 %v1944_v39, 0.0  ;;  %v4210_v39 = vunpack.i.l.bf16 %v5298_v3 }
 0x301   : > { %v1951_v50 = vmax.f32 %v1946_v60, 0.0 }
 0x302   : > { %v1952_v28 = vpack.c.bf16 %v1950_v36, %v1948_v55 }
 0x303   : > { %v1953_v21 = vpack.c.bf16 %v1951_v50, %v1949_v16 }
 0x304   : > { %1983 = vrot.lane.b32.xlu1 %v1952_v28, %s4413_s16  ;;  %v1969_v8 = vsel %vm471_vm9, %v1952_v28, 0  ;;  %v1963_v63 = vsel %vm447_vm15, %v1952_v28, 0  ;;  %v1966_v41 = vsel %vm459_vm4, %v1952_v28, 0  ;;  %v1960_v42 = vsel %vm421_vm5, %v1952_v28, 0 }
 0x305   : > { %1985 = vrot.lane.b32.xlu0 %v1953_v21, %s4413_s16  ;;  %v1972_v61 = vsel %vm6893_vm12, %v1952_v28, 0  ;;  %v1964_v34 = vsel %vm6901_vm10, %v1953_v21, 0  ;;  %v1975_v38 = vsel %vm6904_vm7, %v1952_v28, 0  ;;  %v1967_v44 = vsel %vm6902_vm14, %v1953_v21, 0 }
 0x306   : > { %v1970_v6 = vsel %vm6903_vm13, %v1953_v21, 0  ;;  %vm6905_vm10 = vcmp.ne.s16.totalorder %v4632_v51, 0  ;;  %v1961_v31 = vsel %vm422_vm3, %v1953_v21, 0  ;;  %vm6906_vm7 = vcmp.ne.s16.totalorder %v4645_v54, 0 }
 0x307   : > { %v1973_v0 = vsel %vm6905_vm10, %v1953_v21, 0  ;;  %v1976_v20 = vsel %vm6906_vm7, %v1953_v21, 0  ;;  %vm6907_vm14 = vcmask 900096   ;;  %vm6909_vm10 = vcmask 785408  }
 0x308   : > { %2011 = vrot.lane.b32.xlu1 %v1952_v28, %s4417_s20  ;;  %vm6908_vm13 = vmmov %vm6907_vm14 }
 0x309   : > { %2013 = vrot.lane.b32.xlu0 %v1953_v21, %s4417_s20  ;;  %vm6910_vm7 = vmmov %vm6909_vm10 }
 0x30c   : > { %2039 = vrot.lane.b32.xlu1 %v1952_v28, %s4422_s25  ;;  %v4215_v28 = vunpack.i.l.bf16 %v5279_v49 }
 0x30d   : > { %2019 = vrot.lane.b32.xlu0 %v1969_v8, %s4420_s23 }
 0x310   : > { %1994 = vrot.lane.b32.xlu1 %v1963_v63, %s4418_s21 }
 0x311   : > { %2041 = vrot.lane.b32.xlu0 %v1953_v21, %s4422_s25  ;;  %v4240_v21 = vunpack.i.l.bf16 %v5328_v26 }
 0x314   : > { %2005 = vrot.lane.b32.xlu1 %v1966_v41, %s4419_s22 }
 0x315   : > { %2109 = vrot.lane.b32.xlu0 %v1960_v42, %s4416_s19 }
 0x318   : > { %2030 = vrot.lane.b32.xlu1 %v1972_v61, %s4421_s24 }
 0x319   : > { %1996 = vrot.lane.b32.xlu0 %v1964_v34, %s4418_s21  ;;  %v4230_v34 = vunpack.i.l.bf16 %v5316_v33 }
 0x31c   : > { %2050 = vrot.lane.b32.xlu1 %v1975_v38, %s4423_s26 }
 0x31d   : > { %2007 = vrot.lane.b32.xlu0 %v1967_v44, %s4419_s22 }
 0x320   : > { %2021 = vrot.lane.b32.xlu1 %v1970_v6, %s4420_s23 }
 0x321   : > { %2032 = vrot.lane.b32.xlu0 %v1973_v0, %s4421_s24 }
 0x324   : > { %2111 = vrot.lane.b32.xlu1 %v1961_v31, %s4416_s19 }
 0x325   : > { %2052 = vrot.lane.b32.xlu0 %v1976_v20, %s4423_s26 }
 0x327   : > { %v814_v5 = vpop.permute.xlu0 %813  ;;  %v786_v11 = vpop.permute.xlu1 %785 }
 0x328   : > { %v789_v52 = vsel %vm456_vm8, %v4205_v19, %v786_v11 }
 0x329   : > { %933 = vrot.lane.b32.xlu0 %v814_v5, %s4416_s19  ;;  %915 = vrot.lane.b32.xlu1 %v789_v52, %s4416_s19  ;;  %v4220_v52 = vunpack.i.l.bf16 %v5306_v53 }
 0x32b   : > { %v842_v30 = vpop.permute.xlu0 %841  ;;  %v808_v56 = vpop.permute.xlu1 %807 }
 0x32c   : > { %v811_v42 = vsel %vm533_vm1, %v4215_v28, %v808_v56  ;;  %v4206_v28 = vunpack.i.h.bf16 %v5260_v17 }
 0x32d   : > { %951 = vrot.lane.b32.xlu0 %v842_v30, %s4416_s19 }
 0x32f   : > { %v788_v58 = vpop.permute.xlu0 %787  ;;  %v816_v40 = vpop.permute.xlu1 %815 }
 0x330   : > { %937 = vrot.lane.b32.xlu1 %v816_v40, %s4416_s19  ;;  %v790_v36 = vsel %vm456_vm8, %v786_v11, %v788_v58  ;;  %v817_v41 = vsel %vm418_vm6, %v814_v5, %v816_v40 }
 0x331   : > { %919 = vrot.lane.b32.xlu0 %v788_v58, %s4416_s19 }
 0x333   : > { %v797_v10 = vpop.permute.xlu0 %796  ;;  %v833_v15 = vpop.permute.xlu1 %832 }
 0x334   : > { %v800_v55 = vsel %vm521_vm2, %v4210_v39, %v797_v10 }
 0x337   : > { %v822_v57 = vpop.permute.xlu0 %821  ;;  %v844_v2 = vpop.permute.xlu1 %843 }
 0x338   : > { %939 = vrot.lane.b32.xlu0 %v822_v57, %s4416_s19  ;;  %v847_v6 = vsel %vm572_vm11, %v842_v30, %v844_v2  ;;  %v848_v0 = vsel %vm572_vm11, %v844_v2, %v4230_v34 }
 0x33b   : > { %v912_v9 = vpop.permute.xlu0 %911  ;;  %v853_v46 = vpop.permute.xlu1 %852 }
 0x33c   : > { %945 = vrot.lane.b32.xlu0 %v833_v15, %s4416_s19  ;;  %957 = vrot.lane.b32.xlu1 %v853_v46, %s4416_s19  ;;  %v963_v38 = vsel %vm493_vm0, %v4240_v21, %v912_v9 }
 0x33f   : > { %v810_v22 = vpop.permute.xlu0 %809  ;;  %v799_v60 = vpop.permute.xlu1 %798 }
 0x340   : > { %921 = vrot.lane.b32.xlu0 %v800_v55, %s4416_s19  ;;  %917 = vrot.lane.b32.xlu1 %v790_v36, %s4416_s19  ;;  %v801_v19 = vsel %vm521_vm2, %v797_v10, %v799_v60  ;;  %v812_v5 = vsel %vm533_vm1, %v808_v56, %v810_v22  ;;  %v4225_v56 = vunpack.i.l.bf16 %v5288_v13 }
 0x343   : > { %v835_v16 = vpop.permute.xlu0 %834  ;;  %v824_v50 = vpop.permute.xlu1 %823 }
 0x344   : > { %931 = vrot.lane.b32.xlu0 %v810_v22, %s4416_s19  ;;  %925 = vrot.lane.b32.xlu1 %v799_v60, %s4416_s19  ;;  %v827_v58 = vsel %vm6907_vm14, %v822_v57, %v824_v50  ;;  %v828_v40 = vsel %vm6908_vm13, %v824_v50, %v4220_v52  ;;  %v839_v39 = vsel %vm6910_vm7, %v835_v16, %v4225_v56  ;;  %v4235_v57 = vunpack.i.l.bf16 %v5296_v14 }
 0x345   : > { %vm6911_vm14 = vcmask 769024   ;;  %vm6914_vm7 = vcmask 900096  }
 0x346   : > { %vm6912_vm13 = vmmov %vm6911_vm14 }
 0x347   : > { %v855_v8 = vpop.permute.xlu0 %854  ;;  %v914_v63 = vpop.permute.xlu1 %913 }
 0x348   : > { %935 = vrot.lane.b32.xlu0 %v817_v41, %s4416_s19  ;;  %927 = vrot.lane.b32.xlu1 %v811_v42, %s4416_s19  ;;  %v964_v61 = vsel %vm493_vm0, %v912_v9, %v914_v63  ;;  %v838_v9 = vsel %vm6909_vm10, %v833_v15, %v835_v16  ;;  %v859_v55 = vsel %vm6911_vm14, %v855_v8, %v4235_v57  ;;  %v5418_v15 = vld [vmem:[%s6876_s3 + $0x4] ss:$8 sps:$4 sm:$0xff]   ;;  %vm6913_vm10 = vcmask 130048  }
 0x349   : > { %1005 = vmatprep.subr.bf16.mxu1 %v964_v61  ;;  %v858_v36 = vsel %vm6912_vm13, %v853_v46, %v855_v8  ;;  %4041 = vmatprep.mubr.msk.bf16.mxu1 %vm6913_vm10, %v5418_v15  ;;  %v4211_v61 = vunpack.i.h.bf16 %v5298_v3  ;;  %v4231_v3 = vunpack.i.h.bf16 %v5316_v33  ;;  %vm6915_vm14 = vcmask 785408   ;;  %vm6916_vm13 = vmmov %vm6914_vm7 }
 0x34a   : > { %1006 = vmatpush1.bf16.msra.mxu1 %v963_v38  ;;  %vm6917_vm10 = vcmask 769024  }
 0x34b   : > { %v1381_v44 = vpop.permute.xlu0 %1380 }
 0x34c   : > { %953 = vrot.lane.b32.xlu0 %v847_v6, %s4416_s19  ;;  %v1383_v31 = vpop.permute.xlu1 %1382  ;;  %955 = vrot.lane.b32.xlu1 %v848_v0, %s4416_s19  ;;  %v1384_v46 = vsel %vm456_vm8, %v4206_v28, %v1381_v44  ;;  %v4216_v0 = vunpack.i.h.bf16 %v5279_v49  ;;  %v4221_v49 = vunpack.i.h.bf16 %v5306_v53 }
 0x34d   : > { %v1385_v42 = vsel %vm456_vm8, %v1381_v44, %v1383_v31 }
 0x34f   : > { %v1409_v20 = vpop.permute.xlu0 %1408 }
 0x350   : > { %923 = vrot.lane.b32.xlu0 %v801_v19, %s4416_s19  ;;  %v1411_v11 = vpop.permute.xlu1 %1410  ;;  %929 = vrot.lane.b32.xlu1 %v812_v5, %s4416_s19 }
 0x353   : > { %v1437_v30 = vpop.permute.xlu0 %1436 }
 0x354   : > { %941 = vrot.lane.b32.xlu0 %v827_v58, %s4416_s19  ;;  %v5402_v2 = vpop.permute.xlu1 %1427  ;;  %943 = vrot.lane.b32.xlu1 %v828_v40, %s4416_s19 }
 0x357   : > { %v1392_v10 = vpop.permute.xlu0 %1391 }
 0x358   : > { %947 = vrot.lane.b32.xlu0 %v838_v9, %s4416_s19  ;;  %v1439_v22 = vpop.permute.xlu1 %1438  ;;  %949 = vrot.lane.b32.xlu1 %v839_v39, %s4416_s19  ;;  %v1395_v6 = vsel %vm521_vm2, %v4211_v61, %v1392_v10 }
 0x359   : > { %v1442_v40 = vsel %vm572_vm11, %v1437_v30, %v1439_v22  ;;  %v1443_v56 = vsel %vm572_vm11, %v1439_v22, %v4231_v3 }
 0x35b   : > { %v1403_v60 = vpop.permute.xlu0 %1402 }
 0x35c   : > { %v1448_v50 = vpop.permute.xlu1 %1447  ;;  %961 = vrot.lane.b32.xlu0 %v859_v55, %s4416_s19  ;;  %959 = vrot.lane.b32.xlu1 %v858_v36, %s4416_s19  ;;  %v1406_v44 = vsel %vm533_vm1, %v4216_v0, %v1403_v60 }
 0x35f   : > { %v1417_v21 = vpop.permute.xlu0 %1416 }
 0x360   : > { %v5420_v16 = vpop.permute.xlu1 %1506  ;;  %1546 = vrot.lane.b32.xlu0 %v1437_v30, %s4416_s19  ;;  %1528 = vrot.lane.b32.xlu1 %v1409_v20, %s4416_s19 }
 0x363   : > { %v1430_v63 = vpop.permute.xlu0 %1429 }
 0x364   : > { %1510 = vrot.lane.b32.xlu0 %v1384_v46, %s4416_s19  ;;  %1514 = vrot.lane.b32.xlu1 %v1383_v31, %s4416_s19  ;;  %v1394_v8 = vpop.permute.xlu1 %1393  ;;  %v1412_v31 = vsel %vm418_vm6, %v1409_v20, %v1411_v11  ;;  %v1433_v57 = vsel %vm6915_vm14, %v5402_v2, %v1430_v63 }
 0x365   : > { %v1396_v9 = vsel %vm521_vm2, %v1392_v10, %v1394_v8 }
 0x367   : > { %v1450_v17 = vpop.permute.xlu0 %1449 }
 0x368   : > { %1532 = vrot.lane.b32.xlu0 %v1411_v11, %s4416_s19  ;;  %1540 = vrot.lane.b32.xlu1 %v5402_v2, %s4416_s19  ;;  %v1405_v41 = vpop.permute.xlu1 %1404  ;;  %v1453_v55 = vsel %vm6917_vm10, %v1448_v50, %v1450_v17 }
 0x369   : > { %v1407_v22 = vsel %vm533_vm1, %v1403_v60, %v1405_v41  ;;  %v4226_v60 = vunpack.i.h.bf16 %v5288_v13 }
 0x36b   : > { %v5439_v38 = vpop.permute.xlu0 %1508 }
 0x36c   : > { %1534 = vrot.lane.b32.xlu0 %v1417_v21, %s4416_s19  ;;  %1552 = vrot.lane.b32.xlu1 %v1448_v50, %s4416_s19  ;;  %v1419_v34 = vpop.permute.xlu1 %1418 }
 0x36d   : > { %v1423_v33 = vsel %vm6914_vm7, %v1419_v34, %v4221_v49  ;;  %v1422_v10 = vsel %vm6916_vm13, %v1417_v21, %v1419_v34  ;;  %vm6918_vm7 = vmmov %vm6915_vm14  ;;  %v4236_v21 = vunpack.i.h.bf16 %v5296_v14 }
 0x36e   : > { %v1434_v2 = vsel %vm6918_vm7, %v1430_v63, %v4226_v60  ;;  %vm6919_vm14 = vmmov %vm6917_vm10 }
 0x36f   : > { %vm6920_vm10 = vmmov %vm6916_vm13 }
 0x370   : > { %1512 = vrot.lane.b32.xlu0 %v1385_v42, %s4416_s19  ;;  %1520 = vrot.lane.b32.xlu1 %v1394_v8, %s4416_s19 }
 0x374   : > { %1516 = vrot.lane.b32.xlu0 %v1395_v6, %s4416_s19  ;;  %1526 = vrot.lane.b32.xlu1 %v1405_v41, %s4416_s19  ;;  %v1454_v41 = vsel %vm6919_vm14, %v1450_v17, %v4236_v21  ;;  %vm6921_vm14 = vmmov %vm6918_vm7 }
 0x376   : > { %v1984_v19 = vpop.permute.xlu1 %1983 }
 0x377   : > { %v1986_v5 = vpop.permute.xlu0 %1985  ;;  %v1987_v46 = vsel %vm456_vm8, %v5300_v18, %v1984_v19 }
 0x378   : > { %1522 = vrot.lane.b32.xlu0 %v1406_v44, %s4416_s19  ;;  %1530 = vrot.lane.b32.xlu1 %v1412_v31, %s4416_s19  ;;  %v1988_v63 = vsel %vm456_vm8, %v1984_v19, %v1986_v5 }
 0x37a   : > { %v5450_v52 = vpop.permute.xlu1 %2011 }
 0x37b   : > { %v2014_v58 = vpop.permute.xlu0 %2013 }
 0x37c   : > { %1548 = vrot.lane.b32.xlu0 %v1442_v40, %s4416_s19  ;;  %1550 = vrot.lane.b32.xlu1 %v1443_v56, %s4416_s19  ;;  %v2015_v6 = vsel %vm418_vm6, %v5450_v52, %v2014_v58 }
 0x37e   : > { %v5457_v20 = vpop.permute.xlu1 %2039 }
 0x37f   : > { %v2020_v11 = vpop.permute.xlu0 %2019 }
 0x380   : > { %1518 = vrot.lane.b32.xlu0 %v1396_v9, %s4416_s19  ;;  %1538 = vrot.lane.b32.xlu1 %v1423_v33, %s4416_s19 }
 0x382   : > { %v1995_v30 = vpop.permute.xlu1 %1994 }
 0x383   : > { %v5463_v39 = vpop.permute.xlu0 %2041  ;;  %v1998_v14 = vsel %vm521_vm2, %v5308_v43, %v1995_v30 }
 0x384   : > { %1524 = vrot.lane.b32.xlu0 %v1407_v22, %s4416_s19  ;;  %1542 = vrot.lane.b32.xlu1 %v1433_v57, %s4416_s19  ;;  %v2045_v31 = vsel %vm572_vm11, %v5457_v20, %v5463_v39 }
 0x386   : > { %v2006_v36 = vpop.permute.xlu1 %2005 }
 0x387   : > { %v5470_v53 = vpop.permute.xlu0 %2109  ;;  %v2009_v34 = vsel %vm533_vm1, %v5318_v45, %v2006_v36 }
 0x388   : > { %1536 = vrot.lane.b32.xlu0 %v1422_v10, %s4416_s19  ;;  %1554 = vrot.lane.b32.xlu1 %v1453_v55, %s4416_s19  ;;  %v2046_v10 = vsel %vm572_vm11, %v5463_v39, %v5342_v12 }
 0x38a   : > { %v2031_v50 = vpop.permute.xlu1 %2030 }
 0x38b   : > { %v1997_v28 = vpop.permute.xlu0 %1996 }
 0x38c   : > { %1544 = vrot.lane.b32.xlu0 %v1434_v2, %s4416_s19  ;;  %2113 = vrot.lane.b32.xlu1 %v1987_v46, %s4416_s19  ;;  %v1999_v19 = vsel %vm521_vm2, %v1995_v30, %v1997_v28 }
 0x38e   : > { %v2051_v42 = vpop.permute.xlu1 %2050 }
 0x38f   : > { %v2008_v8 = vpop.permute.xlu0 %2007 }
 0x390   : > { %1556 = vrot.lane.b32.xlu0 %v1454_v41, %s4416_s19  ;;  %2135 = vrot.lane.b32.xlu1 %v2014_v58, %s4416_s19 }
 0x392   : > { %v2022_v17 = vpop.permute.xlu1 %2021 }
 0x393   : > { %v2033_v13 = vpop.permute.xlu0 %2032  ;;  %v2025_v40 = vsel %vm6916_vm13, %v2020_v11, %v2022_v17  ;;  %v2026_v9 = vsel %vm6920_vm10, %v2022_v17, %v5340_v7  ;;  %vm6922_vm13 = vcmask 769024  }
 0x394   : > { %2117 = vrot.lane.b32.xlu0 %v1986_v5, %s4416_s19  ;;  %2115 = vrot.lane.b32.xlu1 %v1988_v63, %s4416_s19  ;;  %v2010_v5 = vsel %vm533_vm1, %v2006_v36, %v2008_v8  ;;  %v2036_v30 = vsel %vm6921_vm14, %v2031_v50, %v2033_v13  ;;  %v864_v36 = vld [vmem:[%s6877_s4] sm:$0xff]  ;;  %vm6923_vm10 = vmmov %vm6922_vm13 }
 0x396   : > { %v5501_v0 = vpop.permute.xlu1 %2111 }
 0x397   : > { %v2053_v18 = vpop.permute.xlu0 %2052 }
 0x398   : > { %2119 = vrot.lane.b32.xlu0 %v1998_v14, %s4416_s19  ;;  %2123 = vrot.lane.b32.xlu1 %v1997_v28, %s4416_s19  ;;  %v2057_v55 = vsel %vm6922_vm13, %v2053_v18, %v5356_v35  ;;  %v2056_v28 = vsel %vm6923_vm10, %v2051_v42, %v2053_v18  ;;  %v865_v35 = vld [vmem:[%s6877_s4 + $0x8] sm:$0xff] }
 0x39b   : > { %v5493_v61 = vpop.permute.xlu0 %933  ;;  %v916_v45 = vpop.permute.xlu1 %915 }
 0x39c   : > { %2129 = vrot.lane.b32.xlu0 %v2008_v8, %s4416_s19  ;;  %2125 = vrot.lane.b32.xlu1 %v2009_v34, %s4416_s19  ;;  %v866_v8 = vld [vmem:[%s6877_s4 + $0x10] sm:$0xff] }
 0x39f   : > { %v5503_v43 = vpop.permute.xlu0 %951 }
 0x3a0   : > { %2133 = vrot.lane.b32.xlu0 %v2015_v6, %s4416_s19  ;;  %2137 = vrot.lane.b32.xlu1 %v2020_v11, %s4416_s19  ;;  %v867_v6 = vld [vmem:[%s6877_s4 + $0x18] sm:$0xff] }
 0x3a2   : > { %v938_v3 = vpop.permute.xlu1 %937 }
 0x3a3   : > { %v920_v44 = vpop.permute.xlu0 %919 }
 0x3a4   : > { %2121 = vrot.lane.b32.xlu0 %v1999_v19, %s4416_s19  ;;  %2127 = vrot.lane.b32.xlu1 %v2010_v5, %s4416_s19 }
 0x3a8   : > { %2131 = vrot.lane.b32.xlu0 %v5450_v52, %s4416_s19  ;;  %2151 = vrot.lane.b32.xlu1 %v2045_v31, %s4416_s19  ;;  %v2037_v52 = vsel %vm6918_vm7, %v2033_v13, %v5330_v37  ;;  %vm6924_vm7 = vcmask 130048  }
 0x3a9   : > { %vm6925_vm14 = vmmov %vm6924_vm7 }
 0x3aa   : > { %v5517_v58 = vpop.permute.xlu0 %939  ;;  %vm6926_vm13 = vmmov %vm6924_vm7 }
 0x3ab   : > { %vm6927_vm10 = vmmov %vm6924_vm7 }
 0x3ac   : > { %2143 = vrot.lane.b32.xlu0 %v2031_v50, %s4416_s19  ;;  %2139 = vrot.lane.b32.xlu1 %v2025_v40, %s4416_s19 }
 0x3ae   : > { %v5522_v56 = vpop.permute.xlu0 %945  ;;  %v5524_v49 = vpop.permute.xlu1 %957 }
 0x3b0   : > { %2141 = vrot.lane.b32.xlu0 %v2026_v9, %s4416_s19  ;;  %2147 = vrot.lane.b32.xlu1 %v2037_v52, %s4416_s19 }
 0x3b2   : > { %v922_v33 = vpop.permute.xlu0 %921  ;;  %v918_v11 = vpop.permute.xlu1 %917 }
 0x3b3   : > { %v966_v22 = vsel %vm493_vm0, %v918_v11, %v920_v44  ;;  %v965_v57 = vsel %vm493_vm0, %v916_v45, %v918_v11 }
 0x3b4   : > { %2145 = vrot.lane.b32.xlu0 %v2036_v30, %s4416_s19  ;;  %2149 = vrot.lane.b32.xlu1 %v5457_v20, %s4416_s19 }
 0x3b5   : > { %1007 = vmatprep.subr.bf16.mxu1 %v966_v22 }
 0x3b6   : > { %1008 = vmatpush1.bf16.msra.mxu1 %v965_v57  ;;  %v932_v37 = vpop.permute.xlu0 %931  ;;  %v926_v7 = vpop.permute.xlu1 %925 }
 0x3b8   : > { %2153 = vrot.lane.b32.xlu0 %v2046_v10, %s4416_s19  ;;  %2159 = vrot.lane.b32.xlu1 %v2057_v55, %s4416_s19  ;;  %v5594_v10 = vld [vmem:[%s6876_s3 + $0x14] ss:$8 sps:$4 sm:$0xff]  }
 0x3ba   : > { %v936_v20 = vpop.permute.xlu0 %935  ;;  %v928_v60 = vpop.permute.xlu1 %927 }
 0x3bb   : > { %v972_v14 = vsel %vm493_vm0, %v936_v20, %v938_v3  ;;  %v971_v34 = vsel %vm493_vm0, %v5493_v61, %v936_v20 }
 0x3bc   : > { %2157 = vrot.lane.b32.xlu0 %v2056_v28, %s4416_s19  ;;  %870 = vperm.xlu1 %4201, %v864_v36  }
 0x3be   : > { %v954_v2 = vpop.permute.xlu0 %953  ;;  %v956_v12 = vpop.permute.xlu1 %955 }
 0x3bf   : > { %v978_v52 = vsel %vm493_vm0, %v954_v2, %v956_v12 }
 0x3c0   : > { %2155 = vrot.lane.b32.xlu0 %v2051_v42, %s4416_s19  ;;  %1465 = vperm.xlu1 %4201, %v864_v36  }
 0x3c2   : > { %v924_v39 = vpop.permute.xlu0 %923  ;;  %v930_v46 = vpop.permute.xlu1 %929 }
 0x3c3   : > { %v968_v21 = vsel %vm493_vm0, %v924_v39, %v926_v7  ;;  %v967_v50 = vsel %vm493_vm0, %v922_v33, %v924_v39  ;;  %v970_v13 = vsel %vm493_vm0, %v930_v46, %v932_v37  ;;  %v969_v42 = vsel %vm493_vm0, %v928_v60, %v930_v46 }
 0x3c4   : > { %875 = vperm.xlu0 %4200, %v865_v35   ;;  %2068 = vperm.xlu1 %4201, %v864_v36  }
 0x3c5   : > { %1009 = vmatprep.subr.bf16.mxu1 %v968_v21 }
 0x3c6   : > { %1010 = vmatpush1.bf16.msra.mxu1 %v967_v50  ;;  %v942_v41 = vpop.permute.xlu0 %941  ;;  %v944_v63 = vpop.permute.xlu1 %943 }
 0x3c7   : > { %1011 = vmatprep.subr.bf16.mxu1 %v970_v13  ;;  %v974_v5 = vsel %vm493_vm0, %v942_v41, %v944_v63  ;;  %v973_v44 = vsel %vm493_vm0, %v5517_v58, %v942_v41  ;;  %v977_v58 = vsel %vm493_vm0, %v5503_v43, %v954_v2  ;;  %v1559_v43 = vsel %vm493_vm0, %v5420_v16, %v5439_v38 }
 0x3c8   : > { %1470 = vperm.xlu0 %4200, %v865_v35   ;;  %880 = vperm.xlu1 %4201, %v866_v8  }
 0x3ca   : > { %1012 = vmatpush1.bf16.msra.mxu1 %v969_v42  ;;  %v948_v18 = vpop.permute.xlu0 %947  ;;  %v950_v17 = vpop.permute.xlu1 %949 }
 0x3cb   : > { %1013 = vmatprep.subr.bf16.mxu1 %v972_v14  ;;  %v976_v61 = vsel %vm493_vm0, %v948_v18, %v950_v17  ;;  %v975_v40 = vsel %vm493_vm0, %v5522_v56, %v948_v18  ;;  %v5584_v56 = vld [vmem:[%s6876_s3] ss:$8 sps:$4 sm:$0xff]  }
 0x3cc   : > { %2073 = vperm.xlu0 %4200, %v865_v35   ;;  %1475 = vperm.xlu1 %4201, %v866_v8  }
 0x3ce   : > { %1014 = vmatpush1.bf16.msra.mxu1 %v971_v34  ;;  %v962_v19 = vpop.permute.xlu0 %961  ;;  %v960_v45 = vpop.permute.xlu1 %959 }
 0x3cf   : > { %1015 = vmatprep.subr.bf16.mxu1 %v974_v5  ;;  %v980_v30 = vsel %vm493_vm0, %v960_v45, %v962_v19  ;;  %v979_v57 = vsel %vm493_vm0, %v5524_v49, %v960_v45  ;;  %v4241_v49 = vunpack.i.h.bf16 %v5328_v26  ;;  %v5607_v26 = vld [vmem:[%s6876_s3 + $0x10] ss:$8 sps:$4 sm:$0xff]  }
 0x3d0   : > { %885 = vperm.xlu0 %4200, %v867_v6   ;;  %2078 = vperm.xlu1 %4201, %v866_v8  }
 0x3d1   : > { %v1558_v55 = vsel %vm493_vm0, %v4241_v49, %v5420_v16 }
 0x3d2   : > { %1016 = vmatpush1.bf16.msra.mxu1 %v973_v44  ;;  %v5570_v31 = vpop.permute.xlu0 %1546  ;;  %v1529_v3 = vpop.permute.xlu1 %1528 }
 0x3d3   : > { %1017 = vmatprep.subr.bf16.mxu1 %v976_v61 }
 0x3d4   : > { %1480 = vperm.xlu0 %4200, %v867_v6   ;;  %4243 = vrot.lane.b32.xlu1 %v4411_v1, %s4413_s16 }
 0x3d6   : > { %1018 = vmatpush1.bf16.msra.mxu1 %v975_v40  ;;  %v1511_v9 = vpop.permute.xlu0 %1510  ;;  %v1515_v33 = vpop.permute.xlu1 %1514 }
 0x3d7   : > { %1019 = vmatprep.subr.bf16.mxu1 %v978_v52 }
 0x3d8   : > { %2083 = vperm.xlu0 %4200, %v867_v6   ;;  %4253 = vrot.lane.b32.xlu1 %v4411_v1, %s4419_s22 }
 0x3da   : > { %1020 = vmatpush1.bf16.msra.mxu1 %v977_v58  ;;  %v1533_v11 = vpop.permute.xlu0 %1532  ;;  %v1541_v22 = vpop.permute.xlu1 %1540 }
 0x3db   : > { %1021 = vmatprep.subr.bf16.mxu1 %v980_v30 }
 0x3dc   : > { %4248 = vrot.lane.b32.xlu0 %v4411_v1, %s4418_s21  ;;  %4263 = vrot.lane.b32.xlu1 %v4411_v1, %s4421_s24 }
 0x3de   : > { %1022 = vmatpush1.bf16.msra.mxu1 %v979_v57  ;;  %v1535_v37 = vpop.permute.xlu0 %1534  ;;  %v5589_v7 = vpop.permute.xlu1 %1552 }
 0x3df   : > { %1600 = vmatprep.subr.bf16.mxu1 %v1559_v43 }
 0x3e0   : > { %4258 = vrot.lane.b32.xlu0 %v4411_v1, %s4420_s23  ;;  %4273 = vrot.lane.b32.xlu1 %v4411_v1, %s4416_s19 }
 0x3e1   : > { %1038 = vmatmul.mubr.bf16.vlgmr.msra.gmra.mrb[0].mxu1 %v5584_v56 }
 0x3e2   : > { %1601 = vmatpush1.bf16.msra.mxu1 %v1558_v55  ;;  %v1513_v36 = vpop.permute.xlu0 %1512  ;;  %v1521_v20 = vpop.permute.xlu1 %1520  ;;  %4042 = vmatprep.mubr.msk.bf16.mxu1 %vm6924_vm7, %v5594_v10 }
 0x3e3   : > { %v1561_v38 = vsel %vm493_vm0, %v1513_v36, %v1515_v33  ;;  %v1560_v60 = vsel %vm493_vm0, %v1511_v9, %v1513_v36 }
 0x3e4   : > { %1602 = vmatprep.subr.bf16.mxu1 %v1561_v38  ;;  %4268 = vrot.lane.b32.xlu0 %v4411_v1, %s4422_s25 }
 0x3e6   : > { %1603 = vmatpush1.bf16.msra.mxu1 %v1560_v60  ;;  %v1517_v28 = vpop.permute.xlu0 %1516  ;;  %v1527_v2 = vpop.permute.xlu1 %1526 }
 0x3e9   : > { %1048 = vmatmul.mubr.bf16.gmra.mrb[4].mxu1 %v5607_v26 }
 0x3ea   : > { %v1523_v16 = vpop.permute.xlu0 %1522  ;;  %v1531_v12 = vpop.permute.xlu1 %1530  ;;  %4054 = vmatprep.mubr.msk.bf16.mxu1 %vm6925_vm14, %v5418_v15  ;;  %vm6928_vm14 = vcmp.ne.s16.totalorder %v4568_v24, 0 }
 0x3eb   : > { %v1567_v18 = vsel %vm493_vm0, %v1531_v12, %v1533_v11  ;;  %v1566_v34 = vsel %vm493_vm0, %v1529_v3, %v1531_v12 }
 0x3ee   : > { %v1549_v35 = vpop.permute.xlu0 %1548  ;;  %v1551_v39 = vpop.permute.xlu1 %1550 }
 0x3ef   : > { %v1573_v52 = vsel %vm493_vm0, %v1549_v35, %v1551_v39  ;;  %v1572_v58 = vsel %vm493_vm0, %v5570_v31, %v1549_v35  ;;  %v2161_v31 = vsel %vm493_vm0, %v5354_v47, %v5470_v53 }
 0x3f2   : > { %v1519_v46 = vpop.permute.xlu0 %1518  ;;  %v1539_v21 = vpop.permute.xlu1 %1538 }
 0x3f3   : > { %v1563_v50 = vsel %vm493_vm0, %v1519_v46, %v1521_v20  ;;  %v1562_v8 = vsel %vm493_vm0, %v1517_v28, %v1519_v46 }
 0x3f4   : > { %1604 = vmatprep.subr.bf16.mxu1 %v1563_v50 }
 0x3f5   : > { %1605 = vmatpush1.bf16.msra.mxu1 %v1562_v8 }
 0x3f6   : > { %v1525_v41 = vpop.permute.xlu0 %1524  ;;  %v1543_v13 = vpop.permute.xlu1 %1542 }
 0x3f7   : > { %v1565_v63 = vsel %vm493_vm0, %v1525_v41, %v1527_v2  ;;  %v1564_v42 = vsel %vm493_vm0, %v1523_v16, %v1525_v41  ;;  %v1570_v9 = vsel %vm493_vm0, %v1541_v22, %v1543_v13  ;;  %v2162_v22 = vsel %vm493_vm0, %v5470_v53, %v5501_v0 }
 0x3f8   : > { %1606 = vmatprep.subr.bf16.mxu1 %v1565_v63 }
 0x3f9   : > { %1607 = vmatpush1.bf16.msra.mxu1 %v1564_v42 }
 0x3fa   : > { %v1537_v14 = vpop.permute.xlu0 %1536  ;;  %1608 = vmatprep.subr.bf16.mxu1 %v1567_v18  ;;  %v1555_v17 = vpop.permute.xlu1 %1554 }
 0x3fb   : > { %v1569_v6 = vsel %vm493_vm0, %v1537_v14, %v1539_v21  ;;  %v1568_v45 = vsel %vm493_vm0, %v1535_v37, %v1537_v14  ;;  %v1574_v37 = vsel %vm493_vm0, %v5589_v7, %v1555_v17 }
 0x3fd   : > { %1609 = vmatpush1.bf16.msra.mxu1 %v1566_v34 }
 0x3fe   : > { %v1545_v19 = vpop.permute.xlu0 %1544  ;;  %1610 = vmatprep.subr.bf16.mxu1 %v1569_v6  ;;  %v2114_v5 = vpop.permute.xlu1 %2113 }
 0x3ff   : > { %v1571_v44 = vsel %vm493_vm0, %v1543_v13, %v1545_v19 }
 0x401   : > { %1611 = vmatpush1.bf16.msra.mxu1 %v1568_v45 }
 0x402   : > { %v1557_v61 = vpop.permute.xlu0 %1556  ;;  %1612 = vmatprep.subr.bf16.mxu1 %v1571_v44  ;;  %v2136_v40 = vpop.permute.xlu1 %2135 }
 0x403   : > { %v1575_v11 = vsel %vm493_vm0, %v1555_v17, %v1557_v61 }
 0x405   : > { %1613 = vmatpush1.bf16.msra.mxu1 %v1570_v9 }
 0x406   : > { %v2118_v3 = vpop.permute.xlu0 %2117  ;;  %1614 = vmatprep.subr.bf16.mxu1 %v1573_v52  ;;  %v2116_v33 = vpop.permute.xlu1 %2115 }
 0x407   : > { %v2164_v55 = vsel %vm493_vm0, %v2116_v33, %v2118_v3  ;;  %v2163_v0 = vsel %vm493_vm0, %v2114_v5, %v2116_v33 }
 0x409   : > { %1615 = vmatpush1.bf16.msra.mxu1 %v1572_v58 }
 0x40a   : > { %v2120_v30 = vpop.permute.xlu0 %2119  ;;  %1616 = vmatprep.subr.bf16.mxu1 %v1575_v11  ;;  %v2124_v57 = vpop.permute.xlu1 %2123 }
 0x40d   : > { %1617 = vmatpush1.bf16.msra.mxu1 %v1574_v37 }
 0x40e   : > { %v2130_v43 = vpop.permute.xlu0 %2129  ;;  %2203 = vmatprep.subr.bf16.mxu1 %v2162_v22  ;;  %v2126_v49 = vpop.permute.xlu1 %2125 }
 0x410   : > { %1633 = vmatmul.mubr.bf16.vlgmr.msra.gmra.mrb[8].mxu1 %v5584_v56 }
 0x411   : > { %2204 = vmatpush1.bf16.msra.mxu1 %v2161_v31  ;;  %4055 = vmatprep.mubr.msk.bf16.mxu1 %vm6926_vm13, %v5594_v10  ;;  %vm6929_vm13 = vcmp.ne.s16.totalorder %v4632_v51, 0 }
 0x412   : > { %v2134_v7 = vpop.permute.xlu0 %2133  ;;  %2205 = vmatprep.subr.bf16.mxu1 %v2164_v55  ;;  %v2138_v36 = vpop.permute.xlu1 %2137 }
 0x413   : > { %v2170_v12 = vsel %vm493_vm0, %v2134_v7, %v2136_v40 }
 0x415   : > { %2206 = vmatpush1.bf16.msra.mxu1 %v2163_v0 }
 0x416   : > { %v2122_v20 = vpop.permute.xlu0 %2121  ;;  %v2128_v38 = vpop.permute.xlu1 %2127 }
 0x417   : > { %v2166_v60 = vsel %vm493_vm0, %v2122_v20, %v2124_v57  ;;  %v2165_v28 = vsel %vm493_vm0, %v2120_v30, %v2122_v20  ;;  %v2168_v47 = vsel %vm493_vm0, %v2128_v38, %v2130_v43  ;;  %v2167_v16 = vsel %vm493_vm0, %v2126_v49, %v2128_v38 }
 0x418   : > { %1643 = vmatmul.mubr.bf16.gmra.mrb[12].mxu1 %v5607_v26  ;;  %2207 = vmatprep.subr.bf16.mxu1 %v2166_v60 }
 0x419   : > { %2208 = vmatpush1.bf16.msra.mxu1 %v2165_v28  ;;  %4067 = vmatprep.mubr.msk.bf16.mxu1 %vm6927_vm10, %v5418_v15  ;;  %vm6930_vm10 = vcmp.ne.s16.totalorder %v4576_v29, 0 }
 0x41a   : > { %v2132_v53 = vpop.permute.xlu0 %2131  ;;  %2209 = vmatprep.subr.bf16.mxu1 %v2168_v47  ;;  %v2152_v2 = vpop.permute.xlu1 %2151 }
 0x41b   : > { %v2169_v46 = vsel %vm493_vm0, %v2132_v53, %v2134_v7 }
 0x41d   : > { %2210 = vmatpush1.bf16.msra.mxu1 %v2167_v16 }
 0x41e   : > { %v2144_v35 = vpop.permute.xlu0 %2143  ;;  %2211 = vmatprep.subr.bf16.mxu1 %v2170_v12  ;;  %v2140_v39 = vpop.permute.xlu1 %2139 }
 0x41f   : > { %v2171_v15 = vsel %vm493_vm0, %v2138_v36, %v2140_v39 }
 0x421   : > { %2212 = vmatpush1.bf16.msra.mxu1 %v2169_v46 }
 0x422   : > { %v2142_v21 = vpop.permute.xlu0 %2141  ;;  %v2148_v50 = vpop.permute.xlu1 %2147 }
 0x423   : > { %v2172_v8 = vsel %vm493_vm0, %v2140_v39, %v2142_v21 }
 0x424   : > { %2213 = vmatprep.subr.bf16.mxu1 %v2172_v8 }
 0x425   : > { %2214 = vmatpush1.bf16.msra.mxu1 %v2171_v15 }
 0x426   : > { %v2146_v41 = vpop.permute.xlu0 %2145  ;;  %v2150_v42 = vpop.permute.xlu1 %2149 }
 0x427   : > { %v2174_v13 = vsel %vm493_vm0, %v2146_v41, %v2148_v50  ;;  %v2173_v63 = vsel %vm493_vm0, %v2144_v35, %v2146_v41  ;;  %v2175_v17 = vsel %vm493_vm0, %v2150_v42, %v2152_v2 }
 0x428   : > { %2215 = vmatprep.subr.bf16.mxu1 %v2174_v13 }
 0x429   : > { %2216 = vmatpush1.bf16.msra.mxu1 %v2173_v63 }
 0x42a   : > { %v2154_v18 = vpop.permute.xlu0 %2153  ;;  %v2160_v34 = vpop.permute.xlu1 %2159 }
 0x42b   : > { %v2176_v14 = vsel %vm493_vm0, %v2152_v2, %v2154_v18 }
 0x42c   : > { %2217 = vmatprep.subr.bf16.mxu1 %v2176_v14 }
 0x42d   : > { %2218 = vmatpush1.bf16.msra.mxu1 %v2175_v17 }
 0x42e   : > { %v2158_v6 = vpop.permute.xlu0 %2157 }
 0x42f   : > { %v2178_v19 = vsel %vm493_vm0, %v2158_v6, %v2160_v34 }
 0x430   : > { %2219 = vmatprep.subr.bf16.mxu1 %v2178_v19 }
 0x432   : > { %v2156_v5 = vpop.permute.xlu0 %2155 }
 0x433   : > { %v2177_v45 = vsel %vm493_vm0, %v2156_v5, %v2158_v6 }
 0x434   : > { %2220 = vmatpush1.bf16.msra.mxu1 %v2177_v45 }
 0x437   : > { %2236 = vmatmul.mubr.bf16.vlgmr.msra.gmra.mrb[16].mxu1 %v5584_v56 }
 0x438   : > { %4068 = vmatprep.mubr.msk.bf16.mxu1 %vm6924_vm7, %v5594_v10  ;;  %vm6931_vm7 = vcmp.ne.s16.totalorder %v4566_v23, 0 }
 0x43b   : > { %v871_v3 = vpop.permute.xlu1 %870 }
 0x43f   : > { %2246 = vmatmul.mubr.bf16.gmra.mrb[20].mxu1 %v5607_v26  ;;  %v1466_v58 = vpop.permute.xlu1 %1465 }
 0x443   : > { %v876_v33 = vpop.permute.xlu0 %875  ;;  %v2069_v30 = vpop.permute.xlu1 %2068 }
 0x447   : > { %v1471_v11 = vpop.permute.xlu0 %1470  ;;  %v881_v7 = vpop.permute.xlu1 %880 }
 0x44b   : > { %v2074_v57 = vpop.permute.xlu0 %2073  ;;  %v1476_v13 = vpop.permute.xlu1 %1475 }
 0x44f   : > { %v886_v53 = vpop.permute.xlu0 %885 }
 0x453   : > { %v1481_v6 = vpop.permute.xlu0 %1480 }
 0x4b4   : > { %v1039_v56 = vpop.f32.mrb[0].mxu1 }
 0x4b5   : > { %v1041_v10 = vpop.f32.mrb[1].mxu1  ;;  %v1040_v37 = vadd.f32 %v1039_v56, %v871_v3 }
 0x4b6   : > { %v1043_v26 = vpop.f32.mrb[2].mxu1  ;;  %v1042_v22 = vadd.f32 %v1041_v10, %v871_v3 }
 0x4b7   : > { %v1045_v44 = vpop.f32.mrb[3].mxu1  ;;  %v1044_v49 = vadd.f32 %v1043_v26, %v876_v33  ;;  %v1058_v38 = vmax.f32 %v1040_v37, 0.0 }
 0x4b8   : > { %v1046_v36 = vadd.f32 %v1045_v44, %v876_v33  ;;  %v1059_v2 = vmax.f32 %v1042_v22, 0.0 }
 0x4b9   : > { %v1060_v35 = vmax.f32 %v1044_v49, 0.0 }
 0x4ba   : > { %v1061_v21 = vmax.f32 %v1046_v36, 0.0 }
 0x4bc   : > { %v1049_v61 = vpop.f32.mrb[4].mxu1 }
 0x4bd   : > { %v1051_v40 = vpop.f32.mrb[5].mxu1  ;;  %v1050_v15 = vadd.f32 %v1049_v61, %v881_v7 }
 0x4be   : > { %v1053_v9 = vpop.f32.mrb[6].mxu1  ;;  %v1052_v63 = vadd.f32 %v1051_v40, %v881_v7 }
 0x4bf   : > { %v1055_v52 = vpop.f32.mrb[7].mxu1  ;;  %v1054_v14 = vadd.f32 %v1053_v9, %v886_v53  ;;  %v1062_v56 = vmax.f32 %v1050_v15, 0.0 }
 0x4c0   : > { %v1056_v19 = vadd.f32 %v1055_v52, %v886_v53  ;;  %v1063_v3 = vmax.f32 %v1052_v63, 0.0 }
 0x4c1   : > { %v1064_v61 = vmax.f32 %v1054_v14, 0.0 }
 0x4c2   : > { %v1065_v40 = vmax.f32 %v1056_v19, 0.0 }
 0x4e3   : > { %v1634_v43 = vpop.f32.mrb[8].mxu1 }
 0x4e4   : > { %v1635_v31 = vadd.f32 %v1634_v43, %v1466_v58  ;;  %v1636_v55 = vpop.f32.mrb[9].mxu1 }
 0x4e5   : > { %v1637_v0 = vadd.f32 %v1636_v55, %v1466_v58  ;;  %v1638_v20 = vpop.f32.mrb[10].mxu1 }
 0x4e6   : > { %v1653_v60 = vmax.f32 %v1635_v31, 0.0  ;;  %v1639_v28 = vadd.f32 %v1638_v20, %v1471_v11  ;;  %v1640_v47 = vpop.f32.mrb[11].mxu1 }
 0x4e7   : > { %v1654_v16 = vmax.f32 %v1637_v0, 0.0  ;;  %v1641_v12 = vadd.f32 %v1640_v47, %v1471_v11 }
 0x4e8   : > { %v1661_v39 = vadd.f32 %v1653_v60, %v1058_v38  ;;  %v1655_v46 = vmax.f32 %v1639_v28, 0.0 }
 0x4e9   : > { %v1662_v50 = vadd.f32 %v1654_v16, %v1059_v2  ;;  %v1656_v8 = vmax.f32 %v1641_v12, 0.0 }
 0x4ea   : > { %v1663_v41 = vadd.f32 %v1655_v46, %v1060_v35  ;;  %v2079_v35 = vpop.permute.xlu1 %2078 }
 0x4eb   : > { %v1664_v42 = vadd.f32 %v1656_v8, %v1061_v21  ;;  %v1644_v18 = vpop.f32.mrb[12].mxu1 }
 0x4ec   : > { %v1645_v17 = vadd.f32 %v1644_v18, %v1476_v13  ;;  %v1646_v34 = vpop.f32.mrb[13].mxu1  ;;  %v2084_v18 = vpop.permute.xlu0 %2083 }
 0x4ed   : > { %v1647_v5 = vadd.f32 %v1646_v34, %v1476_v13  ;;  %v1648_v45 = vpop.f32.mrb[14].mxu1 }
 0x4ee   : > { %v1657_v10 = vmax.f32 %v1645_v17, 0.0  ;;  %v1649_v26 = vadd.f32 %v1648_v45, %v1481_v6  ;;  %v1650_v44 = vpop.f32.mrb[15].mxu1 }
 0x4ef   : > { %v1658_v33 = vmax.f32 %v1647_v5, 0.0  ;;  %v1651_v58 = vadd.f32 %v1650_v44, %v1481_v6 }
 0x4f0   : > { %v1665_v11 = vadd.f32 %v1657_v10, %v1062_v56  ;;  %v1659_v37 = vmax.f32 %v1649_v26, 0.0 }
 0x4f1   : > { %v1666_v22 = vadd.f32 %v1658_v33, %v1063_v3  ;;  %v1660_v43 = vmax.f32 %v1651_v58, 0.0 }
 0x4f2   : > { %v1667_v9 = vadd.f32 %v1659_v37, %v1064_v61 }
 0x4f3   : > { %v1668_v49 = vadd.f32 %v1660_v43, %v1065_v40 }
 0x50a   : > { %v2237_v31 = vpop.f32.mrb[16].mxu1 }
 0x50b   : > { %v2238_v55 = vadd.f32 %v2237_v31, %v2069_v30  ;;  %v2239_v52 = vpop.f32.mrb[17].mxu1 }
 0x50c   : > { %v2240_v7 = vadd.f32 %v2239_v52, %v2069_v30  ;;  %v2241_v36 = vpop.f32.mrb[18].mxu1 }
 0x50d   : > { %v2256_v0 = vmax.f32 %v2238_v55, 0.0  ;;  %v2242_v20 = vadd.f32 %v2241_v36, %v2074_v57  ;;  %v2243_v38 = vpop.f32.mrb[19].mxu1 }
 0x50e   : > { %v2257_v60 = vmax.f32 %v2240_v7, 0.0  ;;  %v2244_v28 = vadd.f32 %v2243_v38, %v2074_v57 }
 0x50f   : > { %v2264_v47 = vadd.f32 %v2256_v0, %v1661_v39  ;;  %v2258_v53 = vmax.f32 %v2242_v20, 0.0 }
 0x510   : > { %v2265_v2 = vadd.f32 %v2257_v60, %v1662_v50  ;;  %v2259_v16 = vmax.f32 %v2244_v28, 0.0 }
 0x511   : > { %v2266_v12 = vadd.f32 %v2258_v53, %v1663_v41  ;;  %v2272_v8 = vmul.f32 0.33333334, %v2264_v47 }
 0x512   : > { %v2267_v46 = vadd.f32 %v2259_v16, %v1664_v42  ;;  %v2247_v21 = vpop.f32.mrb[20].mxu1  ;;  %v2273_v30 = vmul.f32 0.33333334, %v2265_v2 }
 0x513   : > { %v2274_v15 = vmul.f32 0.33333334, %v2266_v12  ;;  %v2248_v13 = vadd.f32 %v2247_v21, %v2079_v35  ;;  %v2249_v63 = vpop.f32.mrb[21].mxu1 }
 0x514   : > { %v2275_v14 = vmul.f32 0.33333334, %v2267_v46  ;;  %v2250_v17 = vadd.f32 %v2249_v63, %v2079_v35  ;;  %v2251_v34 = vpop.f32.mrb[22].mxu1 }
 0x515   : > { %v2280_v6 = vpack.c.bf16 %v2274_v15, %v2272_v8  ;;  %v2260_v19 = vmax.f32 %v2248_v13, 0.0  ;;  %v2252_v57 = vadd.f32 %v2251_v34, %v2084_v18  ;;  %v2253_v39 = vpop.f32.mrb[23].mxu1  ;;  %v4244_v15 = vpop.permute.xlu1 %4243 }
 0x516   : > { %v5674_v5 = vpack.c.bf16 %v2275_v14, %v2273_v30  ;;  %v2261_v50 = vmax.f32 %v2250_v17, 0.0  ;;  %v2254_v41 = vadd.f32 %v2253_v39, %v2084_v18  ;;  %v5771_v13 = vpop.permute.xlu0 %4248  ;;  %v4245_v34 = vunpack.i.l.bf16 %v4244_v15 }
 0x517   : > { %v2268_v45 = vadd.f32 %v2260_v19, %v1665_v11  ;;  %v2262_v42 = vmax.f32 %v2252_v57, 0.0  ;;  %2398 = vrot.lane.b32.xlu0 %v2280_v6, %s4417_s20  ;;  %2340 = vrot.lane.b32.xlu1 %v2280_v6, %s4413_s16  ;;  %v2307_v3 = vsel %vm459_vm4, %v2280_v6, 0  ;;  %v2301_v43 = vsel %vm447_vm15, %v2280_v6, 0 }
 0x518   : > { %v2269_v56 = vadd.f32 %v2261_v50, %v1666_v22  ;;  %v2263_v10 = vmax.f32 %v2254_v41, 0.0  ;;  %v2320_v22 = vsel %vm6893_vm12, %v2280_v6, 0  ;;  %v2295_v31 = vsel %vm421_vm5, %v2280_v6, 0 }
 0x519   : > { %v2270_v26 = vadd.f32 %v2262_v42, %v1667_v9  ;;  %v2276_v33 = vmul.f32 0.33333334, %v2268_v45  ;;  %v2314_v9 = vsel %vm471_vm9, %v2280_v6, 0  ;;  %v2321_v55 = vsel %vm6929_vm13, %v5674_v5, 0  ;;  %vm6933_vm13 = vmmov %vm6931_vm7  ;;  %v5773_v63 = vpop.permute.xlu1 %4253 }
 0x51a   : > { %v2271_v44 = vadd.f32 %v2263_v10, %v1668_v49  ;;  %v2277_v61 = vmul.f32 0.33333334, %v2269_v56  ;;  %v2308_v49 = vsel %vm6928_vm14, %v5674_v5, 0  ;;  %v2326_v52 = vsel %vm6930_vm10, %v2280_v6, 0  ;;  %v5775_v18 = vpop.permute.xlu0 %4258 }
 0x51b   : > { %v2278_v58 = vmul.f32 0.33333334, %v2270_v26  ;;  %2454 = vrot.lane.b32.xlu0 %v2280_v6, %s4422_s25  ;;  %2384 = vrot.lane.b32.xlu1 %v2307_v3, %s4419_s22  ;;  %v2296_v7 = vsel %vm422_vm3, %v5674_v5, 0  ;;  %v2302_v36 = vsel %vm6931_vm7, %v5674_v5, 0  ;;  %vm6932_vm14 = vcmp.ne.s16.totalorder %v4702_v4, 0 }
 0x51c   : > { %v2279_v11 = vmul.f32 0.33333334, %v2271_v44  ;;  %v2315_v0 = vsel %vm6932_vm14, %v5674_v5, 0  ;;  %vm6934_vm10 = vcmp.ne.s16.totalorder %v4568_v24, 0  ;;  %vm6935_vm7 = vcmp.ne.s16.totalorder %v4645_v54, 0 }
 0x51d   : > { %v2282_v37 = vpack.c.bf16 %v2278_v58, %v2276_v33  ;;  %v2327_v16 = vsel %vm6935_vm7, %v5674_v5, 0  ;;  %vm6936_vm14 = vcmp.ne.s16.totalorder %v4576_v29, 0  ;;  %v5777_v30 = vpop.permute.xlu1 %4263  ;;  %v4250_v10 = vunpack.i.l.bf16 %v5771_v13 }
 0x51e   : > { %v2283_v40 = vpack.c.bf16 %v2279_v11, %v2277_v61  ;;  %v5779_v14 = vpop.permute.xlu0 %4268  ;;  %v4255_v33 = vunpack.i.l.bf16 %v5773_v63 }
 0x51f   : > { %2342 = vrot.lane.b32.xlu0 %v5674_v5, %s4413_s16  ;;  %2400 = vrot.lane.b32.xlu1 %v5674_v5, %s4417_s20  ;;  %v2310_v20 = vsel %vm459_vm4, %v2282_v37, 0  ;;  %v2323_v38 = vsel %vm6893_vm12, %v2282_v37, 0  ;;  %v2304_v60 = vsel %vm447_vm15, %v2282_v37, 0  ;;  %v2317_v28 = vsel %vm471_vm9, %v2282_v37, 0  ;;  %vm6939_vm12 = vmmov %vm6935_vm7 }
 0x520   : > { %v2298_v47 = vsel %vm421_vm5, %v2282_v37, 0  ;;  %v2305_v53 = vsel %vm6933_vm13, %v2283_v40, 0  ;;  %v2311_v2 = vsel %vm6934_vm10, %v2283_v40, 0  ;;  %v2329_v12 = vsel %vm6936_vm14, %v2282_v37, 0 }
 0x521   : > { %vm6937_vm13 = vcmp.ne.s16.totalorder %v4702_v4, 0  ;;  %vm6938_vm10 = vcmp.ne.s16.totalorder %v4632_v51, 0  ;;  %v2330_v21 = vsel %vm6939_vm12, %v2283_v40, 0  ;;  %v2299_v8 = vsel %vm422_vm3, %v2283_v40, 0  ;;  %v5781_v17 = vpop.permute.xlu1 %4273 }
 0x522   : > { %v2318_v35 = vsel %vm6937_vm13, %v2283_v40, 0  ;;  %v2324_v46 = vsel %vm6938_vm10, %v2283_v40, 0  ;;  %vm6940_vm12 = vcmask 900096   ;;  %vm6942_vm14 = vcmask 785408  }
 0x523   : > { %2436 = vrot.lane.b32.xlu1 %v2320_v22, %s4421_s24  ;;  %2362 = vrot.lane.b32.xlu0 %v2301_v43, %s4418_s21  ;;  %v4275_v22 = vunpack.i.l.bf16 %v5781_v17  ;;  %vm6941_vm7 = vmmov %vm6940_vm12 }
 0x524   : > { %vm6943_vm13 = vmmov %vm6942_vm14 }
 0x525   : > { %vm6944_vm10 = vmmov %vm6941_vm7 }
 0x527   : > { %2456 = vrot.lane.b32.xlu1 %v5674_v5, %s4422_s25  ;;  %2414 = vrot.lane.b32.xlu0 %v2314_v9, %s4420_s23 }
 0x52b   : > { %2386 = vrot.lane.b32.xlu0 %v2308_v49, %s4419_s22  ;;  %2624 = vrot.lane.b32.xlu1 %v2295_v31, %s4416_s19 }
 0x52f   : > { %2438 = vrot.lane.b32.xlu0 %v2321_v55, %s4421_s24  ;;  %2476 = vrot.lane.b32.xlu1 %v2326_v52, %s4423_s26 }
 0x533   : > { %2626 = vrot.lane.b32.xlu0 %v2296_v7, %s4416_s19  ;;  %2364 = vrot.lane.b32.xlu1 %v2302_v36, %s4418_s21 }
 0x537   : > { %2416 = vrot.lane.b32.xlu1 %v2315_v0, %s4420_s23  ;;  %2346 = vrot.lane.b32.xlu0 %v2282_v37, %s4413_s16 }
 0x53b   : > { %2460 = vrot.lane.b32.xlu1 %v2282_v37, %s4422_s25  ;;  %2402 = vrot.lane.b32.xlu0 %v2282_v37, %s4417_s20 }
 0x53f   : > { %2348 = vrot.lane.b32.xlu1 %v2283_v40, %s4413_s16  ;;  %2390 = vrot.lane.b32.xlu0 %v2310_v20, %s4419_s22 }
 0x543   : > { %2442 = vrot.lane.b32.xlu0 %v2323_v38, %s4421_s24  ;;  %2368 = vrot.lane.b32.xlu1 %v2304_v60, %s4418_s21  ;;  %v4246_v60 = vunpack.i.h.bf16 %v4244_v15  ;;  %v4251_v15 = vunpack.i.h.bf16 %v5771_v13 }
 0x547   : > { %2462 = vrot.lane.b32.xlu0 %v2283_v40, %s4422_s25  ;;  %2404 = vrot.lane.b32.xlu1 %v2283_v40, %s4417_s20 }
 0x54b   : > { %2420 = vrot.lane.b32.xlu1 %v2317_v28, %s4420_s23  ;;  %2630 = vrot.lane.b32.xlu0 %v2298_v47, %s4416_s19 }
 0x54f   : > { %4278 = vrot.lane.b32.xlu1 %v4411_v1, %s4423_s26  ;;  %2370 = vrot.lane.b32.xlu0 %v2305_v53, %s4418_s21 }
 0x553   : > { %2392 = vrot.lane.b32.xlu1 %v2311_v2, %s4419_s22  ;;  %2478 = vrot.lane.b32.xlu0 %v2327_v16, %s4423_s26 }
 0x557   : > { %2482 = vrot.lane.b32.xlu1 %v2329_v12, %s4423_s26  ;;  %2422 = vrot.lane.b32.xlu0 %v2318_v35, %s4420_s23 }
 0x55b   : > { %2444 = vrot.lane.b32.xlu1 %v2324_v46, %s4421_s24  ;;  %2484 = vrot.lane.b32.xlu0 %v2330_v21, %s4423_s26 }
 0x55f   : > { %2632 = vrot.lane.b32.xlu1 %v2299_v8, %s4416_s19 }
 0x589   : > { %v2399_v6 = vpop.permute.xlu0 %2398  ;;  %v2341_v19 = vpop.permute.xlu1 %2340 }
 0x58a   : > { %2670 = vrot.lane.b32.xlu1 %v2399_v6, %s4416_s19  ;;  %v2350_v57 = vsel %vm456_vm8, %v4245_v34, %v2341_v19 }
 0x58b   : > { %2634 = vrot.lane.b32.xlu0 %v2350_v57, %s4416_s19 }
 0x58d   : > { %v5786_v39 = vpop.permute.xlu0 %2454  ;;  %v2385_v5 = vpop.permute.xlu1 %2384 }
 0x58e   : > { %v2394_v11 = vsel %vm533_vm1, %v4255_v33, %v2385_v5  ;;  %v4276_v33 = vunpack.i.h.bf16 %v5781_v17  ;;  %v4265_v17 = vunpack.i.l.bf16 %v5777_v30 }
 0x591   : > { %v2343_v50 = vpop.permute.xlu0 %2342  ;;  %v2401_v41 = vpop.permute.xlu1 %2400 }
 0x592   : > { %2638 = vrot.lane.b32.xlu1 %v2343_v50, %s4416_s19  ;;  %2674 = vrot.lane.b32.xlu0 %v2401_v41, %s4416_s19  ;;  %v2351_v56 = vsel %vm456_vm8, %v2341_v19, %v2343_v50  ;;  %v2406_v38 = vsel %vm418_vm6, %v2399_v6, %v2401_v41  ;;  %v4256_v50 = vunpack.i.h.bf16 %v5773_v63  ;;  %v4260_v63 = vunpack.i.l.bf16 %v5775_v18 }
 0x595   : > { %v2363_v45 = vpop.permute.xlu0 %2362  ;;  %v5790_v42 = vpop.permute.xlu1 %2436 }
 0x596   : > { %2636 = vrot.lane.b32.xlu0 %v2351_v56, %s4416_s19  ;;  %v2372_v3 = vsel %vm521_vm2, %v4250_v10, %v2363_v45 }
 0x599   : > { %v5795_v26 = vpop.permute.xlu0 %2414  ;;  %v5797_v44 = vpop.permute.xlu1 %2456 }
 0x59a   : > { %2646 = vrot.lane.b32.xlu0 %v2372_v3, %s4416_s19 }
 0x59d   : > { %v2387_v58 = vpop.permute.xlu0 %2386  ;;  %v2625_v61 = vpop.permute.xlu1 %2624 }
 0x59e   : > { %2658 = vrot.lane.b32.xlu0 %v2394_v11, %s4416_s19  ;;  %v2730_v55 = vsel %vm493_vm0, %v4275_v22, %v2625_v61  ;;  %v2395_v36 = vsel %vm533_vm1, %v2385_v5, %v2387_v58 }
 0x5a1   : > { %v5804_v37 = vpop.permute.xlu0 %2438  ;;  %v5806_v40 = vpop.permute.xlu1 %2476 }
 0x5a5   : > { %v2627_v43 = vpop.permute.xlu0 %2626  ;;  %v2365_v9 = vpop.permute.xlu1 %2364 }
 0x5a6   : > { %2650 = vrot.lane.b32.xlu1 %v2365_v9, %s4416_s19  ;;  %v2731_v49 = vsel %vm493_vm0, %v2625_v61, %v2627_v43  ;;  %v2373_v31 = vsel %vm521_vm2, %v2363_v45, %v2365_v9  ;;  %v2448_v9 = vsel %vm6942_vm14, %v5790_v42, %v5804_v37 }
 0x5a7   : > { %2815 = vmatprep.subr.bf16.mxu0 %v2731_v49  ;;  %2648 = vrot.lane.b32.xlu0 %v2373_v31, %s4416_s19  ;;  %v4261_v31 = vunpack.i.h.bf16 %v5775_v18 }
 0x5a8   : > { %2816 = vmatpush1.bf16.msra.mxu0 %v2730_v55 }
 0x5a9   : > { %v2347_v52 = vpop.permute.xlu0 %2346  ;;  %v2417_v7 = vpop.permute.xlu1 %2416 }
 0x5aa   : > { %2662 = vrot.lane.b32.xlu1 %v2387_v58, %s4416_s19  ;;  %v2352_v53 = vsel %vm456_vm8, %v4246_v60, %v2347_v52  ;;  %v2426_v13 = vsel %vm6940_vm12, %v5795_v26, %v2417_v7  ;;  %v2427_v61 = vsel %vm6941_vm7, %v2417_v7, %v4260_v63  ;;  %vm6945_vm12 = vmmov %vm6941_vm7 }
 0x5ab   : > { %2660 = vrot.lane.b32.xlu0 %v2395_v36, %s4416_s19  ;;  %vm6946_vm7 = vmmov %vm6943_vm13  ;;  %v4382_v36 = vld [vmem:[%s6878_s5 + $0x4] ss:$12 sps:$4 sm:$0xff]  }
 0x5ac   : > { %vm6947_vm14 = vmmov %vm6946_vm7  ;;  %2847 = vmatprep.mubr.bf16.mxu0 %v4382_v36 }
 0x5ad   : > { %v2403_v0 = vpop.permute.xlu0 %2402  ;;  %v5817_v20 = vpop.permute.xlu1 %2460 }
 0x5ae   : > { %2672 = vrot.lane.b32.xlu1 %v2406_v38, %s4416_s19 }
 0x5af   : > { %2676 = vrot.lane.b32.xlu0 %v2403_v0, %s4416_s19 }
 0x5b1   : > { %v2391_v28 = vpop.permute.xlu0 %2390  ;;  %v2349_v47 = vpop.permute.xlu1 %2348 }
 0x5b2   : > { %2640 = vrot.lane.b32.xlu1 %v2352_v53, %s4416_s19  ;;  %v2353_v8 = vsel %vm456_vm8, %v2347_v52, %v2349_v47  ;;  %v2396_v45 = vsel %vm533_vm1, %v4256_v50, %v2391_v28 }
 0x5b3   : > { %2644 = vrot.lane.b32.xlu0 %v2349_v47, %s4416_s19 }
 0x5b5   : > { %v2443_v2 = vpop.permute.xlu0 %2442  ;;  %v2369_v16 = vpop.permute.xlu1 %2368 }
 0x5b6   : > { %v2374_v19 = vsel %vm521_vm2, %v4251_v15, %v2369_v16 }
 0x5b9   : > { %v5825_v12 = vpop.permute.xlu0 %2462  ;;  %v2405_v35 = vpop.permute.xlu1 %2404 }
 0x5ba   : > { %2680 = vrot.lane.b32.xlu1 %v2405_v35, %s4416_s19  ;;  %v2407_v3 = vsel %vm418_vm6, %v2403_v0, %v2405_v35  ;;  %v4270_v0 = vunpack.i.l.bf16 %v5779_v14 }
 0x5bc   : > { %v2467_v38 = vsel %vm572_vm11, %v5797_v44, %v4270_v0 }
 0x5bd   : > { %v2631_v46 = vpop.permute.xlu0 %2630  ;;  %v2421_v21 = vpop.permute.xlu1 %2420 }
 0x5be   : > { %2642 = vrot.lane.b32.xlu1 %v2353_v8, %s4416_s19  ;;  %v2732_v22 = vsel %vm493_vm0, %v4276_v33, %v2631_v46 }
 0x5c1   : > { %v2371_v34 = vpop.permute.xlu0 %2370  ;;  %v5831_v6 = vpop.permute.xlu1 %4278 }
 0x5c2   : > { %2652 = vrot.lane.b32.xlu1 %v2374_v19, %s4416_s19  ;;  %2656 = vrot.lane.b32.xlu0 %v2371_v34, %s4416_s19  ;;  %v2375_v5 = vsel %vm521_vm2, %v2369_v16, %v2371_v34  ;;  %v4281_v53 = vunpack.i.h.bf16 %v5831_v6  ;;  %v2514_v34 = vld [vmem:[%s6879_s6 + $0x30] sm:$0xff] }
 0x5c5   : > { %v2393_v57 = vpop.permute.xlu1 %2392  ;;  %v2479_v43 = vpop.permute.xlu0 %2478 }
 0x5c6   : > { %2654 = vrot.lane.b32.xlu1 %v2375_v5, %s4416_s19  ;;  %2668 = vrot.lane.b32.xlu0 %v2393_v57, %s4416_s19  ;;  %v2397_v10 = vsel %vm533_vm1, %v2391_v28, %v2393_v57  ;;  %v2468_v28 = vsel %vm572_vm11, %v5817_v20, %v5825_v12 }
 0x5c9   : > { %v5840_v41 = vpop.permute.xlu1 %2482  ;;  %v2423_v49 = vpop.permute.xlu0 %2422 }
 0x5ca   : > { %2684 = vrot.lane.b32.xlu1 %v2426_v13, %s4416_s19  ;;  %2664 = vrot.lane.b32.xlu0 %v2396_v45, %s4416_s19  ;;  %v2429_v55 = vsel %vm6944_vm10, %v2423_v49, %v4261_v31  ;;  %v2428_v52 = vsel %vm6945_vm12, %v2421_v21, %v2423_v49 }
 0x5cd   : > { %v2445_v56 = vpop.permute.xlu1 %2444  ;;  %v2485_v47 = vpop.permute.xlu0 %2484 }
 0x5ce   : > { %2666 = vrot.lane.b32.xlu1 %v2397_v10, %s4416_s19  ;;  %2678 = vrot.lane.b32.xlu0 %v2407_v3, %s4416_s19  ;;  %v2450_v7 = vsel %vm6947_vm14, %v2443_v2, %v2445_v56  ;;  %vm2802_vm14 = vcmask 261120  }
 0x5d1   : > { %v2633_v58 = vpop.permute.xlu1 %2632 }
 0x5d2   : > { %2682 = vrot.lane.b32.xlu1 %v5795_v26, %s4416_s19  ;;  %2686 = vrot.lane.b32.xlu0 %v2427_v61, %s4416_s19  ;;  %v2733_v11 = vsel %vm493_vm0, %v2631_v46, %v2633_v58  ;;  %v2449_v26 = vsel %vm6943_vm13, %v5804_v37, %v4265_v17  ;;  %v2466_v37 = vsel %vm572_vm11, %v5786_v39, %v5797_v44  ;;  %vm6948_vm13 = vcmask 769024   ;;  %v2512_v46 = vld [vmem:[%s6879_s6 + $0x20] sm:$0xff] }
 0x5d3   : > { %2817 = vmatprep.subr.bf16.mxu0 %v2733_v11  ;;  %v2488_v44 = vsel %vm6948_vm13, %v5806_v40, %v2479_v43  ;;  %vm6949_vm10 = vmmov %vm6948_vm13  ;;  %vm6952_vm13 = vcmp.ne.s16.totalorder %v4574_v27, 0 }
 0x5d4   : > { %2818 = vmatpush1.bf16.msra.mxu0 %v2732_v22  ;;  %vm6950_vm12 = vmmov %vm6949_vm10 }
 0x5d6   : > { %2696 = vrot.lane.b32.xlu1 %v2448_v9, %s4416_s19  ;;  %2688 = vrot.lane.b32.xlu0 %v2421_v21, %s4416_s19  ;;  %v2511_v21 = vld [vmem:[%s6879_s6 + $0x18] sm:$0xff] }
 0x5da   : > { %2694 = vrot.lane.b32.xlu1 %v5790_v42, %s4416_s19  ;;  %2698 = vrot.lane.b32.xlu0 %v2449_v26, %s4416_s19  ;;  %v4266_v42 = vunpack.i.h.bf16 %v5777_v30  ;;  %v4271_v30 = vunpack.i.h.bf16 %v5779_v14  ;;  %v4280_v14 = vunpack.i.l.bf16 %v5831_v6  ;;  %v2513_v6 = vld [vmem:[%s6879_s6 + $0x28] sm:$0xff] }
 0x5dc   : > { %v2451_v18 = vsel %vm6946_vm7, %v2445_v56, %v4266_v42  ;;  %v2469_v60 = vsel %vm572_vm11, %v5825_v12, %v4271_v30  ;;  %vm6951_vm7 = vmmov %vm6949_vm10  ;;  %v2509_v12 = vld [vmem:[%s6879_s6 + $0x8] sm:$0xff] }
 0x5dd   : > { %v2490_v16 = vsel %vm6951_vm7, %v5840_v41, %v2485_v47  ;;  %vm6955_vm7 = vcmp.ne.s16.totalorder %v4702_v4, 0 }
 0x5de   : > { %2692 = vrot.lane.b32.xlu1 %v2429_v55, %s4416_s19  ;;  %2690 = vrot.lane.b32.xlu0 %v2428_v52, %s4416_s19 }
 0x5e2   : > { %2708 = vrot.lane.b32.xlu1 %v2466_v37, %s4416_s19  ;;  %2700 = vrot.lane.b32.xlu0 %v2443_v2, %s4416_s19  ;;  %v2491_v2 = vsel %vm6950_vm12, %v2485_v47, %v4281_v53  ;;  %vm6954_vm12 = vcmp.ne.s16.totalorder %v4566_v23, 0 }
 0x5e6   : > { %2704 = vrot.lane.b32.xlu1 %v2451_v18, %s4416_s19  ;;  %2702 = vrot.lane.b32.xlu0 %v2450_v7, %s4416_s19 }
 0x5ea   : > { %2706 = vrot.lane.b32.xlu1 %v5786_v39, %s4416_s19  ;;  %2710 = vrot.lane.b32.xlu0 %v2467_v38, %s4416_s19  ;;  %v2489_v39 = vsel %vm6949_vm10, %v2479_v43, %v4280_v14  ;;  %vm6953_vm10 = vcmp.ne.s16.totalorder %v4576_v29, 0 }
 0x5ee   : > { %2716 = vrot.lane.b32.xlu1 %v2469_v60, %s4416_s19  ;;  %2714 = vrot.lane.b32.xlu0 %v2468_v28, %s4416_s19 }
 0x5f2   : > { %2720 = vrot.lane.b32.xlu1 %v2488_v44, %s4416_s19  ;;  %2712 = vrot.lane.b32.xlu0 %v5817_v20, %s4416_s19  ;;  %v2508_v20 = vld [vmem:[%s6879_s6] sm:$0xff] }
 0x5f6   : > { %2718 = vrot.lane.b32.xlu1 %v5806_v40, %s4416_s19  ;;  %2722 = vrot.lane.b32.xlu0 %v2489_v39, %s4416_s19  ;;  %v2510_v40 = vld [vmem:[%s6879_s6 + $0x10] sm:$0xff] }
 0x5fa   : > { %2728 = vrot.lane.b32.xlu1 %v2491_v2, %s4416_s19  ;;  %2726 = vrot.lane.b32.xlu0 %v2490_v16, %s4416_s19 }
 0x5fc   : > { %v5935_v8 = vpop.permute.xlu1 %2670 }
 0x5fd   : > { %v2635_v35 = vpop.permute.xlu0 %2634 }
 0x5fe   : > { %2518 = vperm.xlu1 %4201, %v2508_v20   ;;  %2724 = vrot.lane.b32.xlu0 %v5840_v41, %s4416_s19  ;;  %v2515_v41 = vld [vmem:[%s6879_s6 + $0x38] sm:$0xff] }
 0x602   : > { %2528 = vperm.xlu1 %4201, %v2510_v40   ;;  %2523 = vperm.xlu0 %4200, %v2509_v12  }
 0x604   : > { %v5937_v15 = vpop.permute.xlu0 %2674  ;;  %v2639_v19 = vpop.permute.xlu1 %2638 }
 0x606   : > { %2538 = vperm.xlu1 %4201, %v2512_v46   ;;  %2533 = vperm.xlu0 %4200, %v2511_v21  }
 0x608   : > { %v2637_v57 = vpop.permute.xlu0 %2636 }
 0x609   : > { %v2735_v5 = vsel %vm493_vm0, %v2637_v57, %v2639_v19  ;;  %v2734_v50 = vsel %vm493_vm0, %v2635_v35, %v2637_v57 }
 0x60a   : > { %2548 = vperm.xlu1 %4201, %v2514_v34   ;;  %2543 = vperm.xlu0 %4200, %v2513_v6  }
 0x60b   : > { %2819 = vmatprep.subr.bf16.mxu0 %v2735_v5 }
 0x60c   : > { %2820 = vmatpush1.bf16.msra.mxu0 %v2734_v50  ;;  %v2647_v13 = vpop.permute.xlu0 %2646 }
 0x60e   : > { %2553 = vperm.xlu0 %4200, %v2515_v41   ;;  %4283 = vrot.lane.b32.xlu1 %v4411_v1, %s4413_s16 }
 0x610   : > { %v2659_v56 = vpop.permute.xlu0 %2658 }
 0x612   : > { %4288 = vrot.lane.b32.xlu0 %v4411_v1, %s4413_s16  ;;  %4293 = vrot.lane.b32.xlu1 %v4411_v1, %s4418_s21 }
 0x616   : > { %4298 = vrot.lane.b32.xlu0 %v4411_v1, %s4418_s21  ;;  %4303 = vrot.lane.b32.xlu1 %v4411_v1, %s4419_s22 }
 0x618   : > { %v2651_v45 = vpop.permute.xlu1 %2650 }
 0x619   : > { %v2649_v3 = vpop.permute.xlu0 %2648 }
 0x61a   : > { %4308 = vrot.lane.b32.xlu0 %v4411_v1, %s4419_s22  ;;  %4313 = vrot.lane.b32.xlu1 %v4411_v1, %s4416_s19  ;;  %v2739_v26 = vsel %vm493_vm0, %v2649_v3, %v2651_v45  ;;  %v2738_v55 = vsel %vm493_vm0, %v2647_v13, %v2649_v3 }
 0x61c   : > { %v2663_v10 = vpop.permute.xlu1 %2662 }
 0x61d   : > { %v2661_v33 = vpop.permute.xlu0 %2660 }
 0x61e   : > { %4318 = vrot.lane.b32.xlu0 %v4411_v1, %s4416_s19  ;;  %v2743_v7 = vsel %vm493_vm0, %v2661_v33, %v2663_v10  ;;  %v2742_v38 = vsel %vm493_vm0, %v2659_v56, %v2661_v33  ;;  %4328 = vrot.lane.b32.xlu1 %v4411_v1, %s4420_s23 }
 0x620   : > { %v2673_v63 = vpop.permute.xlu1 %2672 }
 0x621   : > { %v2677_v61 = vpop.permute.xlu0 %2676  ;;  %v2747_v14 = vsel %vm493_vm0, %v2673_v63, %v5937_v15  ;;  %v2746_v53 = vsel %vm493_vm0, %v5935_v8, %v2673_v63 }
 0x622   : > { %4323 = vrot.lane.b32.xlu0 %v4411_v1, %s4420_s23  ;;  %4338 = vrot.lane.b32.xlu1 %v4411_v1, %s4421_s24 }
 0x624   : > { %v2641_v58 = vpop.permute.xlu1 %2640 }
 0x625   : > { %v2645_v22 = vpop.permute.xlu0 %2644 }
 0x626   : > { %4333 = vrot.lane.b32.xlu0 %v4411_v1, %s4421_s24 }
 0x62a   : > { %4343 = vrot.lane.b32.xlu0 %v4411_v1, %s4422_s25 }
 0x62c   : > { %v2681_v11 = vpop.permute.xlu1 %2680 }
 0x62e   : > { %4348 = vrot.lane.b32.xlu0 %v4411_v1, %s4423_s26 }
 0x630   : > { %v2643_v43 = vpop.permute.xlu1 %2642 }
 0x631   : > { %v2737_v9 = vsel %vm493_vm0, %v2643_v43, %v2645_v22  ;;  %v2736_v17 = vsel %vm493_vm0, %v2641_v58, %v2643_v43 }
 0x632   : > { %2821 = vmatprep.subr.bf16.mxu0 %v2737_v9  ;;  %4353 = vrot.lane.b32.xlu0 %v4411_v1, %s4422_s25 }
 0x633   : > { %2822 = vmatpush1.bf16.msra.mxu0 %v2736_v17  ;;  %v4380_v17 = vld [vmem:[%s6878_s5] ss:$12 sps:$4 sm:$0xff]  }
 0x634   : > { %v2653_v49 = vpop.permute.xlu1 %2652  ;;  %2823 = vmatprep.subr.bf16.mxu0 %v2739_v26  ;;  %v2657_v31 = vpop.permute.xlu0 %2656  ;;  %v4383_v26 = vld [vmem:[%s6878_s5 + $0x1c] ss:$12 sps:$4 sm:$0xff]  }
 0x636   : > { %4358 = vrot.lane.b32.xlu0 %v4411_v1, %s4423_s26 }
 0x637   : > { %2824 = vmatpush1.bf16.msra.mxu0 %v2738_v55 }
 0x638   : > { %v2655_v52 = vpop.permute.xlu1 %2654  ;;  %v2669_v37 = vpop.permute.xlu0 %2668 }
 0x639   : > { %v2741_v42 = vsel %vm493_vm0, %v2655_v52, %v2657_v31  ;;  %v2740_v18 = vsel %vm493_vm0, %v2653_v49, %v2655_v52 }
 0x63a   : > { %2825 = vmatprep.subr.bf16.mxu0 %v2741_v42 }
 0x63b   : > { %2826 = vmatpush1.bf16.msra.mxu0 %v2740_v18 }
 0x63c   : > { %v2685_v36 = vpop.permute.xlu1 %2684  ;;  %2827 = vmatprep.subr.bf16.mxu0 %v2743_v7  ;;  %v2665_v0 = vpop.permute.xlu0 %2664  ;;  %v4385_v7 = vld [vmem:[%s6878_s5 + $0x18] ss:$12 sps:$4 sm:$0xff]  }
 0x63f   : > { %2828 = vmatpush1.bf16.msra.mxu0 %v2742_v38 }
 0x640   : > { %v2667_v30 = vpop.permute.xlu1 %2666  ;;  %v2679_v60 = vpop.permute.xlu0 %2678 }
 0x641   : > { %v2745_v28 = vsel %vm493_vm0, %v2667_v30, %v2669_v37  ;;  %v2744_v44 = vsel %vm493_vm0, %v2665_v0, %v2667_v30  ;;  %v2749_v2 = vsel %vm493_vm0, %v2679_v60, %v2681_v11  ;;  %v2748_v40 = vsel %vm493_vm0, %v2677_v61, %v2679_v60  ;;  %v4388_v30 = vld [vmem:[%s6878_s5 + $0x30] ss:$12 sps:$4 sm:$0xff]   ;;  %v4389_v60 = vld [vmem:[%s6878_s5 + $0x4c] ss:$12 sps:$4 sm:$0xff]  }
 0x642   : > { %2829 = vmatprep.subr.bf16.mxu0 %v2745_v28  ;;  %v4391_v28 = vld [vmem:[%s6878_s5 + $0x48] ss:$12 sps:$4 sm:$0xff]  }
 0x643   : > { %2830 = vmatpush1.bf16.msra.mxu0 %v2744_v44  ;;  %v4392_v44 = vld [vmem:[%s6878_s5 + $0x8] ss:$12 sps:$4 sm:$0xff]  }
 0x644   : > { %v2683_v39 = vpop.permute.xlu1 %2682  ;;  %2831 = vmatprep.subr.bf16.mxu0 %v2747_v14  ;;  %v2687_v47 = vpop.permute.xlu0 %2686  ;;  %v4393_v14 = vld [vmem:[%s6878_s5 + $0x20] ss:$12 sps:$4 sm:$0xff]  }
 0x645   : > { %v2751_v12 = vsel %vm493_vm0, %v2685_v36, %v2687_v47  ;;  %v2750_v21 = vsel %vm493_vm0, %v2683_v39, %v2685_v36  ;;  %v4386_v36 = vld [vmem:[%s6878_s5 + $0x34] ss:$12 sps:$4 sm:$0xff]   ;;  %v4394_v39 = vld [vmem:[%s6878_s5 + $0x38] ss:$12 sps:$4 sm:$0xff]   ;;  %v4395_v47 = vld [vmem:[%s6878_s5 + $0x50] ss:$12 sps:$4 sm:$0xff]  }
 0x647   : > { %2832 = vmatpush1.bf16.msra.mxu0 %v2746_v53 }
 0x648   : > { %v2697_v16 = vpop.permute.xlu1 %2696  ;;  %2833 = vmatprep.subr.bf16.mxu0 %v2749_v2  ;;  %v2689_v20 = vpop.permute.xlu0 %2688 }
 0x64b   : > { %2834 = vmatpush1.bf16.msra.mxu0 %v2748_v40 }
 0x64c   : > { %v2695_v35 = vpop.permute.xlu1 %2694  ;;  %2835 = vmatprep.subr.bf16.mxu0 %v2751_v12  ;;  %v2699_v46 = vpop.permute.xlu0 %2698 }
 0x64d   : > { %v2755_v19 = vsel %vm493_vm0, %v2697_v16, %v2699_v46  ;;  %v2754_v50 = vsel %vm493_vm0, %v2695_v35, %v2697_v16 }
 0x64f   : > { %2836 = vmatpush1.bf16.msra.mxu0 %v2750_v21 }
 0x650   : > { %v2693_v15 = vpop.permute.xlu1 %2692  ;;  %v2691_v34 = vpop.permute.xlu0 %2690 }
 0x651   : > { %v2753_v8 = vsel %vm493_vm0, %v2691_v34, %v2693_v15  ;;  %v2752_v6 = vsel %vm493_vm0, %v2689_v20, %v2691_v34 }
 0x652   : > { %2837 = vmatprep.subr.bf16.mxu0 %v2753_v8 }
 0x653   : > { %2838 = vmatpush1.bf16.msra.mxu0 %v2752_v6 }
 0x654   : > { %v2709_v57 = vpop.permute.xlu1 %2708  ;;  %2839 = vmatprep.subr.bf16.mxu0 %v2755_v19  ;;  %v2701_v5 = vpop.permute.xlu0 %2700 }
 0x657   : > { %2840 = vmatpush1.bf16.msra.mxu0 %v2754_v50 }
 0x658   : > { %v2705_v41 = vpop.permute.xlu1 %2704  ;;  %v2703_v13 = vpop.permute.xlu0 %2702 }
 0x659   : > { %v2757_v45 = vsel %vm493_vm0, %v2703_v13, %v2705_v41  ;;  %v2756_v56 = vsel %vm493_vm0, %v2701_v5, %v2703_v13 }
 0x65a   : > { %2841 = vmatprep.subr.bf16.mxu0 %v2757_v45 }
 0x65b   : > { %2842 = vmatpush1.bf16.msra.mxu0 %v2756_v56 }
 0x65c   : > { %v2707_v10 = vpop.permute.xlu1 %2706  ;;  %v2711_v3 = vpop.permute.xlu0 %2710 }
 0x65d   : > { %v2758_v63 = vsel %vm493_vm0, %v2707_v10, %v2709_v57  ;;  %v2759_v33 = vsel %vm493_vm0, %v2709_v57, %v2711_v3 }
 0x65e   : > { %2843 = vmatprep.subr.bf16.mxu0 %v2759_v33 }
 0x65f   : > { %2844 = vmatpush1.bf16.msra.mxu0 %v2758_v63 }
 0x660   : > { %v2717_v58 = vpop.permute.xlu1 %2716  ;;  %v2715_v61 = vpop.permute.xlu0 %2714 }
 0x661   : > { %v2761_v11 = vsel %vm493_vm0, %v2715_v61, %v2717_v58 }
 0x662   : > { %2845 = vmatprep.subr.bf16.mxu0 %v2761_v11 }
 0x664   : > { %v2721_v22 = vpop.permute.xlu1 %2720  ;;  %v2713_v43 = vpop.permute.xlu0 %2712 }
 0x665   : > { %v2760_v9 = vsel %vm493_vm0, %v2713_v43, %v2715_v61 }
 0x666   : > { %2846 = vmatpush1.bf16.msra.mxu0 %v2760_v9 }
 0x668   : > { %v2719_v49 = vpop.permute.xlu1 %2718  ;;  %v2723_v31 = vpop.permute.xlu0 %2722 }
 0x669   : > { %v2762_v55 = vsel %vm493_vm0, %v2719_v49, %v2721_v22  ;;  %2848 = vmatmul.mubr.bf16.vlgmr.msra.gmra.mrb[12].mxu0 %v4380_v17  ;;  %v2763_v52 = vsel %vm493_vm0, %v2721_v22, %v2723_v31 }
 0x66a   : > { %2888 = vmatprep.subr.bf16.mxu0 %v2763_v52  ;;  %2857 = vmatprep.mubr.bf16.mxu0 %v4383_v26 }
 0x66b   : > { %2889 = vmatpush1.bf16.msra.mxu0 %v2762_v55 }
 0x66c   : > { %v2729_v37 = vpop.permute.xlu1 %2728  ;;  %v2727_v42 = vpop.permute.xlu0 %2726 }
 0x66d   : > { %v2765_v18 = vsel %vm493_vm0, %v2727_v42, %v2729_v37 }
 0x66e   : > { %2890 = vmatprep.subr.bf16.mxu0 %v2765_v18 }
 0x670   : > { %v2725_v0 = vpop.permute.xlu0 %2724 }
 0x671   : > { %v2764_v38 = vsel %vm493_vm0, %v2725_v0, %v2727_v42  ;;  %2858 = vmatmul.mubr.bf16.gmra.mrb[16].mxu0 %v4385_v7 }
 0x672   : > { %2891 = vmatpush1.bf16.msra.mxu0 %v2764_v38  ;;  %2867 = vmatprep.mubr.bf16.mxu0 %v4386_v36 }
 0x679   : > { %2868 = vmatmul.mubr.bf16.gmra.mrb[20].mxu0 %v4388_v30 }
 0x67a   : > { %2877 = vmatprep.mubr.bf16.mxu0 %v4389_v60 }
 0x67d   : > { %v2519_v53 = vpop.permute.xlu1 %2518 }
 0x681   : > { %2878 = vmatmul.mubr.bf16.gmra.mrb[24].mxu0 %v4391_v28  ;;  %v2524_v40 = vpop.permute.xlu0 %2523  ;;  %v2529_v5 = vpop.permute.xlu1 %2528 }
 0x682   : > { %2920 = vmatprep.mubr.bf16.mxu0 %v4411_v1 }
 0x685   : > { %v2534_v45 = vpop.permute.xlu0 %2533  ;;  %v2539_v17 = vpop.permute.xlu1 %2538 }
 0x689   : > { %4081 = vmatmul.mubr.msk.bf16.vlgmr.msra.gmra.mrb[12].mxu0 %vm2802_vm14, %v4392_v44  ;;  %v2544_v37 = vpop.permute.xlu0 %2543 }
 0x68a   : > { %2930 = vmatprep.mubr.bf16.mxu0 %v4411_v1 }
 0x691   : > { %4082 = vmatmul.mubr.msk.bf16.gmra.mrb[16].mxu0 %vm2802_vm14, %v4393_v14 }
 0x692   : > { %2940 = vmatprep.mubr.bf16.mxu0 %v4411_v1 }
 0x699   : > { %4083 = vmatmul.mubr.msk.bf16.gmra.mrb[20].mxu0 %vm2802_vm14, %v4394_v39 }
 0x69a   : > { %2950 = vmatprep.mubr.bf16.mxu0 %v4411_v1 }
 0x6a1   : > { %4084 = vmatmul.mubr.msk.bf16.gmra.mrb[24].mxu0 %vm2802_vm14, %v4395_v47  ;;  %v2549_v47 = vpop.permute.xlu1 %2548  ;;  %vm6956_vm14 = vcmp.ne.s16.totalorder %v4568_v24, 0 }
 0x6a2   : > { %3954 = vmatprep.mubr.bf16.mxu0 %v4411_v1 }
 0x75c   : > { %v2922_v2 = vpop.f32.mrb[12].mxu0 }
 0x75d   : > { %v4094_v16 = vadd.f32 %v2922_v2, %v2519_v53  ;;  %v2924_v20 = vpop.f32.mrb[13].mxu0 }
 0x75e   : > { %v4095_v12 = vadd.f32 %v2924_v20, %v2519_v53  ;;  %v2926_v35 = vpop.f32.mrb[14].mxu0 }
 0x75f   : > { %v4096_v46 = vadd.f32 %v2926_v35, %v2524_v40  ;;  %v2928_v21 = vpop.f32.mrb[15].mxu0  ;;  %v2961_v34 = vmax.f32 %v4094_v16, 0.0 }
 0x760   : > { %v4097_v15 = vadd.f32 %v2928_v21, %v2524_v40  ;;  %v2962_v6 = vmax.f32 %v4095_v12, 0.0  ;;  %v2554_v12 = vpop.permute.xlu0 %2553 }
 0x761   : > { %v2963_v8 = vmax.f32 %v4096_v46, 0.0 }
 0x762   : > { %v2964_v19 = vmax.f32 %v4097_v15, 0.0 }
 0x763   : > { %v2977_v57 = vpack.c.bf16 %v2963_v8, %v2961_v34 }
 0x764   : > { %v6052_v50 = vpack.c.bf16 %v2964_v19, %v2962_v6  ;;  %v2932_v41 = vpop.f32.mrb[16].mxu0 }
 0x765   : > { %v4098_v1 = vadd.f32 %v2932_v41, %v2529_v5  ;;  %v2934_v13 = vpop.f32.mrb[17].mxu0  ;;  %3221 = vrot.lane.b32.xlu0 %v2977_v57, %s4417_s20  ;;  %3103 = vrot.lane.b32.xlu1 %v2977_v57, %s4413_s16  ;;  %v3018_v58 = vsel %vm447_vm15, %v2977_v57, 0  ;;  %v3030_v31 = vsel %vm459_vm4, %v2977_v57, 0  ;;  %v3053_v38 = vsel %vm471_vm9, %v2977_v57, 0 }
 0x766   : > { %v4099_v56 = vadd.f32 %v2934_v13, %v2529_v5  ;;  %v2936_v10 = vpop.f32.mrb[18].mxu0  ;;  %v3006_v30 = vsel %vm421_vm5, %v2977_v57, 0  ;;  %v3065_v16 = vsel %vm6952_vm13, %v2977_v57, 0  ;;  %v3077_v8 = vsel %vm6953_vm10, %v2977_v57, 0 }
 0x767   : > { %v4100_v3 = vadd.f32 %v2936_v10, %v2534_v45  ;;  %v2938_v63 = vpop.f32.mrb[19].mxu0  ;;  %v2965_v61 = vmax.f32 %v4098_v1, 0.0  ;;  %vm6957_vm13 = vcmp.ne.s16.totalorder %v4632_v51, 0  ;;  %vm6958_vm10 = vcmp.ne.s16.totalorder %v4645_v54, 0 }
 0x768   : > { %v4101_v33 = vadd.f32 %v2938_v63, %v2534_v45  ;;  %v2966_v22 = vmax.f32 %v4099_v56, 0.0  ;;  %v3019_v45 = vsel %vm6954_vm12, %v6052_v50, 0  ;;  %v3031_v56 = vsel %vm6956_vm14, %v6052_v50, 0 }
 0x769   : > { %v2967_v11 = vmax.f32 %v4100_v3, 0.0  ;;  %3341 = vrot.lane.b32.xlu0 %v2977_v57, %s4422_s25  ;;  %3147 = vrot.lane.b32.xlu1 %v3018_v58, %s4418_s21  ;;  %v3054_v57 = vsel %vm6955_vm7, %v6052_v50, 0  ;;  %v3066_v10 = vsel %vm6957_vm13, %v6052_v50, 0  ;;  %v3007_v3 = vsel %vm422_vm3, %v6052_v50, 0  ;;  %vm6959_vm7 = vmmov %vm6956_vm14 }
 0x76a   : > { %v2968_v43 = vmax.f32 %v4101_v33, 0.0  ;;  %v3078_v63 = vsel %vm6958_vm10, %v6052_v50, 0  ;;  %vm6960_vm14 = vcmp.ne.s16.totalorder %v4702_v4, 0  ;;  %vm6961_vm13 = vcmp.ne.s16.totalorder %v4574_v27, 0 }
 0x76b   : > { %v6060_v9 = vpack.c.bf16 %v2967_v11, %v2965_v61  ;;  %vm6962_vm10 = vcmp.ne.s16.totalorder %v4632_v51, 0 }
 0x76c   : > { %v6062_v26 = vpack.c.bf16 %v2968_v43, %v2966_v22  ;;  %v2942_v49 = vpop.f32.mrb[20].mxu0  ;;  %v6147_v22 = vpop.permute.xlu0 %4288 }
 0x76d   : > { %v4102_v55 = vadd.f32 %v2942_v49, %v2539_v17  ;;  %v2944_v52 = vpop.f32.mrb[21].mxu0  ;;  %3105 = vrot.lane.b32.xlu0 %v6052_v50, %s4413_s16  ;;  %3191 = vrot.lane.b32.xlu1 %v3030_v31, %s4419_s22  ;;  %v3033_v58 = vsel %vm459_vm4, %v6060_v9, 0  ;;  %v3009_v11 = vsel %vm421_vm5, %v6060_v9, 0  ;;  %v3068_v31 = vsel %vm6961_vm13, %v6060_v9, 0 }
 0x76e   : > { %v4103_v42 = vadd.f32 %v2944_v52, %v2539_v17  ;;  %v2946_v18 = vpop.f32.mrb[22].mxu0  ;;  %v3022_v33 = vsel %vm6954_vm12, %v6062_v26, 0  ;;  %v3034_v61 = vsel %vm6959_vm7, %v6062_v26, 0  ;;  %v3010_v43 = vsel %vm422_vm3, %v6062_v26, 0 }
 0x76f   : > { %v4104_v7 = vadd.f32 %v2946_v18, %v2544_v37  ;;  %v2948_v36 = vpop.f32.mrb[23].mxu0  ;;  %v2969_v60 = vmax.f32 %v4102_v55, 0.0  ;;  %v3056_v17 = vsel %vm471_vm9, %v6060_v9, 0  ;;  %v3057_v49 = vsel %vm6960_vm14, %v6062_v26, 0  ;;  %vm6965_vm14 = vmmov %vm6961_vm13 }
 0x770   : > { %v4105_v0 = vadd.f32 %v2948_v36, %v2544_v37  ;;  %v2970_v44 = vmax.f32 %v4103_v42, 0.0  ;;  %v6165_v55 = vpop.permute.xlu0 %4298  ;;  %v3069_v52 = vsel %vm6962_vm10, %v6062_v26, 0  ;;  %vm6963_vm12 = vcmp.ne.s16.totalorder %v4645_v54, 0 }
 0x771   : > { %v2971_v28 = vmax.f32 %v4104_v7, 0.0  ;;  %3253 = vrot.lane.b32.xlu0 %v3053_v38, %s4420_s23  ;;  %3474 = vrot.lane.b32.xlu1 %v3006_v30, %s4416_s19  ;;  %v3081_v42 = vsel %vm6963_vm12, %v6062_v26, 0  ;;  %vm6964_vm7 = vcmp.ne.s16.totalorder %v4576_v29, 0  ;;  %vm6966_vm13 = vcmp.ne.s16.totalorder %v4566_v23, 0 }
 0x772   : > { %v2972_v14 = vmax.f32 %v4105_v0, 0.0  ;;  %v3080_v18 = vsel %vm6964_vm7, %v6060_v9, 0  ;;  %vm6967_vm10 = vcmp.ne.s16.totalorder %v4568_v24, 0  ;;  %vm6968_vm12 = vmmov %vm6964_vm7  ;;  %vm6969_vm7 = vcmp.ne.s16.totalorder %v4702_v4, 0 }
 0x773   : > { %v6075_v39 = vpack.c.bf16 %v2971_v28, %v2969_v60 }
 0x774   : > { %v6077_v53 = vpack.c.bf16 %v2972_v14, %v2970_v44  ;;  %v2952_v2 = vpop.f32.mrb[24].mxu0  ;;  %v6173_v37 = vpop.permute.xlu0 %4308 }
 0x775   : > { %v4106_v20 = vadd.f32 %v2952_v2, %v2549_v47  ;;  %v2954_v40 = vpop.f32.mrb[25].mxu0  ;;  %3297 = vrot.lane.b32.xlu0 %v3065_v16, %s4421_s24  ;;  %3223 = vrot.lane.b32.xlu1 %v6052_v50, %s4417_s20  ;;  %v3059_v36 = vsel %vm471_vm9, %v6075_v39, 0  ;;  %v3024_v0 = vsel %vm447_vm15, %v6075_v39, 0  ;;  %v3071_v38 = vsel %vm6965_vm14, %v6075_v39, 0 }
 0x776   : > { %v4107_v35 = vadd.f32 %v2954_v40, %v2549_v47  ;;  %v2956_v46 = vpop.f32.mrb[26].mxu0  ;;  %v3036_v30 = vsel %vm459_vm4, %v6075_v39, 0  ;;  %v3012_v44 = vsel %vm421_vm5, %v6075_v39, 0  ;;  %v3025_v2 = vsel %vm6966_vm13, %v6077_v53, 0 }
 0x777   : > { %v4108_v21 = vadd.f32 %v2956_v46, %v2554_v12  ;;  %v2958_v15 = vpop.f32.mrb[27].mxu0  ;;  %v2973_v6 = vmax.f32 %v4106_v20, 0.0  ;;  %v3037_v16 = vsel %vm6967_vm10, %v6077_v53, 0  ;;  %v3083_v20 = vsel %vm6968_vm12, %v6075_v39, 0  ;;  %vm6972_vm10 = vmmov %vm6968_vm12 }
 0x778   : > { %v4109_v34 = vadd.f32 %v2958_v15, %v2554_v12  ;;  %v2974_v5 = vmax.f32 %v4107_v35, 0.0  ;;  %v6187_v7 = vpop.permute.xlu0 %4318  ;;  %v3013_v35 = vsel %vm422_vm3, %v6077_v53, 0  ;;  %v3060_v46 = vsel %vm6969_vm7, %v6077_v53, 0 }
 0x779   : > { %v2975_v19 = vmax.f32 %v4108_v21, 0.0  ;;  %3385 = vrot.lane.b32.xlu0 %v3077_v8, %s4423_s26  ;;  %3343 = vrot.lane.b32.xlu1 %v6052_v50, %s4422_s25  ;;  %v3021_v50 = vsel %vm447_vm15, %v6060_v9, 0  ;;  %vm6970_vm14 = vcmp.ne.s16.totalorder %v4645_v54, 0  ;;  %vm6971_vm13 = vcmp.ne.s16.totalorder %v4632_v51, 0 }
 0x77a   : > { %v2976_v41 = vmax.f32 %v4109_v34, 0.0  ;;  %v3084_v15 = vsel %vm6970_vm14, %v6077_v53, 0  ;;  %v3072_v34 = vsel %vm6971_vm13, %v6077_v53, 0  ;;  %vm6973_vm12 = vcmp.ne.s16.totalorder %v4566_v23, 0 }
 0x77b   : > { %v6089_v1 = vpack.c.bf16 %v2975_v19, %v2973_v6 }
 0x77c   : > { %v6091_v13 = vpack.c.bf16 %v2976_v41, %v2974_v5 }
 0x77d   : > { %3149 = vrot.lane.b32.xlu0 %v3019_v45, %s4418_s21  ;;  %3255 = vrot.lane.b32.xlu1 %v3054_v57, %s4420_s23  ;;  %v3086_v45 = vsel %vm6972_vm10, %v6089_v1, 0  ;;  %v3027_v57 = vsel %vm447_vm15, %v6089_v1, 0  ;;  %v3039_v29 = vsel %vm459_vm4, %v6089_v1, 0  ;;  %vm6974_vm15 = vcmp.ne.s16.totalorder %v4568_v24, 0  ;;  %vm6975_vm4 = vmmov %vm6969_vm7 }
 0x77e   : > { %v3015_v23 = vsel %vm421_vm5, %v6089_v1, 0  ;;  %v3062_v24 = vsel %vm471_vm9, %v6089_v1, 0  ;;  %vm6976_vm5 = vcmp.ne.s16.totalorder %v4574_v27, 0  ;;  %vm6977_vm9 = vmmov %vm6971_vm13  ;;  %vm6979_vm7 = vcmask 900096  }
 0x77f   : > { %v3074_v32 = vsel %vm6976_vm5, %v6089_v1, 0  ;;  %vm6981_vm13 = vmmov %vm6979_vm7 }
 0x780   : > { %vm6982_vm10 = vmmov %vm6979_vm7 }
 0x781   : > { %3193 = vrot.lane.b32.xlu0 %v3031_v56, %s4419_s22  ;;  %3299 = vrot.lane.b32.xlu1 %v3066_v10, %s4421_s24 }
 0x785   : > { %3476 = vrot.lane.b32.xlu0 %v3007_v3, %s4416_s19  ;;  %3387 = vrot.lane.b32.xlu1 %v3078_v63, %s4423_s26  ;;  %v3028_v3 = vsel %vm6973_vm12, %v6091_v13, 0 }
 0x789   : > { %3347 = vrot.lane.b32.xlu1 %v6060_v9, %s4422_s25  ;;  %3109 = vrot.lane.b32.xlu0 %v6060_v9, %s4413_s16 }
 0x78d   : > { %3111 = vrot.lane.b32.xlu1 %v6062_v26, %s4413_s16  ;;  %3225 = vrot.lane.b32.xlu0 %v6060_v9, %s4417_s20  ;;  %v6195_v9 = vpop.permute.xlu0 %4323 }
 0x791   : > { %3227 = vrot.lane.b32.xlu1 %v6062_v26, %s4417_s20  ;;  %3153 = vrot.lane.b32.xlu0 %v3021_v50, %s4418_s21  ;;  %v6215_v28 = vpop.permute.xlu0 %4333  ;;  %v3040_v50 = vsel %vm6974_vm15, %v6091_v13, 0 }
 0x795   : > { %3155 = vrot.lane.b32.xlu1 %v3022_v33, %s4418_s21  ;;  %3197 = vrot.lane.b32.xlu0 %v3033_v58, %s4419_s22  ;;  %v6225_v47 = vpop.permute.xlu0 %4343  ;;  %v3016_v58 = vsel %vm422_vm3, %v6091_v13, 0  ;;  %vm6978_vm3 = vmmov %vm6970_vm14 }
 0x796   : > { %v3087_v4 = vsel %vm6978_vm3, %v6091_v13, 0  ;;  %vm6980_vm14 = vmmov %vm6979_vm7 }
 0x799   : > { %3199 = vrot.lane.b32.xlu1 %v3034_v61, %s4419_s22  ;;  %3480 = vrot.lane.b32.xlu0 %v3009_v11, %s4416_s19  ;;  %v6243_v12 = vpop.permute.xlu0 %4348  ;;  %v3063_v11 = vsel %vm6975_vm4, %v6091_v13, 0 }
 0x79d   : > { %3482 = vrot.lane.b32.xlu1 %v3010_v43, %s4416_s19  ;;  %3259 = vrot.lane.b32.xlu0 %v3056_v17, %s4420_s23  ;;  %v6255_v21 = vpop.permute.xlu0 %4353  ;;  %v3075_v17 = vsel %vm6977_vm9, %v6091_v13, 0  ;;  %vm6991_vm9 = vcmask 769024  }
 0x79e   : > { %vm6992_vm3 = vmmov %vm6991_vm9 }
 0x7a1   : > { %3261 = vrot.lane.b32.xlu1 %v3057_v49, %s4420_s23  ;;  %3303 = vrot.lane.b32.xlu0 %v3068_v31, %s4421_s24  ;;  %v6271_v6 = vpop.permute.xlu0 %4358 }
 0x7a5   : > { %3305 = vrot.lane.b32.xlu1 %v3069_v52, %s4421_s24  ;;  %3349 = vrot.lane.b32.xlu0 %v6062_v26, %s4422_s25  ;;  %v6193_v26 = vpop.permute.xlu1 %4283 }
 0x7a6   : > { %v4285_v49 = vunpack.i.l.bf16 %v6193_v26 }
 0x7a9   : > { %3393 = vrot.lane.b32.xlu1 %v3081_v42, %s4423_s26  ;;  %3391 = vrot.lane.b32.xlu0 %v3080_v18, %s4423_s26  ;;  %v6213_v60 = vpop.permute.xlu1 %4293 }
 0x7ad   : > { %3229 = vrot.lane.b32.xlu1 %v6075_v39, %s4417_s20  ;;  %3115 = vrot.lane.b32.xlu0 %v6075_v39, %s4413_s16  ;;  %v6223_v14 = vpop.permute.xlu1 %4303 }
 0x7b1   : > { %3117 = vrot.lane.b32.xlu1 %v6077_v53, %s4413_s16  ;;  %3353 = vrot.lane.b32.xlu0 %v6075_v39, %s4422_s25  ;;  %v6241_v40 = vpop.permute.xlu1 %4313 }
 0x7b2   : > { %v4315_v54 = vunpack.i.l.bf16 %v6241_v40 }
 0x7b5   : > { %3265 = vrot.lane.b32.xlu1 %v3059_v36, %s4420_s23  ;;  %3159 = vrot.lane.b32.xlu0 %v3024_v0, %s4418_s21  ;;  %v6253_v39 = vpop.permute.xlu1 %4328 }
 0x7b9   : > { %3309 = vrot.lane.b32.xlu1 %v3071_v38, %s4421_s24  ;;  %3203 = vrot.lane.b32.xlu0 %v3036_v30, %s4419_s22  ;;  %v6269_v8 = vpop.permute.xlu1 %4338 }
 0x7bd   : > { %3355 = vrot.lane.b32.xlu1 %v6077_v53, %s4422_s25  ;;  %3486 = vrot.lane.b32.xlu0 %v3012_v44, %s4416_s19  ;;  %v4325_v44 = vunpack.i.l.bf16 %v6195_v9 }
 0x7c1   : > { %3161 = vrot.lane.b32.xlu1 %v3025_v2, %s4418_s21  ;;  %3231 = vrot.lane.b32.xlu0 %v6077_v53, %s4417_s20  ;;  %v4295_v2 = vunpack.i.l.bf16 %v6213_v60 }
 0x7c5   : > { %3205 = vrot.lane.b32.xlu1 %v3037_v16, %s4419_s22  ;;  %3397 = vrot.lane.b32.xlu0 %v3083_v20, %s4423_s26 }
 0x7c9   : > { %3488 = vrot.lane.b32.xlu1 %v3013_v35, %s4416_s19  ;;  %3267 = vrot.lane.b32.xlu0 %v3060_v46, %s4420_s23 }
 0x7cd   : > { %3399 = vrot.lane.b32.xlu1 %v3084_v15, %s4423_s26  ;;  %3311 = vrot.lane.b32.xlu0 %v3072_v34, %s4421_s24  ;;  %v4305_v15 = vunpack.i.l.bf16 %v6223_v14 }
 0x7d1   : > { %3123 = vrot.lane.b32.xlu0 %v6091_v13, %s4413_s16  ;;  %3121 = vrot.lane.b32.xlu1 %v6089_v1, %s4413_s16 }
 0x7d5   : > { %3235 = vrot.lane.b32.xlu0 %v6091_v13, %s4417_s20  ;;  %3233 = vrot.lane.b32.xlu1 %v6089_v1, %s4417_s20 }
 0x7d7   : > { %v3104_v53 = vpop.permute.xlu1 %3103  ;;  %v6277_v19 = vpop.permute.xlu0 %3221 }
 0x7d9   : > { %3361 = vrot.lane.b32.xlu0 %v6091_v13, %s4422_s25  ;;  %3359 = vrot.lane.b32.xlu1 %v6089_v1, %s4422_s25  ;;  %v3125_v13 = vsel %vm456_vm8, %v4285_v49, %v3104_v53 }
 0x7db   : > { %v6283_v5 = vpop.permute.xlu1 %3147  ;;  %v6285_v41 = vpop.permute.xlu0 %3341 }
 0x7dc   : > { %v3169_v35 = vsel %vm521_vm2, %v4295_v2, %v6283_v5 }
 0x7dd   : > { %3403 = vrot.lane.b32.xlu0 %v3086_v45, %s4423_s26  ;;  %3165 = vrot.lane.b32.xlu1 %v3027_v57, %s4418_s21 }
 0x7df   : > { %v6295_v56 = vpop.permute.xlu1 %3191  ;;  %v3106_v10 = vpop.permute.xlu0 %3105 }
 0x7e0   : > { %v3126_v30 = vsel %vm456_vm8, %v3104_v53, %v3106_v10  ;;  %v3213_v45 = vsel %vm533_vm1, %v4305_v15, %v6295_v56 }
 0x7e1   : > { %3167 = vrot.lane.b32.xlu0 %v3028_v3, %s4418_s21  ;;  %3209 = vrot.lane.b32.xlu1 %v3039_v29, %s4419_s22 }
 0x7e3   : > { %v3475_v48 = vpop.permute.xlu1 %3474  ;;  %v6305_v63 = vpop.permute.xlu0 %3253 }
 0x7e4   : > { %v3688_v42 = vsel %vm493_vm0, %v4315_v54, %v3475_v48  ;;  %v4290_v54 = vunpack.i.l.bf16 %v6147_v22 }
 0x7e5   : > { %3211 = vrot.lane.b32.xlu0 %v3040_v50, %s4419_s22  ;;  %3492 = vrot.lane.b32.xlu1 %v3015_v23, %s4416_s19 }
 0x7e7   : > { %v3224_v59 = vpop.permute.xlu1 %3223  ;;  %v6315_v33 = vpop.permute.xlu0 %3297 }
 0x7e8   : > { %v3237_v3 = vsel %vm418_vm6, %v6277_v19, %v3224_v59 }
 0x7e9   : > { %3494 = vrot.lane.b32.xlu0 %v3016_v58, %s4416_s19  ;;  %3271 = vrot.lane.b32.xlu1 %v3062_v24, %s4420_s23 }
 0x7eb   : > { %v6325_v62 = vpop.permute.xlu1 %3343  ;;  %v6327_v61 = vpop.permute.xlu0 %3385 }
 0x7ed   : > { %3273 = vrot.lane.b32.xlu0 %v3063_v11, %s4420_s23  ;;  %3315 = vrot.lane.b32.xlu1 %v3074_v32, %s4421_s24 }
 0x7ef   : > { %v6337_v25 = vpop.permute.xlu1 %3255  ;;  %v3150_v43 = vpop.permute.xlu0 %3149 }
 0x7f0   : > { %v3278_v46 = vsel %vm6979_vm7, %v6337_v25, %v4325_v44  ;;  %v3170_v58 = vsel %vm521_vm2, %v6283_v5, %v3150_v43  ;;  %v4296_v44 = vunpack.i.h.bf16 %v6213_v60 }
 0x7f1   : > { %3317 = vrot.lane.b32.xlu0 %v3075_v17, %s4421_s24  ;;  %3405 = vrot.lane.b32.xlu1 %v3087_v4, %s4423_s26  ;;  %v3277_v4 = vsel %vm6980_vm14, %v6305_v63, %v6337_v25 }
 0x7f3   : > { %v6347_v27 = vpop.permute.xlu1 %3299  ;;  %v3194_v1 = vpop.permute.xlu0 %3193 }
 0x7f4   : > { %v3214_v32 = vsel %vm533_vm1, %v6295_v56, %v3194_v1 }
 0x7f5   : > { %3568 = vrot.lane.b32.xlu1 %v6277_v19, %s4416_s19  ;;  %3500 = vrot.lane.b32.xlu0 %v3106_v10, %s4416_s19 }
 0x7f7   : > { %v6353_v51 = vpop.permute.xlu1 %3387  ;;  %v3477_v31 = vpop.permute.xlu0 %3476 }
 0x7f8   : > { %v3689_v52 = vsel %vm493_vm0, %v3475_v48, %v3477_v31  ;;  %v4316_v48 = vunpack.i.h.bf16 %v6241_v40 }
 0x7f9   : > { %3496 = vrot.lane.b32.xlu1 %v3125_v13, %s4416_s19  ;;  %3572 = vrot.lane.b32.xlu0 %v3224_v59, %s4416_s19 }
 0x7fa   : > { %3836 = vmatprep.subr.bf16.mxu1 %v3689_v52 }
 0x7fb   : > { %3837 = vmatpush1.bf16.msra.mxu1 %v3688_v42  ;;  %v6361_v18 = vpop.permute.xlu1 %3347  ;;  %v3110_v36 = vpop.permute.xlu0 %3109 }
 0x7fd   : > { %3592 = vrot.lane.b32.xlu1 %v6305_v63, %s4416_s19  ;;  %3524 = vrot.lane.b32.xlu0 %v3150_v43, %s4416_s19  ;;  %v4286_v63 = vunpack.i.h.bf16 %v6193_v26 }
 0x7ff   : > { %v3112_v0 = vpop.permute.xlu1 %3111  ;;  %v3226_v38 = vpop.permute.xlu0 %3225  ;;  %v3127_v52 = vsel %vm456_vm8, %v4286_v63, %v3110_v36 }
 0x800   : > { %v3128_v29 = vsel %vm456_vm8, %v3110_v36, %v3112_v0 }
 0x801   : > { %3498 = vrot.lane.b32.xlu1 %v3126_v30, %s4416_s19  ;;  %3548 = vrot.lane.b32.xlu0 %v3194_v1, %s4416_s19 }
 0x803   : > { %v3228_v16 = vpop.permute.xlu1 %3227  ;;  %v6371_v20 = vpop.permute.xlu0 %3153 }
 0x804   : > { %v3238_v19 = vsel %vm418_vm6, %v3226_v38, %v3228_v16 }
 0x805   : > { %3520 = vrot.lane.b32.xlu1 %v3169_v35, %s4416_s19  ;;  %3596 = vrot.lane.b32.xlu0 %v3278_v46, %s4416_s19  ;;  %v3171_v35 = vsel %vm521_vm2, %v4296_v44, %v6371_v20 }
 0x807   : > { %v3156_v34 = vpop.permute.xlu1 %3155  ;;  %v6380_v53 = vpop.permute.xlu0 %3197 }
 0x808   : > { %v3172_v5 = vsel %vm521_vm2, %v6371_v20, %v3156_v34 }
 0x809   : > { %3544 = vrot.lane.b32.xlu1 %v3213_v45, %s4416_s19  ;;  %3574 = vrot.lane.b32.xlu0 %v3226_v38, %s4416_s19 }
 0x80b   : > { %v3200_v57 = vpop.permute.xlu1 %3199  ;;  %v3481_v10 = vpop.permute.xlu0 %3480 }
 0x80c   : > { %v3690_v59 = vsel %vm493_vm0, %v4316_v48, %v3481_v10  ;;  %v3216_v56 = vsel %vm533_vm1, %v6380_v53, %v3200_v57 }
 0x80d   : > { %3570 = vrot.lane.b32.xlu1 %v3237_v3, %s4416_s19  ;;  %3504 = vrot.lane.b32.xlu0 %v3128_v29, %s4416_s19 }
 0x80f   : > { %v3483_v50 = vpop.permute.xlu1 %3482  ;;  %v6392_v23 = vpop.permute.xlu0 %3259 }
 0x810   : > { %v3691_v24 = vsel %vm493_vm0, %v3481_v10, %v3483_v50 }
 0x811   : > { %3522 = vrot.lane.b32.xlu1 %v3170_v58, %s4416_s19  ;;  %3838 = vmatprep.subr.bf16.mxu1 %v3691_v24 }
 0x812   : > { %3576 = vrot.lane.b32.xlu0 %v3238_v19, %s4416_s19  ;;  %3839 = vmatpush1.bf16.msra.mxu1 %v3690_v59  ;;  %v4310_v59 = vunpack.i.l.bf16 %v6173_v37 }
 0x813   : > { %v6401_v11 = vpop.permute.xlu1 %3261  ;;  %v6403_v40 = vpop.permute.xlu0 %3303 }
 0x814   : > { %v3279_v31 = vsel %vm6981_vm13, %v6392_v23, %v6401_v11  ;;  %vm6995_vm13 = vmmov %vm6992_vm3 }
 0x815   : > { %3546 = vrot.lane.b32.xlu1 %v3214_v32, %s4416_s19 }
 0x816   : > { %3528 = vrot.lane.b32.xlu0 %v3172_v5, %s4416_s19 }
 0x817   : > { %v6411_v43 = vpop.permute.xlu1 %3305  ;;  %v6413_v17 = vpop.permute.xlu0 %3349 }
 0x819   : > { %3594 = vrot.lane.b32.xlu1 %v3277_v4, %s4416_s19 }
 0x81a   : > { %3552 = vrot.lane.b32.xlu0 %v3216_v56, %s4416_s19 }
 0x81b   : > { %v6422_v1 = vpop.permute.xlu1 %3393  ;;  %v6424_v49 = vpop.permute.xlu0 %3391 }
 0x81d   : > { %3506 = vrot.lane.b32.xlu1 %v3112_v0, %s4416_s19 }
 0x81e   : > { %3600 = vrot.lane.b32.xlu0 %v3279_v31, %s4416_s19 }
 0x81f   : > { %v3230_v25 = vpop.permute.xlu1 %3229  ;;  %v3116_v13 = vpop.permute.xlu0 %3115 }
 0x820   : > { %v3129_v42 = vsel %vm456_vm8, %v4290_v54, %v3116_v13 }
 0x821   : > { %3502 = vrot.lane.b32.xlu1 %v3127_v52, %s4416_s19 }
 0x822   : > { %3508 = vrot.lane.b32.xlu0 %v3129_v42, %s4416_s19 }
 0x823   : > { %v3118_v0 = vpop.permute.xlu1 %3117  ;;  %v6437_v38 = vpop.permute.xlu0 %3353 }
 0x824   : > { %v3130_v3 = vsel %vm456_vm8, %v3116_v13, %v3118_v0 }
 0x825   : > { %3578 = vrot.lane.b32.xlu1 %v3228_v16, %s4416_s19  ;;  %v4306_v16 = vunpack.i.h.bf16 %v6223_v14  ;;  %v4320_v14 = vunpack.i.l.bf16 %v6187_v7 }
 0x827   : > { %v6440_v30 = vpop.permute.xlu1 %3265  ;;  %v3160_v26 = vpop.permute.xlu0 %3159  ;;  %v3215_v60 = vsel %vm533_vm1, %v4306_v16, %v6380_v53 }
 0x829   : > { %3530 = vrot.lane.b32.xlu1 %v3156_v34, %s4416_s19 }
 0x82b   : > { %v6444_v2 = vpop.permute.xlu1 %3309  ;;  %v3204_v36 = vpop.permute.xlu0 %3203 }
 0x82c   : > { %v3217_v56 = vsel %vm533_vm1, %v4310_v59, %v3204_v36 }
 0x82d   : > { %3526 = vrot.lane.b32.xlu1 %v3171_v35, %s4416_s19 }
 0x82f   : > { %v6449_v46 = vpop.permute.xlu1 %3355  ;;  %v3487_v15 = vpop.permute.xlu0 %3486 }
 0x830   : > { %v3692_v58 = vsel %vm493_vm0, %v4320_v14, %v3487_v15 }
 0x831   : > { %3554 = vrot.lane.b32.xlu1 %v3200_v57, %s4416_s19  ;;  %v4300_v57 = vunpack.i.l.bf16 %v6165_v55 }
 0x833   : > { %v3162_v45 = vpop.permute.xlu1 %3161  ;;  %v3232_v10 = vpop.permute.xlu0 %3231  ;;  %v3173_v53 = vsel %vm521_vm2, %v4300_v57, %v3160_v26 }
 0x834   : > { %3584 = vrot.lane.b32.xlu0 %v3232_v10, %s4416_s19  ;;  %v3174_v4 = vsel %vm521_vm2, %v3160_v26, %v3162_v45  ;;  %v3239_v63 = vsel %vm418_vm6, %v3230_v25, %v3232_v10 }
 0x835   : > { %3550 = vrot.lane.b32.xlu1 %v3215_v60, %s4416_s19  ;;  %v4301_v60 = vunpack.i.h.bf16 %v6165_v55  ;;  %v4311_v55 = vunpack.i.h.bf16 %v6173_v37 }
 0x837   : > { %v3206_v34 = vpop.permute.xlu1 %3205  ;;  %v6457_v20 = vpop.permute.xlu0 %3397 }
 0x838   : > { %3510 = vrot.lane.b32.xlu0 %v3130_v3, %s4416_s19  ;;  %v3218_v42 = vsel %vm533_vm1, %v3204_v36, %v3206_v34 }
 0x839   : > { %3580 = vrot.lane.b32.xlu1 %v3230_v25, %s4416_s19 }
 0x83b   : > { %v3489_v29 = vpop.permute.xlu1 %3488  ;;  %v6464_v48 = vpop.permute.xlu0 %3267 }
 0x83c   : > { %3532 = vrot.lane.b32.xlu0 %v3173_v53, %s4416_s19  ;;  %v3693_v50 = vsel %vm493_vm0, %v3487_v15, %v3489_v29 }
 0x83d   : > { %3512 = vrot.lane.b32.xlu1 %v3118_v0, %s4416_s19  ;;  %3840 = vmatprep.subr.bf16.mxu1 %v3693_v50  ;;  %v4291_v0 = vunpack.i.h.bf16 %v6147_v22  ;;  %v4326_v22 = vunpack.i.h.bf16 %v6195_v9  ;;  %v4330_v50 = vunpack.i.l.bf16 %v6253_v39 }
 0x83e   : > { %3841 = vmatpush1.bf16.msra.mxu1 %v3692_v58 }
 0x83f   : > { %v6471_v24 = vpop.permute.xlu1 %3399  ;;  %v6473_v19 = vpop.permute.xlu0 %3311  ;;  %v3280_v10 = vsel %vm6982_vm10, %v6401_v11, %v4326_v22  ;;  %vm6996_vm10 = vmmov %vm6992_vm3 }
 0x840   : > { %3560 = vrot.lane.b32.xlu0 %v3206_v34, %s4416_s19  ;;  %v4321_v34 = vunpack.i.h.bf16 %v6187_v7 }
 0x841   : > { %3536 = vrot.lane.b32.xlu1 %v3162_v45, %s4416_s19 }
 0x843   : > { %v3122_v32 = vpop.permute.xlu1 %3121  ;;  %v3124_v5 = vpop.permute.xlu0 %3123 }
 0x844   : > { %3534 = vrot.lane.b32.xlu0 %v3174_v4, %s4416_s19  ;;  %v3131_v35 = vsel %vm456_vm8, %v4291_v0, %v3122_v32  ;;  %v3132_v36 = vsel %vm456_vm8, %v3122_v32, %v3124_v5  ;;  %vm6983_vm8 = vmmov %vm6979_vm7  ;;  %v4398_v0 = vld [vmem:[%s6880_s7 + $0x4] ss:$20 sps:$4 sm:$0x1f]  }
 0x845   : > { %3556 = vrot.lane.b32.xlu1 %v3217_v56, %s4416_s19  ;;  %v3282_v37 = vsel %vm6983_vm8, %v6464_v48, %v4330_v50  ;;  %3868 = vmatprep.mubr.bf16.mxu1 %v4398_v0  ;;  %v3365_v50 = vsel %vm572_vm11, %v6285_v41, %v6325_v62 }
 0x847   : > { %v3234_v31 = vpop.permute.xlu1 %3233  ;;  %v3236_v54 = vpop.permute.xlu0 %3235 }
 0x848   : > { %3586 = vrot.lane.b32.xlu0 %v3234_v31, %s4416_s19  ;;  %v3240_v29 = vsel %vm418_vm6, %v3234_v31, %v3236_v54  ;;  %vm6984_vm6 = vmmov %vm6979_vm7  ;;  %v4335_v31 = vunpack.i.l.bf16 %v6215_v28 }
 0x849   : > { %3582 = vrot.lane.b32.xlu1 %v3239_v63, %s4416_s19  ;;  %v3281_v56 = vsel %vm6984_vm6, %v6440_v30, %v6464_v48  ;;  %vm6993_vm7 = vmmov %vm6984_vm6 }
 0x84a   : > { %vm6994_vm14 = vmmov %vm6984_vm6 }
 0x84b   : > { %v6485_v13 = vpop.permute.xlu1 %3359  ;;  %v6487_v52 = vpop.permute.xlu0 %3361 }
 0x84c   : > { %3518 = vrot.lane.b32.xlu0 %v3124_v5, %s4416_s19 }
 0x84d   : > { %3558 = vrot.lane.b32.xlu1 %v3218_v42, %s4416_s19 }
 0x84f   : > { %v3166_v26 = vpop.permute.xlu1 %3165  ;;  %v6493_v44 = vpop.permute.xlu0 %3403 }
 0x850   : > { %3514 = vrot.lane.b32.xlu0 %v3131_v35, %s4416_s19  ;;  %v3175_v57 = vsel %vm521_vm2, %v4301_v60, %v3166_v26  ;;  %v4336_v60 = vunpack.i.h.bf16 %v6215_v28 }
 0x851   : > { %3590 = vrot.lane.b32.xlu1 %v3236_v54, %s4416_s19 }
 0x853   : > { %v3210_v25 = vpop.permute.xlu1 %3209  ;;  %v3168_v15 = vpop.permute.xlu0 %3167 }
 0x854   : > { %3598 = vrot.lane.b32.xlu0 %v6392_v23, %s4416_s19  ;;  %v3219_v53 = vsel %vm533_vm1, %v4311_v55, %v3210_v25  ;;  %v3176_v32 = vsel %vm521_vm2, %v3166_v26, %v3168_v15  ;;  %vm6985_vm2 = vcmask 785408  }
 0x855   : > { %3516 = vrot.lane.b32.xlu1 %v3132_v36, %s4416_s19  ;;  %v3322_v42 = vsel %vm6985_vm2, %v6347_v27, %v4335_v31  ;;  %vm6986_vm12 = vmmov %vm6985_vm2  ;;  %v4350_v31 = vunpack.i.l.bf16 %v6243_v12 }
 0x856   : > { %v3323_v35 = vsel %vm6986_vm12, %v6403_v40, %v6411_v43  ;;  %vm6987_vm15 = vmmov %vm6985_vm2 }
 0x857   : > { %v3493_v16 = vpop.permute.xlu1 %3492  ;;  %v3212_v45 = vpop.permute.xlu0 %3211 }
 0x858   : > { %3542 = vrot.lane.b32.xlu0 %v3168_v15, %s4416_s19  ;;  %v3694_v11 = vsel %vm493_vm0, %v4321_v34, %v3493_v16  ;;  %v3321_v15 = vsel %vm6987_vm15, %v6315_v33, %v6347_v27 }
 0x859   : > { %3602 = vrot.lane.b32.xlu1 %v3280_v10, %s4416_s19 }
 0x85b   : > { %v6509_v23 = vpop.permute.xlu1 %3271  ;;  %v3495_v3 = vpop.permute.xlu0 %3494 }
 0x85c   : > { %3538 = vrot.lane.b32.xlu0 %v3175_v57, %s4416_s19  ;;  %v3695_v9 = vsel %vm493_vm0, %v3493_v16, %v3495_v3  ;;  %v3220_v16 = vsel %vm533_vm1, %v3210_v25, %v3212_v45  ;;  %vm6988_vm1 = vmmov %vm6985_vm2 }
 0x85d   : > { %3842 = vmatprep.subr.bf16.mxu1 %v3695_v9  ;;  %3566 = vrot.lane.b32.xlu1 %v3212_v45, %s4416_s19  ;;  %v3324_v25 = vsel %vm6988_vm1, %v6411_v43, %v4336_v60  ;;  %v4340_v45 = vunpack.i.l.bf16 %v6269_v8  ;;  %vm6989_vm4 = vmmov %vm6988_vm1 }
 0x85e   : > { %3843 = vmatpush1.bf16.msra.mxu1 %v3694_v11  ;;  %vm6990_vm5 = vmmov %vm6988_vm1  ;;  %v4345_v11 = vunpack.i.l.bf16 %v6225_v47 }
 0x85f   : > { %v6517_v14 = vpop.permute.xlu1 %3315  ;;  %v6519_v7 = vpop.permute.xlu0 %3273  ;;  %v3325_v28 = vsel %vm6990_vm5, %v6444_v2, %v6473_v19  ;;  %vm6997_vm8 = vmmov %vm6988_vm1 }
 0x860   : > { %3588 = vrot.lane.b32.xlu0 %v3240_v29, %s4416_s19  ;;  %vm6998_vm6 = vmmov %vm6988_vm1  ;;  %vm3832_vm1 = vcmask 523264  }
 0x861   : > { %3562 = vrot.lane.b32.xlu1 %v3219_v53, %s4416_s19  ;;  %vm6999_vm2 = vmmov %vm6992_vm3 }
 0x862   : > { %vm7000_vm12 = vmmov %vm6999_vm2 }
 0x863   : > { %v6526_v58 = vpop.permute.xlu1 %3405  ;;  %v6528_v59 = vpop.permute.xlu0 %3317  ;;  %vm7001_vm15 = vmmov %vm6999_vm2 }
 0x864   : > { %3608 = vrot.lane.b32.xlu0 %v3282_v37, %s4416_s19 }
 0x865   : > { %3540 = vrot.lane.b32.xlu1 %v3176_v32, %s4416_s19 }
 0x867   : > { %v6535_v5 = vpop.permute.xlu1 %3568  ;;  %v3501_v4 = vpop.permute.xlu0 %3500 }
 0x868   : > { %3610 = vrot.lane.b32.xlu0 %v6509_v23, %s4416_s19 }
 0x869   : > { %3606 = vrot.lane.b32.xlu1 %v3281_v56, %s4416_s19 }
 0x86b   : > { %v3497_v54 = vpop.permute.xlu1 %3496  ;;  %v3573_v63 = vpop.permute.xlu0 %3572 }
 0x86c   : > { %3620 = vrot.lane.b32.xlu0 %v3322_v42, %s4416_s19  ;;  %v3410_v42 = vsel %vm6992_vm3, %v6353_v51, %v4350_v31 }
 0x86d   : > { %3604 = vrot.lane.b32.xlu1 %v6440_v30, %s4416_s19 }
 0x86f   : > { %v3593_v48 = vpop.permute.xlu1 %3592  ;;  %v3525_v26 = vpop.permute.xlu0 %3524 }
 0x870   : > { %3624 = vrot.lane.b32.xlu0 %v3323_v35, %s4416_s19 }
 0x871   : > { %3618 = vrot.lane.b32.xlu1 %v3321_v15, %s4416_s19 }
 0x873   : > { %v3499_v36 = vpop.permute.xlu1 %3498  ;;  %v3549_v22 = vpop.permute.xlu0 %3548 }
 0x874   : > { %v3696_v30 = vsel %vm493_vm0, %v3497_v54, %v3499_v36  ;;  %3564 = vrot.lane.b32.xlu0 %v3220_v16, %s4416_s19  ;;  %v3697_v10 = vsel %vm493_vm0, %v3499_v36, %v3501_v4  ;;  %v3409_v4 = vsel %vm6991_vm9, %v6327_v61, %v6353_v51  ;;  %v3367_v51 = vsel %vm572_vm11, %v6361_v18, %v6413_v17 }
 0x875   : > { %3844 = vmatprep.subr.bf16.mxu1 %v3697_v10  ;;  %3616 = vrot.lane.b32.xlu1 %v6315_v33, %s4416_s19  ;;  %v3326_v33 = vsel %vm6989_vm4, %v6473_v19, %v4340_v45  ;;  %v3366_v19 = vsel %vm572_vm11, %v6325_v62, %v4345_v11  ;;  %v3327_v45 = vsel %vm6997_vm8, %v6517_v14, %v6528_v59  ;;  %v4356_v11 = vunpack.i.h.bf16 %v6255_v21 }
 0x876   : > { %3845 = vmatpush1.bf16.msra.mxu1 %v3696_v30 }
 0x877   : > { %v3521_v27 = vpop.permute.xlu1 %3520  ;;  %v3597_v34 = vpop.permute.xlu0 %3596 }
 0x878   : > { %3622 = vrot.lane.b32.xlu0 %v6403_v40, %s4416_s19 }
 0x879   : > { %3626 = vrot.lane.b32.xlu1 %v3324_v25, %s4416_s19 }
 0x87b   : > { %v3545_v3 = vpop.permute.xlu1 %3544  ;;  %v3575_v57 = vpop.permute.xlu0 %3574 }
 0x87c   : > { %3632 = vrot.lane.b32.xlu0 %v3326_v33, %s4416_s19 }
 0x87d   : > { %3630 = vrot.lane.b32.xlu1 %v3325_v28, %s4416_s19 }
 0x87f   : > { %v6580_v40 = vpop.permute.xlu1 %3570  ;;  %v3505_v43 = vpop.permute.xlu0 %3504 }
 0x880   : > { %3634 = vrot.lane.b32.xlu0 %v6517_v14, %s4416_s19  ;;  %v6586_v9 = vsel %vm493_vm0, %v6580_v40, %v3573_v63  ;;  %v4360_v14 = vunpack.i.l.bf16 %v6271_v6 }
 0x881   : > { %3628 = vrot.lane.b32.xlu1 %v6444_v2, %s4416_s19 }
 0x883   : > { %v3523_v55 = vpop.permute.xlu1 %3522 }
 0x884   : > { %v6594_v29 = vsel %vm493_vm0, %v3521_v27, %v3523_v55  ;;  %v3577_v53 = vpop.permute.xlu0 %3576  ;;  %3644 = vrot.lane.b32.xlu0 %v3366_v19, %s4416_s19  ;;  %v6601_v37 = vsel %vm493_vm0, %v3523_v55, %v3525_v26  ;;  %v4346_v26 = vunpack.i.h.bf16 %v6225_v47  ;;  %v4331_v47 = vunpack.i.h.bf16 %v6253_v39 }
 0x885   : > { %v6604_v32 = vsel %vm493_vm0, %v3575_v57, %v3577_v53  ;;  %3642 = vrot.lane.b32.xlu1 %v3365_v50, %s4416_s19  ;;  %v3411_v39 = vsel %vm6995_vm13, %v6424_v49, %v6422_v1 }
 0x886   : > { %v3368_v35 = vsel %vm572_vm11, %v6413_v17, %v4346_v26 }
 0x887   : > { %v3547_v2 = vpop.permute.xlu1 %3546 }
 0x888   : > { %v6611_v56 = vsel %vm493_vm0, %v3545_v3, %v3547_v2  ;;  %3666 = vrot.lane.b32.xlu0 %v3409_v4, %s4416_s19  ;;  %v6615_v62 = vsel %vm493_vm0, %v3547_v2, %v3549_v22  ;;  %v6634_v15 = vpop.permute.xlu0 %3528  ;;  %v3284_v22 = vsel %vm6994_vm14, %v6519_v7, %v4331_v47  ;;  %v3415_v2 = vsel %vm7001_vm15, %v6493_v44, %v6526_v58 }
 0x889   : > { %3640 = vrot.lane.b32.xlu1 %v6285_v41, %s4416_s19 }
 0x88b   : > { %v3595_v54 = vpop.permute.xlu1 %3594 }
 0x88c   : > { %v6621_v63 = vsel %vm493_vm0, %v3593_v48, %v3595_v54  ;;  %3664 = vrot.lane.b32.xlu0 %v6327_v61, %s4416_s19  ;;  %v6628_v0 = vsel %vm493_vm0, %v3595_v54, %v3597_v34  ;;  %v3283_v48 = vsel %vm6993_vm7, %v6509_v23, %v6519_v7  ;;  %v6651_v17 = vpop.permute.xlu0 %3552  ;;  %v4351_v7 = vunpack.i.h.bf16 %v6243_v12 }
 0x88d   : > { %3668 = vrot.lane.b32.xlu1 %v3410_v42, %s4416_s19  ;;  %v4355_v34 = vunpack.i.l.bf16 %v6255_v21  ;;  %v3369_v12 = vsel %vm572_vm11, %v6437_v38, %v6449_v46  ;;  %v3424_v42 = vld [vmem:[%s6881_s8 + $0x8] sm:$0x1] }
 0x88e   : > { %v3412_v27 = vsel %vm6996_vm10, %v6422_v1, %v4351_v7 }
 0x88f   : > { %v3507_v41 = vpop.permute.xlu1 %3506 }
 0x890   : > { %3650 = vrot.lane.b32.xlu0 %v3368_v35, %s4416_s19  ;;  %v3699_v61 = vsel %vm493_vm0, %v3505_v43, %v3507_v41  ;;  %v6665_v60 = vpop.permute.xlu0 %3600 }
 0x891   : > { %3846 = vmatprep.subr.bf16.mxu1 %v3699_v61  ;;  %3648 = vrot.lane.b32.xlu1 %v3367_v51, %s4416_s19 }
 0x893   : > { %v3503_v36 = vpop.permute.xlu1 %3502 }
 0x894   : > { %v3698_v16 = vsel %vm493_vm0, %v3503_v36, %v3505_v43  ;;  %3612 = vrot.lane.b32.xlu0 %v3283_v48, %s4416_s19  ;;  %v3509_v1 = vpop.permute.xlu0 %3508  ;;  %v3414_v43 = vsel %vm7000_vm12, %v6471_v24, %v4360_v14 }
 0x895   : > { %3847 = vmatpush1.bf16.msra.mxu1 %v3698_v16  ;;  %3614 = vrot.lane.b32.xlu1 %v3284_v22, %s4416_s19 }
 0x897   : > { %v3579_v30 = vpop.permute.xlu1 %3578 }
 0x898   : > { %3672 = vrot.lane.b32.xlu0 %v3411_v39, %s4416_s19  ;;  %v6658_v23 = vsel %vm493_vm0, %v3577_v53, %v3579_v30  ;;  %v3371_v53 = vsel %vm572_vm11, %v6485_v13, %v6487_v52 }
 0x899   : > { %3646 = vrot.lane.b32.xlu1 %v6361_v18, %s4416_s19  ;;  %v3370_v18 = vsel %vm572_vm11, %v6449_v46, %v4355_v34 }
 0x89b   : > { %v6663_v10 = vpop.permute.xlu1 %3530 }
 0x89c   : > { %3670 = vrot.lane.b32.xlu0 %v6424_v49, %s4416_s19  ;;  %v4341_v49 = vunpack.i.h.bf16 %v6269_v8  ;;  %v3413_v8 = vsel %vm6999_vm2, %v6457_v20, %v6471_v24  ;;  %v3707_v30 = vsel %vm493_vm0, %v6634_v15, %v6663_v10 }
 0x89d   : > { %3674 = vrot.lane.b32.xlu1 %v3412_v27, %s4416_s19 }
 0x89e   : > { %v3328_v57 = vsel %vm6998_vm6, %v6528_v59, %v4341_v49 }
 0x89f   : > { %v6673_v25 = vpop.permute.xlu1 %3526 }
 0x8a0   : > { %3656 = vrot.lane.b32.xlu0 %v3370_v18, %s4416_s19  ;;  %v3706_v7 = vsel %vm493_vm0, %v6673_v25, %v6634_v15 }
 0x8a1   : > { %3654 = vrot.lane.b32.xlu1 %v3369_v12, %s4416_s19 }
 0x8a3   : > { %v6686_v3 = vpop.permute.xlu1 %3554 }
 0x8a4   : > { %3636 = vrot.lane.b32.xlu0 %v3327_v45, %s4416_s19  ;;  %v3715_v45 = vsel %vm493_vm0, %v6651_v17, %v6686_v3 }
 0x8a5   : > { %3638 = vrot.lane.b32.xlu1 %v3328_v57, %s4416_s19 }
 0x8a6   : > { %v6692_v33 = vpop.permute.xlu0 %3584 }
 0x8a7   : > { %v6694_v46 = vpop.permute.xlu1 %3550 }
 0x8a8   : > { %3678 = vrot.lane.b32.xlu0 %v3413_v8, %s4416_s19  ;;  %v3714_v8 = vsel %vm493_vm0, %v6694_v46, %v6651_v17  ;;  %v4396_v17 = vld [vmem:[%s6880_s7] ss:$20 sps:$4 sm:$0x1f]  }
 0x8a9   : > { %3652 = vrot.lane.b32.xlu1 %v6437_v38, %s4416_s19  ;;  %v3372_v38 = vsel %vm572_vm11, %v6487_v52, %v4356_v11  ;;  %v4361_v52 = vunpack.i.h.bf16 %v6271_v6  ;;  %vm7002_vm11 = vmmov %vm6999_vm2  ;;  %v3423_v6 = vld [vmem:[%s6881_s8] sm:$0xff] }
 0x8aa   : > { %v3511_v59 = vpop.permute.xlu0 %3510 }
 0x8ab   : > { %v6703_v28 = vpop.permute.xlu1 %3580  ;;  %v3700_v50 = vsel %vm493_vm0, %v3509_v1, %v3511_v59  ;;  %v3416_v54 = vsel %vm7002_vm11, %v6526_v58, %v4361_v52 }
 0x8ac   : > { %3676 = vrot.lane.b32.xlu0 %v6457_v20, %s4416_s19 }
 0x8ad   : > { %3680 = vrot.lane.b32.xlu1 %v3414_v43, %s4416_s19 }
 0x8ae   : > { %v3533_v55 = vpop.permute.xlu0 %3532 }
 0x8af   : > { %v3513_v19 = vpop.permute.xlu1 %3512 }
 0x8b0   : > { %3662 = vrot.lane.b32.xlu0 %v3372_v38, %s4416_s19  ;;  %v3701_v20 = vsel %vm493_vm0, %v3511_v59, %v3513_v19  ;;  %v4401_v19 = vld [vmem:[%s6880_s7 + $0xc] ss:$20 sps:$4 sm:$0x1f]  }
 0x8b1   : > { %3660 = vrot.lane.b32.xlu1 %v3371_v53, %s4416_s19  ;;  %3848 = vmatprep.subr.bf16.mxu1 %v3701_v20  ;;  %v3720_v53 = vsel %vm493_vm0, %v6535_v5, %v6580_v40 }
 0x8b2   : > { %3849 = vmatpush1.bf16.msra.mxu1 %v3700_v50  ;;  %v3561_v21 = vpop.permute.xlu0 %3560 }
 0x8b3   : > { %v3537_v24 = vpop.permute.xlu1 %3536 }
 0x8b4   : > { %3684 = vrot.lane.b32.xlu0 %v3415_v2, %s4416_s19 }
 0x8b5   : > { %3658 = vrot.lane.b32.xlu1 %v6485_v13, %s4416_s19 }
 0x8b6   : > { %v3535_v4 = vpop.permute.xlu0 %3534 }
 0x8b7   : > { %v3557_v31 = vpop.permute.xlu1 %3556  ;;  %v3709_v34 = vsel %vm493_vm0, %v3535_v4, %v3537_v24 }
 0x8b8   : > { %3682 = vrot.lane.b32.xlu0 %v6493_v44, %s4416_s19 }
 0x8b9   : > { %3686 = vrot.lane.b32.xlu1 %v3416_v54, %s4416_s19 }
 0x8ba   : > { %v6735_v26 = vpop.permute.xlu0 %3586 }
 0x8bb   : > { %v6740_v13 = vpop.permute.xlu1 %3582 }
 0x8bc   : > { %3432 = vperm.xlu0 %4200, %v3424_v42   ;;  %v3725_v24 = vsel %vm493_vm0, %v6740_v13, %v6692_v33  ;;  %v3724_v5 = vsel %vm493_vm0, %v6703_v28, %v6740_v13 }
 0x8bd   : > { %3427 = vperm.xlu1 %4201, %v3423_v6  }
 0x8be   : > { %v3519_v44 = vpop.permute.xlu0 %3518 }
 0x8bf   : > { %v3559_v41 = vpop.permute.xlu1 %3558 }
 0x8c0   : > { %v3717_v59 = vsel %vm493_vm0, %v3559_v41, %v3561_v21 }
 0x8c2   : > { %v3515_v35 = vpop.permute.xlu0 %3514 }
 0x8c3   : > { %v6742_v58 = vpop.permute.xlu1 %3590 }
 0x8c6   : > { %v6744_v61 = vpop.permute.xlu0 %3598 }
 0x8c7   : > { %v3517_v51 = vpop.permute.xlu1 %3516  ;;  %v3730_v42 = vsel %vm493_vm0, %v6744_v61, %v6665_v60 }
 0x8c8   : > { %v3702_v47 = vsel %vm493_vm0, %v3515_v35, %v3517_v51  ;;  %v3703_v48 = vsel %vm493_vm0, %v3517_v51, %v3519_v44 }
 0x8c9   : > { %3850 = vmatprep.subr.bf16.mxu1 %v3703_v48 }
 0x8ca   : > { %3851 = vmatpush1.bf16.msra.mxu1 %v3702_v47  ;;  %v3543_v36 = vpop.permute.xlu0 %3542 }
 0x8cb   : > { %v6748_v22 = vpop.permute.xlu1 %3602  ;;  %3852 = vmatprep.subr.bf16.mxu1 %v6601_v37  ;;  %v3708_v37 = vsel %vm493_vm0, %v3533_v55, %v3535_v4 }
 0x8cc   : > { %v3731_v28 = vsel %vm493_vm0, %v6665_v60, %v6748_v22 }
 0x8ce   : > { %3853 = vmatpush1.bf16.msra.mxu1 %v6594_v29  ;;  %v3539_v16 = vpop.permute.xlu0 %3538 }
 0x8cf   : > { %v3567_v39 = vpop.permute.xlu1 %3566  ;;  %3854 = vmatprep.subr.bf16.mxu1 %v3707_v30 }
 0x8d2   : > { %3855 = vmatpush1.bf16.msra.mxu1 %v3706_v7  ;;  %v3589_v27 = vpop.permute.xlu0 %3588 }
 0x8d3   : > { %v3563_v18 = vpop.permute.xlu1 %3562  ;;  %3856 = vmatprep.subr.bf16.mxu1 %v3709_v34  ;;  %v3727_v2 = vsel %vm493_vm0, %v3589_v27, %v6742_v58 }
 0x8d6   : > { %3857 = vmatpush1.bf16.msra.mxu1 %v3708_v37  ;;  %v6760_v29 = vpop.permute.xlu0 %3608 }
 0x8d7   : > { %v3541_v12 = vpop.permute.xlu1 %3540 }
 0x8d8   : > { %v3710_v10 = vsel %vm493_vm0, %v3539_v16, %v3541_v12  ;;  %v3711_v49 = vsel %vm493_vm0, %v3541_v12, %v3543_v36 }
 0x8d9   : > { %3858 = vmatprep.subr.bf16.mxu1 %v3711_v49 }
 0x8da   : > { %3859 = vmatpush1.bf16.msra.mxu1 %v3710_v10  ;;  %v6764_v1 = vpop.permute.xlu0 %3610 }
 0x8db   : > { %v6766_v15 = vpop.permute.xlu1 %3606  ;;  %3860 = vmatprep.subr.bf16.mxu1 %v6615_v62 }
 0x8de   : > { %3861 = vmatpush1.bf16.msra.mxu1 %v6611_v56  ;;  %v6770_v25 = vpop.permute.xlu0 %3620  ;;  %v3716_v56 = vsel %vm493_vm0, %v3557_v31, %v3559_v41 }
 0x8df   : > { %v3605_v57 = vpop.permute.xlu1 %3604  ;;  %3862 = vmatprep.subr.bf16.mxu1 %v3715_v45 }
 0x8e0   : > { %v3732_v13 = vsel %vm493_vm0, %v3605_v57, %v6766_v15 }
 0x8e2   : > { %3863 = vmatpush1.bf16.msra.mxu1 %v3714_v8  ;;  %v6778_v14 = vpop.permute.xlu0 %3624 }
 0x8e3   : > { %v6781_v62 = vpop.permute.xlu1 %3618  ;;  %3864 = vmatprep.subr.bf16.mxu1 %v3717_v59 }
 0x8e4   : > { %v3737_v61 = vsel %vm493_vm0, %v6781_v62, %v6770_v25 }
 0x8e6   : > { %3865 = vmatpush1.bf16.msra.mxu1 %v3716_v56  ;;  %v3565_v43 = vpop.permute.xlu0 %3564 }
 0x8e7   : > { %v3617_v11 = vpop.permute.xlu1 %3616  ;;  %v3719_v3 = vsel %vm493_vm0, %v3565_v43, %v3567_v39  ;;  %v3718_v55 = vsel %vm493_vm0, %v3563_v18, %v3565_v43 }
 0x8e8   : > { %3866 = vmatprep.subr.bf16.mxu1 %v3719_v3  ;;  %v3736_v47 = vsel %vm493_vm0, %v3617_v11, %v6781_v62 }
 0x8ea   : > { %3867 = vmatpush1.bf16.msra.mxu1 %v3718_v55  ;;  %v3623_v46 = vpop.permute.xlu0 %3622 }
 0x8eb   : > { %v3627_v38 = vpop.permute.xlu1 %3626  ;;  %3879 = vmatprep.subr.bf16.mxu1 %v6586_v9  ;;  %v3738_v30 = vsel %vm493_vm0, %v3623_v46, %v6778_v14 }
 0x8ec   : > { %v3739_v36 = vsel %vm493_vm0, %v6778_v14, %v3627_v38  ;;  %v4399_v38 = vld [vmem:[%s6880_s7 + $0x8] ss:$20 sps:$4 sm:$0x1f]  }
 0x8ed   : > { %3869 = vmatmul.mubr.bf16.vlgmr.msra.gmra.mrb[24].mxu1 %v4396_v17 }
 0x8ee   : > { %3880 = vmatpush1.bf16.msra.mxu1 %v3720_v53  ;;  %v3633_v20 = vpop.permute.xlu0 %3632  ;;  %3911 = vmatprep.mubr.bf16.mxu1 %v4401_v19 }
 0x8ef   : > { %v3631_v50 = vpop.permute.xlu1 %3630  ;;  %3881 = vmatprep.subr.bf16.mxu1 %v6658_v23 }
 0x8f2   : > { %3882 = vmatpush1.bf16.msra.mxu1 %v6604_v32  ;;  %v6798_v21 = vpop.permute.xlu0 %3634  ;;  %v3726_v32 = vsel %vm493_vm0, %v6735_v26, %v3589_v27  ;;  %v3741_v27 = vsel %vm493_vm0, %v3631_v50, %v3633_v20 }
 0x8f3   : > { %v3629_v9 = vpop.permute.xlu1 %3628  ;;  %3883 = vmatprep.subr.bf16.mxu1 %v3725_v24  ;;  %v4402_v24 = vld [vmem:[%s6880_s7 + $0x10] ss:$20 sps:$4 sm:$0x1f]  }
 0x8f4   : > { %v3740_v18 = vsel %vm493_vm0, %v3629_v9, %v3631_v50 }
 0x8f6   : > { %3884 = vmatpush1.bf16.msra.mxu1 %v3724_v5  ;;  %v3645_v40 = vpop.permute.xlu0 %3644 }
 0x8f7   : > { %v6808_v23 = vpop.permute.xlu1 %3642  ;;  %3885 = vmatprep.subr.bf16.mxu1 %v3727_v2 }
 0x8fa   : > { %3886 = vmatpush1.bf16.msra.mxu1 %v3726_v32  ;;  %v3667_v52 = vpop.permute.xlu0 %3666 }
 0x8fb   : > { %v3641_v33 = vpop.permute.xlu1 %3640  ;;  %3887 = vmatprep.subr.bf16.mxu1 %v6628_v0 }
 0x8fc   : > { %v3744_v25 = vsel %vm493_vm0, %v3641_v33, %v6808_v23 }
 0x8fe   : > { %3888 = vmatpush1.bf16.msra.mxu1 %v6621_v63  ;;  %v3665_v4 = vpop.permute.xlu0 %3664  ;;  %v3733_v63 = vsel %vm493_vm0, %v6766_v15, %v6760_v29 }
 0x8ff   : > { %v3669_v31 = vpop.permute.xlu1 %3668  ;;  %3889 = vmatprep.subr.bf16.mxu1 %v3731_v28  ;;  %v3752_v26 = vsel %vm493_vm0, %v3665_v4, %v3667_v52 }
 0x900   : > { %v3753_v54 = vsel %vm493_vm0, %v3667_v52, %v3669_v31 }
 0x901   : > { %3922 = vmatprep.subr.bf16.mxu0 %v3753_v54 }
 0x902   : > { %3890 = vmatpush1.bf16.msra.mxu1 %v3730_v42  ;;  %3923 = vmatpush1.bf16.msra.mxu0 %v3752_v26  ;;  %v3651_v0 = vpop.permute.xlu0 %3650 }
 0x903   : > { %v3649_v6 = vpop.permute.xlu1 %3648  ;;  %3891 = vmatprep.subr.bf16.mxu1 %v3733_v63 }
 0x904   : > { %v3747_v57 = vsel %vm493_vm0, %v3649_v6, %v3651_v0 }
 0x906   : > { %3892 = vmatpush1.bf16.msra.mxu1 %v3732_v13  ;;  %v3613_v44 = vpop.permute.xlu0 %3612 }
 0x907   : > { %v3615_v41 = vpop.permute.xlu1 %3614  ;;  %v3734_v35 = vsel %vm493_vm0, %v6764_v1, %v3613_v44  ;;  %v3745_v1 = vsel %vm493_vm0, %v6808_v23, %v3645_v40 }
 0x908   : > { %v3735_v60 = vsel %vm493_vm0, %v3613_v44, %v3615_v41 }
 0x909   : > { %3893 = vmatprep.subr.bf16.mxu1 %v3735_v60 }
 0x90a   : > { %3894 = vmatpush1.bf16.msra.mxu1 %v3734_v35  ;;  %v3673_v58 = vpop.permute.xlu0 %3672 }
 0x90b   : > { %v3647_v51 = vpop.permute.xlu1 %3646  ;;  %3895 = vmatprep.subr.bf16.mxu1 %v3737_v61 }
 0x90c   : > { %v3746_v59 = vsel %vm493_vm0, %v3647_v51, %v3649_v6 }
 0x90e   : > { %3896 = vmatpush1.bf16.msra.mxu1 %v3736_v47  ;;  %v3671_v48 = vpop.permute.xlu0 %3670 }
 0x90f   : > { %v3675_v22 = vpop.permute.xlu1 %3674  ;;  %3897 = vmatprep.subr.bf16.mxu1 %v3739_v36  ;;  %v3754_v39 = vsel %vm493_vm0, %v3671_v48, %v3673_v58 }
 0x910   : > { %v3755_v16 = vsel %vm493_vm0, %v3673_v58, %v3675_v22 }
 0x911   : > { %3924 = vmatprep.subr.bf16.mxu0 %v3755_v16 }
 0x912   : > { %3898 = vmatpush1.bf16.msra.mxu1 %v3738_v30  ;;  %3925 = vmatpush1.bf16.msra.mxu0 %v3754_v39  ;;  %v3657_v7 = vpop.permute.xlu0 %3656 }
 0x913   : > { %v3655_v34 = vpop.permute.xlu1 %3654  ;;  %3899 = vmatprep.subr.bf16.mxu1 %v3741_v27 }
 0x914   : > { %v3749_v43 = vsel %vm493_vm0, %v3655_v34, %v3657_v7 }
 0x916   : > { %3900 = vmatpush1.bf16.msra.mxu1 %v3740_v18  ;;  %v3637_v37 = vpop.permute.xlu0 %3636 }
 0x917   : > { %v3639_v29 = vpop.permute.xlu1 %3638  ;;  %v3742_v10 = vsel %vm493_vm0, %v6798_v21, %v3637_v37 }
 0x918   : > { %v3743_v12 = vsel %vm493_vm0, %v3637_v37, %v3639_v29 }
 0x919   : > { %3901 = vmatprep.subr.bf16.mxu1 %v3743_v12 }
 0x91a   : > { %3902 = vmatpush1.bf16.msra.mxu1 %v3742_v10  ;;  %v3679_v49 = vpop.permute.xlu0 %3678 }
 0x91b   : > { %v3653_v15 = vpop.permute.xlu1 %3652  ;;  %3903 = vmatprep.subr.bf16.mxu1 %v3745_v1 }
 0x91c   : > { %v3748_v3 = vsel %vm493_vm0, %v3653_v15, %v3655_v34 }
 0x91e   : > { %3904 = vmatpush1.bf16.msra.mxu1 %v3744_v25  ;;  %v3677_v45 = vpop.permute.xlu0 %3676 }
 0x91f   : > { %v3681_v8 = vpop.permute.xlu1 %3680  ;;  %3905 = vmatprep.subr.bf16.mxu1 %v3747_v57  ;;  %v3756_v62 = vsel %vm493_vm0, %v3677_v45, %v3679_v49 }
 0x920   : > { %v3757_v14 = vsel %vm493_vm0, %v3679_v49, %v3681_v8 }
 0x921   : > { %3926 = vmatprep.subr.bf16.mxu0 %v3757_v14 }
 0x922   : > { %3906 = vmatpush1.bf16.msra.mxu1 %v3746_v59  ;;  %3927 = vmatpush1.bf16.msra.mxu0 %v3756_v62  ;;  %v3663_v56 = vpop.permute.xlu0 %3662 }
 0x923   : > { %v3661_v11 = vpop.permute.xlu1 %3660  ;;  %3907 = vmatprep.subr.bf16.mxu1 %v3749_v43 }
 0x924   : > { %v3751_v17 = vsel %vm493_vm0, %v3661_v11, %v3663_v56 }
 0x926   : > { %3908 = vmatpush1.bf16.msra.mxu1 %v3748_v3  ;;  %v3685_v55 = vpop.permute.xlu0 %3684 }
 0x927   : > { %v3659_v46 = vpop.permute.xlu1 %3658  ;;  %3909 = vmatprep.subr.bf16.mxu1 %v3751_v17 }
 0x928   : > { %v3750_v19 = vsel %vm493_vm0, %v3659_v46, %v3661_v11 }
 0x92a   : > { %3910 = vmatpush1.bf16.msra.mxu1 %v3750_v19  ;;  %v3683_v53 = vpop.permute.xlu0 %3682 }
 0x92b   : > { %v3687_v20 = vpop.permute.xlu1 %3686  ;;  %v3758_v21 = vsel %vm493_vm0, %v3683_v53, %v3685_v55 }
 0x92c   : > { %v3759_v50 = vsel %vm493_vm0, %v3685_v55, %v3687_v20 }
 0x92d   : > { %3912 = vmatmul.mubr.bf16.vlgmr.msra.gmra.mrb[24].mxu1 %v4399_v38  ;;  %3928 = vmatprep.subr.bf16.mxu0 %v3759_v50 }
 0x92e   : > { %3929 = vmatpush1.bf16.msra.mxu0 %v3758_v21 }
 0x931   : > { %4090 = vmatmul.mubr.msk.bf16.vlgmr.msra.gmra.mrb[28].mxu0 %vm3832_vm1, %v4402_v24 }
 0x93b   : > { %v3433_v52 = vpop.permute.xlu0 %3432 }
 0x93c   : > { %v3428_v40 = vpop.permute.xlu1 %3427 }
 0xa00   : > { %v3913_v9 = vpop.f32.mrb[24].mxu1 }
 0xa01   : > { %v3915_v5 = vpop.f32.mrb[25].mxu1  ;;  %v4110_v23 = vadd.f32 %v3913_v9, %v3428_v40 }
 0xa02   : > { %v3917_v2 = vpop.f32.mrb[26].mxu1  ;;  %v4112_v33 = vadd.f32 %v3915_v5, %v3428_v40 }
 0xa03   : > { %v3919_v32 = vpop.f32.mrb[27].mxu1  ;;  %v4114_v28 = vadd.f32 %v3917_v2, %v3433_v52 }
 0xa04   : > { %v3956_v4 = vpop.f32.mrb[28].mxu0  ;;  %v4116_v42 = vadd.f32 %v3919_v32, %v3433_v52 }
 0xa05   : > { %v4111_v31 = vadd.f32 %v4110_v23, %v3956_v4  ;;  %v3958_v54 = vpop.f32.mrb[29].mxu0 }
 0xa06   : > { %v4113_v26 = vadd.f32 %v4112_v33, %v3958_v54  ;;  %v3960_v0 = vpop.f32.mrb[30].mxu0 }
 0xa07   : > { %3965 = vst [vmem:[%s332_s29] sm:$0xff] %v4111_v31  ;;  %v4115_v63 = vadd.f32 %v4114_v28, %v3960_v0  ;;  %v3962_v6 = vpop.f32.mrb[31].mxu0 }
 0xa08   : > { %3966 = vst [vmem:[%s332_s29 + $0x8] sm:$0xff] %v4113_v26  ;;  %v4117_v13 = vadd.f32 %v4116_v42, %v3962_v6 }
 0xa09   : > { %3967 = vst [vmem:[%s332_s29 + $0x10] sm:$0x1] %v4115_v63 }
 0xa0a   : > { %3968 = vst [vmem:[%s332_s29 + $0x18] sm:$0x1] %v4117_v13 }
 0xa0b PF: > { %s19_s30 = sadd.s32 1, %s4409_s30  }
 0xa0c   : > { %p16_p4 = scmp.ge.s32.totalorder %s19_s30, 4  }
 0xa0e   :  { %18 = sbr.rel (!%p16_p4) target bundleno = 1 (0x1), region = 88 }

</bundles_post_ra>
